<compile_context>
chip_gen: v7x
topology: tpu7x:2x2x1
jax: 0.10.0
libtpu: 0.0.40
codegen_flags: <defaults>
</compile_context>

<pallas_src>
import functools

import jax
import jax.numpy as jnp
from jax.experimental import pallas as pl
from jax.experimental.pallas import tpu as pltpu


def _round_up(x, m):
    return (x + m - 1) // m * m


def _bilstm_kernel(gx_f_ref, gx_r_ref, whh_f_ref, whh_r_ref, b_f_ref, b_r_ref,
                   out_f_ref, out_r_ref, cn_f_ref, cn_r_ref,
                   h_f_scr, c_f_scr, h_r_scr, c_r_scr,
                   *, seq_len, unroll, guard):
    """One time-chunk of the fused bidirectional LSTM.

    gx_*_ref : (Tc, Bp, 4Hp)  precomputed x @ (0.5-scaled W_ih)^T for this chunk;
                              the reverse stream is already time-flipped, so both
                              recurrences walk the chunk 0..Tc-1.
    whh_*_ref: (Hp, 4Hp)      hidden->gates weights (transposed, i/f/o rows pre-scaled by 0.5)
    b_*_ref  : (1, 4Hp)       combined bias (i/f/o pre-scaled by 0.5)
    out_*_ref: (Tc, Bp, Hp)   per-step hidden outputs (reverse block lands at original time)
    cn_*_ref : (Bp, Hp)       final cell state (resident output, written on the last chunk)
    *_scr    : (Bp, Hp)       h/c carries across chunks (VMEM scratch)
    """
    t = pl.program_id(0)
    Tc = gx_f_ref.shape[0]
    Hp = h_f_scr.shape[-1]
    mm_dtype = whh_f_ref.dtype

    @pl.when(t == 0)
    def _():
        h_f_scr[...] = jnp.zeros_like(h_f_scr)
        c_f_scr[...] = jnp.zeros_like(c_f_scr)
        h_r_scr[...] = jnp.zeros_like(h_r_scr)
        c_r_scr[...] = jnp.zeros_like(c_r_scr)

    def cell(gx, h, c, whh_ref, b_ref):
        # Recurrent projection on the MXU; f32 accumulation.
        gates = jnp.dot(h.astype(mm_dtype), whh_ref[...],
                        preferred_element_type=jnp.float32)
        gates = gates + gx.astype(jnp.float32) + b_ref[...].astype(jnp.float32)
        # Single EUP pass over all four gates: sigmoid(x) = 0.5*tanh(x/2) + 0.5
        # (the 0.5 pre-scale of i/f/o is already folded into the packed weights/bias).
        tg = jnp.tanh(gates)
        i_g = tg[:, 0 * Hp:1 * Hp] * 0.5 + 0.5
        f_g = tg[:, 1 * Hp:2 * Hp] * 0.5 + 0.5
        g_g = tg[:, 2 * Hp:3 * Hp]
        o_g = tg[:, 3 * Hp:4 * Hp] * 0.5 + 0.5
        c_new = f_g * c + i_g * g_g
        h_new = o_g * jnp.tanh(c_new)
        return h_new, c_new

    def step(s, carry):
        h_f, c_f, h_r, c_r = carry
        h_f_n, c_f_n = cell(gx_f_ref[s], h_f, c_f, whh_f_ref, b_f_ref)
        h_r_n, c_r_n = cell(gx_r_ref[s], h_r, c_r, whh_r_ref, b_r_ref)
        if guard:
            # Zero-padded tail steps (Sp > S) must not advance the recurrence.
            valid = t * Tc + s < seq_len
            h_f_n = jnp.where(valid, h_f_n, h_f)
            c_f_n = jnp.where(valid, c_f_n, c_f)
            h_r_n = jnp.where(valid, h_r_n, h_r)
            c_r_n = jnp.where(valid, c_r_n, c_r)
        out_f_ref[s] = h_f_n.astype(out_f_ref.dtype)
        # Reverse direction processes flipped time; storing at Tc-1-s (with the block
        # index_map reversed) puts it back in original time order with no extra XLA pass.
        out_r_ref[Tc - 1 - s] = h_r_n.astype(out_r_ref.dtype)
        return h_f_n, c_f_n, h_r_n, c_r_n

    h_f, c_f, h_r, c_r = jax.lax.fori_loop(
        0, Tc, step,
        (h_f_scr[...], c_f_scr[...], h_r_scr[...], c_r_scr[...]),
        unroll=unroll)

    h_f_scr[...] = h_f
    c_f_scr[...] = c_f
    h_r_scr[...] = h_r
    c_r_scr[...] = c_r

    @pl.when(t == pl.num_programs(0) - 1)
    def _():
        cn_f_ref[...] = c_f.astype(cn_f_ref.dtype)
        cn_r_ref[...] = c_r.astype(cn_r_ref.dtype)


def encoder_rnn_forward(signal, params, *, matmul_dtype=jnp.bfloat16,
                        time_chunk=None, vmem_block_budget=40 * 1024 * 1024):
    """signal: (B, S, I) float32, batch_first like the PyTorch module.

    Returns (output (B, S, 2H), (h_n (2, B, H), c_n (2, B, H))) — same as
    nn.LSTM(input_size, hidden_size, batch_first=True, bidirectional=True).
    """
    B, S, I = signal.shape
    H = params["hidden_size"]

    Bp = _round_up(B, 8)      # sublane multiple
    Hp = _round_up(H, 128)    # lane multiple -> lane-dense stores, aligned gate slices

    mm_dtype = jnp.dtype(matmul_dtype)
    gx_dtype = mm_dtype       # stream the input-projection slab in the matmul dtype

    # --- parameter packing ---------------------------------------------------
    # PyTorch gate order (i, f, g, o); i/f/o rows pre-scaled by 0.5 so the kernel can
    # realise the sigmoids with a single tanh pass.  Each gate padded independently to Hp
    # so gate slices cut exactly on 128-lane boundaries (zero padding is exact for LSTM).
    gate_scale = jnp.array([0.5, 0.5, 1.0, 0.5], jnp.float32)

    def pack_w(w, pad_rows_to=None):
        X = w.shape[1]
        w4 = w.reshape(4, H, X) * gate_scale[:, None, None]
        w4 = jnp.pad(w4, ((0, 0), (0, Hp - H), (0, 0)))
        wt = jnp.transpose(w4, (2, 0, 1)).reshape(X, 4 * Hp)
        if pad_rows_to is not None:
            wt = jnp.pad(wt, ((0, pad_rows_to - X), (0, 0)))
        return wt

    def pack_b(b):
        b4 = b.reshape(4, H) * gate_scale[:, None]
        return jnp.pad(b4, ((0, 0), (0, Hp - H))).reshape(1, 4 * Hp)

    wih_f = pack_w(params["w_ih_fwd"])                                   # (I, 4Hp)
    wih_r = pack_w(params["w_ih_rev"])
    whh_f = pack_w(params["w_hh_fwd"], pad_rows_to=Hp).astype(mm_dtype)  # (Hp, 4Hp)
    whh_r = pack_w(params["w_hh_rev"], pad_rows_to=Hp).astype(mm_dtype)
    b_f = pack_b(params["b_ih_fwd"] + params["b_hh_fwd"])                # (1, 4Hp) f32
    b_r = pack_b(params["b_ih_rev"] + params["b_hh_rev"])

    # --- time-chunk selection from a VMEM budget ------------------------------
    gx_bytes = jnp.dtype(gx_dtype).itemsize
    mm_bytes = jnp.dtype(mm_dtype).itemsize

    def vmem_usage(tc):
        gx_blocks = 2 * 2 * tc * Bp * 4 * Hp * gx_bytes   # 2 dirs, double-buffered
        out_blocks = 2 * 2 * tc * Bp * Hp * 4             # 2 dirs, double-buffered, f32
        whh_blocks = 2 * 2 * Hp * 4 * Hp * mm_bytes       # 2 dirs, 2 buffers
        small = 2 * 2 * 4 * Hp * 4 + 2 * 2 * Bp * Hp * 4  # biases + c_n blocks
        scratch = 4 * Bp * Hp * 4                         # h/c carries
        return gx_blocks + out_blocks + whh_blocks + small + scratch

    if time_chunk is None:
        cap = 1
        for tc in range(1, S + 1):
            if vmem_usage(tc) <= vmem_block_budget:
                cap = tc
        divisors = [d for d in range(1, cap + 1) if S % d == 0]
        best_div = max(divisors) if divisors else 1
        # Prefer a divisor of S (no tail padding / no per-step guard) unless it is much
        # smaller than what the VMEM budget allows.
        Tc = best_div if best_div * 2 >= cap else cap
    else:
        Tc = max(1, min(int(time_chunk), S))
    nC = -(-S // Tc)
    Sp = nC * Tc
    needs_guard = Sp != S

    usage = vmem_usage(Tc)
    vmem_limit = None
    if usage > 14 * 1024 * 1024:
        # Raise the scoped-VMEM limit only when needed; leave headroom for compiler scratch.
        vmem_limit = int(usage + 16 * 1024 * 1024)

    unroll = min(Tc, 8) if Hp <= 256 else min(Tc, 4)

    # --- hoisted input projection (one big MXU matmul per direction in XLA) ---
    x_p = jnp.pad(signal.astype(jnp.float32), ((0, Bp - B), (0, 0), (0, 0)))  # (Bp, S, I)
    x_mm = x_p.astype(mm_dtype)
    gx_f = jnp.einsum("bsi,io->sbo", x_mm, wih_f.astype(mm_dtype),
                      preferred_element_type=jnp.float32).astype(gx_dtype)    # (S, Bp, 4Hp)
    gx_r = jnp.einsum("bsi,io->sbo", x_mm[:, ::-1, :], wih_r.astype(mm_dtype),
                      preferred_element_type=jnp.float32).astype(gx_dtype)    # time-flipped
    if needs_guard:
        pad = ((0, Sp - S), (0, 0), (0, 0))
        gx_f = jnp.pad(gx_f, pad)
        gx_r = jnp.pad(gx_r, pad)

    kernel = functools.partial(_bilstm_kernel, seq_len=S, unroll=unroll,
                               guard=needs_guard)

    grid_spec = pltpu.PrefetchScalarGridSpec(
        num_scalar_prefetch=0,
        grid=(nC,),
        in_specs=[
            pl.BlockSpec((Tc, Bp, 4 * Hp), lambda t: (t, 0, 0)),
            pl.BlockSpec((Tc, Bp, 4 * Hp), lambda t: (t, 0, 0)),
            pl.BlockSpec((Hp, 4 * Hp), lambda t: (0, 0)),
            pl.BlockSpec((Hp, 4 * Hp), lambda t: (0, 0)),
            pl.BlockSpec((1, 4 * Hp), lambda t: (0, 0)),
            pl.BlockSpec((1, 4 * Hp), lambda t: (0, 0)),
        ],
        out_specs=[
            pl.BlockSpec((Tc, Bp, Hp), lambda t: (t, 0, 0)),
            # reverse half: chunk index reversed so the (Tc-1-s) in-kernel store lands
            # the reverse hidden states in original time order (offset Sp-S when padded).
            pl.BlockSpec((Tc, Bp, Hp), lambda t: (nC - 1 - t, 0, 0)),
            pl.BlockSpec((Bp, Hp), lambda t: (0, 0)),
            pl.BlockSpec((Bp, Hp), lambda t: (0, 0)),
        ],
        scratch_shapes=[pltpu.VMEM((Bp, Hp), jnp.float32) for _ in range(4)],
    )

    out_f, out_r, cn_f, cn_r = pl.pallas_call(
        kernel,
        out_shape=[
            jax.ShapeDtypeStruct((Sp, Bp, Hp), jnp.float32),
            jax.ShapeDtypeStruct((Sp, Bp, Hp), jnp.float32),
            jax.ShapeDtypeStruct((Bp, Hp), jnp.float32),
            jax.ShapeDtypeStruct((Bp, Hp), jnp.float32),
        ],
        grid_spec=grid_spec,
        compiler_params=pltpu.CompilerParams(
            dimension_semantics=("arbitrary",),
            vmem_limit_bytes=vmem_limit),
    )(gx_f, gx_r, whh_f, whh_r, b_f, b_r)

    out_f_v = out_f[:S, :B, :H]                 # (S, B, H) forward
    out_r_v = out_r[Sp - S:, :B, :H]            # (S, B, H) reverse, original time order
    output = jnp.transpose(jnp.concatenate([out_f_v, out_r_v], axis=-1), (1, 0, 2))
    # h_n recovered from the output slab (fwd: last time step; rev: time step 0).
    h_n = jnp.stack([out_f_v[S - 1], out_r_v[0]])              # (2, B, H)
    c_n = jnp.stack([cn_f[:B, :H], cn_r[:B, :H]])              # (2, B, H)
    return output, (h_n, c_n)


def _lstm_ref_single_dir(x, w_ih, w_hh, b_ih, b_hh, reverse):
    """Pure-JAX reference for one LSTM direction. x: (B, S, I)."""
    B, S, I = x.shape
    H = w_hh.shape[1]

    def step(carry, xt):
        h, c = carry
        gates = xt @ w_ih.T + h @ w_hh.T + b_ih + b_hh
        i = jax.nn.sigmoid(gates[:, 0 * H:1 * H])
        f = jax.nn.sigmoid(gates[:, 1 * H:2 * H])
        g = jnp.tanh(gates[:, 2 * H:3 * H])
        o = jax.nn.sigmoid(gates[:, 3 * H:4 * H])
        c = f * c + i * g
        h = o * jnp.tanh(c)
        return (h, c), h

    xs = jnp.swapaxes(x, 0, 1)
    if reverse:
        xs = xs[::-1]
    (h, c), ys = jax.lax.scan(step, (jnp.zeros((B, H)), jnp.zeros((B, H))), xs)
    if reverse:
        ys = ys[::-1]
    return jnp.swapaxes(ys, 0, 1), h, c


def init_params(key, input_size, hidden_size):
    """Deterministic init matching PyTorch nn.LSTM shapes: U(-1/sqrt(H), 1/sqrt(H))."""
    H = hidden_size
    bound = 1.0 / jnp.sqrt(jnp.float32(H))
    names_shapes = [
        ("w_ih_fwd", (4 * H, input_size)), ("w_hh_fwd", (4 * H, H)),
        ("b_ih_fwd", (4 * H,)), ("b_hh_fwd", (4 * H,)),
        ("w_ih_rev", (4 * H, input_size)), ("w_hh_rev", (4 * H, H)),
        ("b_ih_rev", (4 * H,)), ("b_hh_rev", (4 * H,)),
    ]
    keys = jax.random.split(key, len(names_shapes))
    params = {"hidden_size": H}
    for (name, shape), k in zip(names_shapes, keys):
        params[name] = jax.random.uniform(k, shape, jnp.float32, -bound, bound)
    return params


if __name__ == "__main__":
    B, S, I, H = 2, 8, 16, 32

    key = jax.random.PRNGKey(0)
    k_sig, k_par = jax.random.split(key)
    signal = jax.random.normal(k_sig, (B, S, I), jnp.float32)
    params = init_params(k_par, I, H)

    # Default (perf) configuration: bf16 MXU operands + bf16 gates_x streaming.
    fwd = jax.jit(functools.partial(encoder_rnn_forward, params=params))
    output, (h_n, c_n) = fwd(signal)
    jax.block_until_ready((output, h_n, c_n))

    # Pure-JAX f32 scan reference for nn.LSTM(bidirectional) forward semantics.
    out_f, hf, cf = _lstm_ref_single_dir(
        signal, params["w_ih_fwd"], params["w_hh_fwd"],
        params["b_ih_fwd"], params["b_hh_fwd"], reverse=False)
    out_r, hr, cr = _lstm_ref_single_dir(
        signal, params["w_ih_rev"], params["w_hh_rev"],
        params["b_ih_rev"], params["b_hh_rev"], reverse=True)
    ref_out = jnp.concatenate([out_f, out_r], axis=-1)
    ref_hn = jnp.stack([hf, hr])
    ref_cn = jnp.stack([cf, cr])

    assert output.shape == (B, S, 2 * H)
    assert h_n.shape == (2, B, H) and c_n.shape == (2, B, H)
    # bf16 matmul operands + bf16 gates_x -> loose tolerance vs the f32 reference
    assert jnp.allclose(output, ref_out, atol=5e-2, rtol=5e-2)
    assert jnp.allclose(h_n, ref_hn, atol=5e-2, rtol=5e-2)
    assert jnp.allclose(c_n, ref_cn, atol=5e-2, rtol=5e-2)

    # Full-f32 configuration must match tightly.
    fwd32 = jax.jit(functools.partial(encoder_rnn_forward, params=params,
                                      matmul_dtype=jnp.float32))
    output32, (h_n32, c_n32) = fwd32(signal)
    jax.block_until_ready((output32, h_n32, c_n32))
    assert jnp.allclose(output32, ref_out, atol=2e-3, rtol=2e-3)
    assert jnp.allclose(h_n32, ref_hn, atol=2e-3, rtol=2e-3)
    assert jnp.allclose(c_n32, ref_cn, atol=2e-3, rtol=2e-3)

    # Exercise the non-divisible-S path (tail padding + in-kernel guard).
    out_tc, (hn_tc, cn_tc) = jax.jit(functools.partial(
        encoder_rnn_forward, params=params, time_chunk=3))(signal)
    jax.block_until_ready((out_tc, hn_tc, cn_tc))
    assert jnp.allclose(out_tc, ref_out, atol=5e-2, rtol=5e-2)
    assert jnp.allclose(hn_tc, ref_hn, atol=5e-2, rtol=5e-2)
    assert jnp.allclose(cn_tc, ref_cn, atol=5e-2, rtol=5e-2)

    print("KERNEL_OK")
</pallas_src>

<mosaic_0001>
module attributes {stable_mosaic.version = 11 : i64} {
  func.func @_bilstm_kernel(%arg0: i32, %arg1: memref<8x8x512xbf16, #tpu.memory_space<vmem>>, %arg2: memref<8x8x512xbf16, #tpu.memory_space<vmem>>, %arg3: memref<128x512xbf16, #tpu.memory_space<vmem>>, %arg4: memref<128x512xbf16, #tpu.memory_space<vmem>>, %arg5: memref<1x512xf32, #tpu.memory_space<vmem>>, %arg6: memref<1x512xf32, #tpu.memory_space<vmem>>, %arg7: memref<8x8x128xf32, #tpu.memory_space<vmem>>, %arg8: memref<8x8x128xf32, #tpu.memory_space<vmem>>, %arg9: memref<8x128xf32, #tpu.memory_space<vmem>>, %arg10: memref<8x128xf32, #tpu.memory_space<vmem>>, %arg11: memref<8x128xf32, #tpu.memory_space<vmem>>, %arg12: memref<8x128xf32, #tpu.memory_space<vmem>>, %arg13: memref<8x128xf32, #tpu.memory_space<vmem>>, %arg14: memref<8x128xf32, #tpu.memory_space<vmem>>) attributes {dimension_semantics = [#tpu.dimension_semantics<arbitrary>], iteration_bounds = array<i64: 1>, scalar_prefetch = 0 : i64, scratch_operands = 4 : i64, tpu.core_type = #tpu.core_type<tc>, window_params = [{transform_indices = @transform_0, window_bounds = array<i64: 8, 8, 512>}, {transform_indices = @transform_1, window_bounds = array<i64: 8, 8, 512>}, {pipeline_mode = #tpu.pipeline_mode<synchronous>, transform_indices = @transform_2, window_bounds = array<i64: 128, 512>}, {pipeline_mode = #tpu.pipeline_mode<synchronous>, transform_indices = @transform_3, window_bounds = array<i64: 128, 512>}, {pipeline_mode = #tpu.pipeline_mode<synchronous>, transform_indices = @transform_4, window_bounds = array<i64: 1, 512>}, {pipeline_mode = #tpu.pipeline_mode<synchronous>, transform_indices = @transform_5, window_bounds = array<i64: 1, 512>}, {transform_indices = @transform_6, window_bounds = array<i64: 8, 8, 128>}, {transform_indices = @transform_7, window_bounds = array<i64: 8, 8, 128>}, {pipeline_mode = #tpu.pipeline_mode<synchronous>, transform_indices = @transform_8, window_bounds = array<i64: 8, 128>}, {pipeline_mode = #tpu.pipeline_mode<synchronous>, transform_indices = @transform_9, window_bounds = array<i64: 8, 128>}]} {
    %c0_i32 = arith.constant 0 : i32
    %0 = arith.cmpi eq, %arg0, %c0_i32 : i32
    %1 = arith.extui %0 : i1 to i32
    %c0_i32_0 = arith.constant 0 : i32
    %2 = arith.cmpi ne, %1, %c0_i32_0 : i32
    scf.if %2 {
      %cst_266 = arith.constant 0.000000e+00 : f32
      %614 = vector.broadcast %cst_266 : f32 to vector<8x128xf32>
      %c0_267 = arith.constant 0 : index
      %c0_268 = arith.constant 0 : index
      %615 = vector.load %arg11[%c0_267, %c0_268] : memref<8x128xf32, #tpu.memory_space<vmem>>, vector<8x128xf32>
      tpu.vector_store %arg11[%c0_267, %c0_268], %614 {strides = array<i32>} : memref<8x128xf32, #tpu.memory_space<vmem>>, vector<8x128xf32>,
      %cst_269 = arith.constant 0.000000e+00 : f32
      %616 = vector.broadcast %cst_269 : f32 to vector<8x128xf32>
      %c0_270 = arith.constant 0 : index
      %c0_271 = arith.constant 0 : index
      %617 = vector.load %arg12[%c0_270, %c0_271] : memref<8x128xf32, #tpu.memory_space<vmem>>, vector<8x128xf32>
      tpu.vector_store %arg12[%c0_270, %c0_271], %616 {strides = array<i32>} : memref<8x128xf32, #tpu.memory_space<vmem>>, vector<8x128xf32>,
      %cst_272 = arith.constant 0.000000e+00 : f32
      %618 = vector.broadcast %cst_272 : f32 to vector<8x128xf32>
      %c0_273 = arith.constant 0 : index
      %c0_274 = arith.constant 0 : index
      %619 = vector.load %arg13[%c0_273, %c0_274] : memref<8x128xf32, #tpu.memory_space<vmem>>, vector<8x128xf32>
      tpu.vector_store %arg13[%c0_273, %c0_274], %618 {strides = array<i32>} : memref<8x128xf32, #tpu.memory_space<vmem>>, vector<8x128xf32>,
      %cst_275 = arith.constant 0.000000e+00 : f32
      %620 = vector.broadcast %cst_275 : f32 to vector<8x128xf32>
      %c0_276 = arith.constant 0 : index
      %c0_277 = arith.constant 0 : index
      %621 = vector.load %arg14[%c0_276, %c0_277] : memref<8x128xf32, #tpu.memory_space<vmem>>, vector<8x128xf32>
      tpu.vector_store %arg14[%c0_276, %c0_277], %620 {strides = array<i32>} : memref<8x128xf32, #tpu.memory_space<vmem>>, vector<8x128xf32>,
    } else {
    }
    %c0 = arith.constant 0 : index
    %c0_1 = arith.constant 0 : index
    %3 = vector.load %arg11[%c0, %c0_1] : memref<8x128xf32, #tpu.memory_space<vmem>>, vector<8x128xf32>
    %c0_2 = arith.constant 0 : index
    %c0_3 = arith.constant 0 : index
    %4 = vector.load %arg12[%c0_2, %c0_3] : memref<8x128xf32, #tpu.memory_space<vmem>>, vector<8x128xf32>
    %c0_4 = arith.constant 0 : index
    %c0_5 = arith.constant 0 : index
    %5 = vector.load %arg13[%c0_4, %c0_5] : memref<8x128xf32, #tpu.memory_space<vmem>>, vector<8x128xf32>
    %c0_6 = arith.constant 0 : index
    %c0_7 = arith.constant 0 : index
    %6 = vector.load %arg14[%c0_6, %c0_7] : memref<8x128xf32, #tpu.memory_space<vmem>>, vector<8x128xf32>
    %c0_i32_8 = arith.constant 0 : i32
    %7 = arith.index_cast %c0_i32_8 : i32 to index
    %c0_9 = arith.constant 0 : index
    %c0_10 = arith.constant 0 : index
    %8 = vector.load %arg1[%7, %c0_9, %c0_10] : memref<8x8x512xbf16, #tpu.memory_space<vmem>>, vector<1x8x512xbf16>
    %9 = vector.shape_cast %8 : vector<1x8x512xbf16> to vector<8x512xbf16>
    %10 = arith.truncf %3 : vector<8x128xf32> to vector<8x128xbf16>
    %c0_11 = arith.constant 0 : index
    %c0_12 = arith.constant 0 : index
    %11 = vector.load %arg3[%c0_11, %c0_12] : memref<128x512xbf16, #tpu.memory_space<vmem>>, vector<128x512xbf16>
    %cst = arith.constant dense<0.000000e+00> : vector<8x512xf32>
    %12 = tpu.matmul %10, %11, %cst {dimension_numbers = #tpu.dot_dimension_numbers<[1], [0], [0], [1], [0, 0, 1, 1], [], []>} : vector<8x128xbf16>, vector<128x512xbf16>, vector<8x512xf32> -> vector<8x512xf32>
    %13 = arith.extf %9 : vector<8x512xbf16> to vector<8x512xf32>
    %14 = arith.addf %12, %13 : vector<8x512xf32>
    %c0_13 = arith.constant 0 : index
    %c0_14 = arith.constant 0 : index
    %15 = vector.load %arg5[%c0_13, %c0_14] : memref<1x512xf32, #tpu.memory_space<vmem>>, vector<1x512xf32>
    %16 = vector.broadcast %15 : vector<1x512xf32> to vector<8x512xf32>
    %17 = arith.addf %14, %16 : vector<8x512xf32>
    %18 = math.tanh %17 : vector<8x512xf32>
    %19 = vector.extract_strided_slice %18 {offsets = [0, 0], sizes = [8, 128], strides = [1, 1]} : vector<8x512xf32> to vector<8x128xf32>
    %cst_15 = arith.constant 5.000000e-01 : f32
    %20 = vector.broadcast %cst_15 : f32 to vector<8x128xf32>
    %21 = arith.mulf %19, %20 : vector<8x128xf32>
    %cst_16 = arith.constant 5.000000e-01 : f32
    %22 = vector.broadcast %cst_16 : f32 to vector<8x128xf32>
    %23 = arith.addf %21, %22 : vector<8x128xf32>
    %24 = vector.extract_strided_slice %18 {offsets = [0, 128], sizes = [8, 128], strides = [1, 1]} : vector<8x512xf32> to vector<8x128xf32>
    %cst_17 = arith.constant 5.000000e-01 : f32
    %25 = vector.broadcast %cst_17 : f32 to vector<8x128xf32>
    %26 = arith.mulf %24, %25 : vector<8x128xf32>
    %cst_18 = arith.constant 5.000000e-01 : f32
    %27 = vector.broadcast %cst_18 : f32 to vector<8x128xf32>
    %28 = arith.addf %26, %27 : vector<8x128xf32>
    %29 = vector.extract_strided_slice %18 {offsets = [0, 256], sizes = [8, 128], strides = [1, 1]} : vector<8x512xf32> to vector<8x128xf32>
    %30 = vector.extract_strided_slice %18 {offsets = [0, 384], sizes = [8, 128], strides = [1, 1]} : vector<8x512xf32> to vector<8x128xf32>
    %cst_19 = arith.constant 5.000000e-01 : f32
    %31 = vector.broadcast %cst_19 : f32 to vector<8x128xf32>
    %32 = arith.mulf %30, %31 : vector<8x128xf32>
    %cst_20 = arith.constant 5.000000e-01 : f32
    %33 = vector.broadcast %cst_20 : f32 to vector<8x128xf32>
    %34 = arith.addf %32, %33 : vector<8x128xf32>
    %35 = arith.mulf %28, %4 : vector<8x128xf32>
    %36 = arith.mulf %23, %29 : vector<8x128xf32>
    %37 = arith.addf %35, %36 : vector<8x128xf32>
    %38 = math.tanh %37 : vector<8x128xf32>
    %39 = arith.mulf %34, %38 : vector<8x128xf32>
    %40 = arith.index_cast %c0_i32_8 : i32 to index
    %c0_21 = arith.constant 0 : index
    %c0_22 = arith.constant 0 : index
    %41 = vector.load %arg2[%40, %c0_21, %c0_22] : memref<8x8x512xbf16, #tpu.memory_space<vmem>>, vector<1x8x512xbf16>
    %42 = vector.shape_cast %41 : vector<1x8x512xbf16> to vector<8x512xbf16>
    %43 = arith.truncf %5 : vector<8x128xf32> to vector<8x128xbf16>
    %c0_23 = arith.constant 0 : index
    %c0_24 = arith.constant 0 : index
    %44 = vector.load %arg4[%c0_23, %c0_24] : memref<128x512xbf16, #tpu.memory_space<vmem>>, vector<128x512xbf16>
    %cst_25 = arith.constant dense<0.000000e+00> : vector<8x512xf32>
    %45 = tpu.matmul %43, %44, %cst_25 {dimension_numbers = #tpu.dot_dimension_numbers<[1], [0], [0], [1], [0, 0, 1, 1], [], []>} : vector<8x128xbf16>, vector<128x512xbf16>, vector<8x512xf32> -> vector<8x512xf32>
    %46 = arith.extf %42 : vector<8x512xbf16> to vector<8x512xf32>
    %47 = arith.addf %45, %46 : vector<8x512xf32>
    %c0_26 = arith.constant 0 : index
    %c0_27 = arith.constant 0 : index
    %48 = vector.load %arg6[%c0_26, %c0_27] : memref<1x512xf32, #tpu.memory_space<vmem>>, vector<1x512xf32>
    %49 = vector.broadcast %48 : vector<1x512xf32> to vector<8x512xf32>
    %50 = arith.addf %47, %49 : vector<8x512xf32>
    %51 = math.tanh %50 : vector<8x512xf32>
    %52 = vector.extract_strided_slice %51 {offsets = [0, 0], sizes = [8, 128], strides = [1, 1]} : vector<8x512xf32> to vector<8x128xf32>
    %cst_28 = arith.constant 5.000000e-01 : f32
    %53 = vector.broadcast %cst_28 : f32 to vector<8x128xf32>
    %54 = arith.mulf %52, %53 : vector<8x128xf32>
    %cst_29 = arith.constant 5.000000e-01 : f32
    %55 = vector.broadcast %cst_29 : f32 to vector<8x128xf32>
    %56 = arith.addf %54, %55 : vector<8x128xf32>
    %57 = vector.extract_strided_slice %51 {offsets = [0, 128], sizes = [8, 128], strides = [1, 1]} : vector<8x512xf32> to vector<8x128xf32>
    %cst_30 = arith.constant 5.000000e-01 : f32
    %58 = vector.broadcast %cst_30 : f32 to vector<8x128xf32>
    %59 = arith.mulf %57, %58 : vector<8x128xf32>
    %cst_31 = arith.constant 5.000000e-01 : f32
    %60 = vector.broadcast %cst_31 : f32 to vector<8x128xf32>
    %61 = arith.addf %59, %60 : vector<8x128xf32>
    %62 = vector.extract_strided_slice %51 {offsets = [0, 256], sizes = [8, 128], strides = [1, 1]} : vector<8x512xf32> to vector<8x128xf32>
    %63 = vector.extract_strided_slice %51 {offsets = [0, 384], sizes = [8, 128], strides = [1, 1]} : vector<8x512xf32> to vector<8x128xf32>
    %cst_32 = arith.constant 5.000000e-01 : f32
    %64 = vector.broadcast %cst_32 : f32 to vector<8x128xf32>
    %65 = arith.mulf %63, %64 : vector<8x128xf32>
    %cst_33 = arith.constant 5.000000e-01 : f32
    %66 = vector.broadcast %cst_33 : f32 to vector<8x128xf32>
    %67 = arith.addf %65, %66 : vector<8x128xf32>
    %68 = arith.mulf %61, %6 : vector<8x128xf32>
    %69 = arith.mulf %56, %62 : vector<8x128xf32>
    %70 = arith.addf %68, %69 : vector<8x128xf32>
    %71 = math.tanh %70 : vector<8x128xf32>
    %72 = arith.mulf %67, %71 : vector<8x128xf32>
    %73 = arith.index_cast %c0_i32_8 : i32 to index
    %c0_34 = arith.constant 0 : index
    %c0_35 = arith.constant 0 : index
    %74 = vector.load %arg7[%73, %c0_34, %c0_35] : memref<8x8x128xf32, #tpu.memory_space<vmem>>, vector<1x8x128xf32>
    %75 = vector.shape_cast %74 : vector<1x8x128xf32> to vector<8x128xf32>
    %76 = vector.shape_cast %39 : vector<8x128xf32> to vector<1x8x128xf32>
    tpu.vector_store %arg7[%73, %c0_34, %c0_35], %76 {strides = array<i32>} : memref<8x8x128xf32, #tpu.memory_space<vmem>>, vector<1x8x128xf32>,
    %c7_i32 = arith.constant 7 : i32
    %77 = arith.subi %c7_i32, %c0_i32_8 : i32
    %78 = arith.index_cast %77 : i32 to index
    %c0_36 = arith.constant 0 : index
    %c0_37 = arith.constant 0 : index
    %79 = vector.load %arg8[%78, %c0_36, %c0_37] : memref<8x8x128xf32, #tpu.memory_space<vmem>>, vector<1x8x128xf32>
    %80 = vector.shape_cast %79 : vector<1x8x128xf32> to vector<8x128xf32>
    %81 = vector.shape_cast %72 : vector<8x128xf32> to vector<1x8x128xf32>
    tpu.vector_store %arg8[%78, %c0_36, %c0_37], %81 {strides = array<i32>} : memref<8x8x128xf32, #tpu.memory_space<vmem>>, vector<1x8x128xf32>,
    %c1_i32 = arith.constant 1 : i32
    %82 = arith.index_cast %c1_i32 : i32 to index
    %c0_38 = arith.constant 0 : index
    %c0_39 = arith.constant 0 : index
    %83 = vector.load %arg1[%82, %c0_38, %c0_39] : memref<8x8x512xbf16, #tpu.memory_space<vmem>>, vector<1x8x512xbf16>
    %84 = vector.shape_cast %83 : vector<1x8x512xbf16> to vector<8x512xbf16>
    %85 = arith.truncf %39 : vector<8x128xf32> to vector<8x128xbf16>
    %c0_40 = arith.constant 0 : index
    %c0_41 = arith.constant 0 : index
    %86 = vector.load %arg3[%c0_40, %c0_41] : memref<128x512xbf16, #tpu.memory_space<vmem>>, vector<128x512xbf16>
    %cst_42 = arith.constant dense<0.000000e+00> : vector<8x512xf32>
    %87 = tpu.matmul %85, %86, %cst_42 {dimension_numbers = #tpu.dot_dimension_numbers<[1], [0], [0], [1], [0, 0, 1, 1], [], []>} : vector<8x128xbf16>, vector<128x512xbf16>, vector<8x512xf32> -> vector<8x512xf32>
    %88 = arith.extf %84 : vector<8x512xbf16> to vector<8x512xf32>
    %89 = arith.addf %87, %88 : vector<8x512xf32>
    %c0_43 = arith.constant 0 : index
    %c0_44 = arith.constant 0 : index
    %90 = vector.load %arg5[%c0_43, %c0_44] : memref<1x512xf32, #tpu.memory_space<vmem>>, vector<1x512xf32>
    %91 = vector.broadcast %90 : vector<1x512xf32> to vector<8x512xf32>
    %92 = arith.addf %89, %91 : vector<8x512xf32>
    %93 = math.tanh %92 : vector<8x512xf32>
    %94 = vector.extract_strided_slice %93 {offsets = [0, 0], sizes = [8, 128], strides = [1, 1]} : vector<8x512xf32> to vector<8x128xf32>
    %cst_45 = arith.constant 5.000000e-01 : f32
    %95 = vector.broadcast %cst_45 : f32 to vector<8x128xf32>
    %96 = arith.mulf %94, %95 : vector<8x128xf32>
    %cst_46 = arith.constant 5.000000e-01 : f32
    %97 = vector.broadcast %cst_46 : f32 to vector<8x128xf32>
    %98 = arith.addf %96, %97 : vector<8x128xf32>
    %99 = vector.extract_strided_slice %93 {offsets = [0, 128], sizes = [8, 128], strides = [1, 1]} : vector<8x512xf32> to vector<8x128xf32>
    %cst_47 = arith.constant 5.000000e-01 : f32
    %100 = vector.broadcast %cst_47 : f32 to vector<8x128xf32>
    %101 = arith.mulf %99, %100 : vector<8x128xf32>
    %cst_48 = arith.constant 5.000000e-01 : f32
    %102 = vector.broadcast %cst_48 : f32 to vector<8x128xf32>
    %103 = arith.addf %101, %102 : vector<8x128xf32>
    %104 = vector.extract_strided_slice %93 {offsets = [0, 256], sizes = [8, 128], strides = [1, 1]} : vector<8x512xf32> to vector<8x128xf32>
    %105 = vector.extract_strided_slice %93 {offsets = [0, 384], sizes = [8, 128], strides = [1, 1]} : vector<8x512xf32> to vector<8x128xf32>
    %cst_49 = arith.constant 5.000000e-01 : f32
    %106 = vector.broadcast %cst_49 : f32 to vector<8x128xf32>
    %107 = arith.mulf %105, %106 : vector<8x128xf32>
    %cst_50 = arith.constant 5.000000e-01 : f32
    %108 = vector.broadcast %cst_50 : f32 to vector<8x128xf32>
    %109 = arith.addf %107, %108 : vector<8x128xf32>
    %110 = arith.mulf %103, %37 : vector<8x128xf32>
    %111 = arith.mulf %98, %104 : vector<8x128xf32>
    %112 = arith.addf %110, %111 : vector<8x128xf32>
    %113 = math.tanh %112 : vector<8x128xf32>
    %114 = arith.mulf %109, %113 : vector<8x128xf32>
    %115 = arith.index_cast %c1_i32 : i32 to index
    %c0_51 = arith.constant 0 : index
    %c0_52 = arith.constant 0 : index
    %116 = vector.load %arg2[%115, %c0_51, %c0_52] : memref<8x8x512xbf16, #tpu.memory_space<vmem>>, vector<1x8x512xbf16>
    %117 = vector.shape_cast %116 : vector<1x8x512xbf16> to vector<8x512xbf16>
    %118 = arith.truncf %72 : vector<8x128xf32> to vector<8x128xbf16>
    %c0_53 = arith.constant 0 : index
    %c0_54 = arith.constant 0 : index
    %119 = vector.load %arg4[%c0_53, %c0_54] : memref<128x512xbf16, #tpu.memory_space<vmem>>, vector<128x512xbf16>
    %cst_55 = arith.constant dense<0.000000e+00> : vector<8x512xf32>
    %120 = tpu.matmul %118, %119, %cst_55 {dimension_numbers = #tpu.dot_dimension_numbers<[1], [0], [0], [1], [0, 0, 1, 1], [], []>} : vector<8x128xbf16>, vector<128x512xbf16>, vector<8x512xf32> -> vector<8x512xf32>
    %121 = arith.extf %117 : vector<8x512xbf16> to vector<8x512xf32>
    %122 = arith.addf %120, %121 : vector<8x512xf32>
    %c0_56 = arith.constant 0 : index
    %c0_57 = arith.constant 0 : index
    %123 = vector.load %arg6[%c0_56, %c0_57] : memref<1x512xf32, #tpu.memory_space<vmem>>, vector<1x512xf32>
    %124 = vector.broadcast %123 : vector<1x512xf32> to vector<8x512xf32>
    %125 = arith.addf %122, %124 : vector<8x512xf32>
    %126 = math.tanh %125 : vector<8x512xf32>
    %127 = vector.extract_strided_slice %126 {offsets = [0, 0], sizes = [8, 128], strides = [1, 1]} : vector<8x512xf32> to vector<8x128xf32>
    %cst_58 = arith.constant 5.000000e-01 : f32
    %128 = vector.broadcast %cst_58 : f32 to vector<8x128xf32>
    %129 = arith.mulf %127, %128 : vector<8x128xf32>
    %cst_59 = arith.constant 5.000000e-01 : f32
    %130 = vector.broadcast %cst_59 : f32 to vector<8x128xf32>
    %131 = arith.addf %129, %130 : vector<8x128xf32>
    %132 = vector.extract_strided_slice %126 {offsets = [0, 128], sizes = [8, 128], strides = [1, 1]} : vector<8x512xf32> to vector<8x128xf32>
    %cst_60 = arith.constant 5.000000e-01 : f32
    %133 = vector.broadcast %cst_60 : f32 to vector<8x128xf32>
    %134 = arith.mulf %132, %133 : vector<8x128xf32>
    %cst_61 = arith.constant 5.000000e-01 : f32
    %135 = vector.broadcast %cst_61 : f32 to vector<8x128xf32>
    %136 = arith.addf %134, %135 : vector<8x128xf32>
    %137 = vector.extract_strided_slice %126 {offsets = [0, 256], sizes = [8, 128], strides = [1, 1]} : vector<8x512xf32> to vector<8x128xf32>
    %138 = vector.extract_strided_slice %126 {offsets = [0, 384], sizes = [8, 128], strides = [1, 1]} : vector<8x512xf32> to vector<8x128xf32>
    %cst_62 = arith.constant 5.000000e-01 : f32
    %139 = vector.broadcast %cst_62 : f32 to vector<8x128xf32>
    %140 = arith.mulf %138, %139 : vector<8x128xf32>
    %cst_63 = arith.constant 5.000000e-01 : f32
    %141 = vector.broadcast %cst_63 : f32 to vector<8x128xf32>
    %142 = arith.addf %140, %141 : vector<8x128xf32>
    %143 = arith.mulf %136, %70 : vector<8x128xf32>
    %144 = arith.mulf %131, %137 : vector<8x128xf32>
    %145 = arith.addf %143, %144 : vector<8x128xf32>
    %146 = math.tanh %145 : vector<8x128xf32>
    %147 = arith.mulf %142, %146 : vector<8x128xf32>
    %148 = arith.index_cast %c1_i32 : i32 to index
    %c0_64 = arith.constant 0 : index
    %c0_65 = arith.constant 0 : index
    %149 = vector.load %arg7[%148, %c0_64, %c0_65] : memref<8x8x128xf32, #tpu.memory_space<vmem>>, vector<1x8x128xf32>
    %150 = vector.shape_cast %149 : vector<1x8x128xf32> to vector<8x128xf32>
    %151 = vector.shape_cast %114 : vector<8x128xf32> to vector<1x8x128xf32>
    tpu.vector_store %arg7[%148, %c0_64, %c0_65], %151 {strides = array<i32>} : memref<8x8x128xf32, #tpu.memory_space<vmem>>, vector<1x8x128xf32>,
    %c7_i32_66 = arith.constant 7 : i32
    %152 = arith.subi %c7_i32_66, %c1_i32 : i32
    %153 = arith.index_cast %152 : i32 to index
    %c0_67 = arith.constant 0 : index
    %c0_68 = arith.constant 0 : index
    %154 = vector.load %arg8[%153, %c0_67, %c0_68] : memref<8x8x128xf32, #tpu.memory_space<vmem>>, vector<1x8x128xf32>
    %155 = vector.shape_cast %154 : vector<1x8x128xf32> to vector<8x128xf32>
    %156 = vector.shape_cast %147 : vector<8x128xf32> to vector<1x8x128xf32>
    tpu.vector_store %arg8[%153, %c0_67, %c0_68], %156 {strides = array<i32>} : memref<8x8x128xf32, #tpu.memory_space<vmem>>, vector<1x8x128xf32>,
    %c2_i32 = arith.constant 2 : i32
    %157 = arith.index_cast %c2_i32 : i32 to index
    %c0_69 = arith.constant 0 : index
    %c0_70 = arith.constant 0 : index
    %158 = vector.load %arg1[%157, %c0_69, %c0_70] : memref<8x8x512xbf16, #tpu.memory_space<vmem>>, vector<1x8x512xbf16>
    %159 = vector.shape_cast %158 : vector<1x8x512xbf16> to vector<8x512xbf16>
    %160 = arith.truncf %114 : vector<8x128xf32> to vector<8x128xbf16>
    %c0_71 = arith.constant 0 : index
    %c0_72 = arith.constant 0 : index
    %161 = vector.load %arg3[%c0_71, %c0_72] : memref<128x512xbf16, #tpu.memory_space<vmem>>, vector<128x512xbf16>
    %cst_73 = arith.constant dense<0.000000e+00> : vector<8x512xf32>
    %162 = tpu.matmul %160, %161, %cst_73 {dimension_numbers = #tpu.dot_dimension_numbers<[1], [0], [0], [1], [0, 0, 1, 1], [], []>} : vector<8x128xbf16>, vector<128x512xbf16>, vector<8x512xf32> -> vector<8x512xf32>
    %163 = arith.extf %159 : vector<8x512xbf16> to vector<8x512xf32>
    %164 = arith.addf %162, %163 : vector<8x512xf32>
    %c0_74 = arith.constant 0 : index
    %c0_75 = arith.constant 0 : index
    %165 = vector.load %arg5[%c0_74, %c0_75] : memref<1x512xf32, #tpu.memory_space<vmem>>, vector<1x512xf32>
    %166 = vector.broadcast %165 : vector<1x512xf32> to vector<8x512xf32>
    %167 = arith.addf %164, %166 : vector<8x512xf32>
    %168 = math.tanh %167 : vector<8x512xf32>
    %169 = vector.extract_strided_slice %168 {offsets = [0, 0], sizes = [8, 128], strides = [1, 1]} : vector<8x512xf32> to vector<8x128xf32>
    %cst_76 = arith.constant 5.000000e-01 : f32
    %170 = vector.broadcast %cst_76 : f32 to vector<8x128xf32>
    %171 = arith.mulf %169, %170 : vector<8x128xf32>
    %cst_77 = arith.constant 5.000000e-01 : f32
    %172 = vector.broadcast %cst_77 : f32 to vector<8x128xf32>
    %173 = arith.addf %171, %172 : vector<8x128xf32>
    %174 = vector.extract_strided_slice %168 {offsets = [0, 128], sizes = [8, 128], strides = [1, 1]} : vector<8x512xf32> to vector<8x128xf32>
    %cst_78 = arith.constant 5.000000e-01 : f32
    %175 = vector.broadcast %cst_78 : f32 to vector<8x128xf32>
    %176 = arith.mulf %174, %175 : vector<8x128xf32>
    %cst_79 = arith.constant 5.000000e-01 : f32
    %177 = vector.broadcast %cst_79 : f32 to vector<8x128xf32>
    %178 = arith.addf %176, %177 : vector<8x128xf32>
    %179 = vector.extract_strided_slice %168 {offsets = [0, 256], sizes = [8, 128], strides = [1, 1]} : vector<8x512xf32> to vector<8x128xf32>
    %180 = vector.extract_strided_slice %168 {offsets = [0, 384], sizes = [8, 128], strides = [1, 1]} : vector<8x512xf32> to vector<8x128xf32>
    %cst_80 = arith.constant 5.000000e-01 : f32
    %181 = vector.broadcast %cst_80 : f32 to vector<8x128xf32>
    %182 = arith.mulf %180, %181 : vector<8x128xf32>
    %cst_81 = arith.constant 5.000000e-01 : f32
    %183 = vector.broadcast %cst_81 : f32 to vector<8x128xf32>
    %184 = arith.addf %182, %183 : vector<8x128xf32>
    %185 = arith.mulf %178, %112 : vector<8x128xf32>
    %186 = arith.mulf %173, %179 : vector<8x128xf32>
    %187 = arith.addf %185, %186 : vector<8x128xf32>
    %188 = math.tanh %187 : vector<8x128xf32>
    %189 = arith.mulf %184, %188 : vector<8x128xf32>
    %190 = arith.index_cast %c2_i32 : i32 to index
    %c0_82 = arith.constant 0 : index
    %c0_83 = arith.constant 0 : index
    %191 = vector.load %arg2[%190, %c0_82, %c0_83] : memref<8x8x512xbf16, #tpu.memory_space<vmem>>, vector<1x8x512xbf16>
    %192 = vector.shape_cast %191 : vector<1x8x512xbf16> to vector<8x512xbf16>
    %193 = arith.truncf %147 : vector<8x128xf32> to vector<8x128xbf16>
    %c0_84 = arith.constant 0 : index
    %c0_85 = arith.constant 0 : index
    %194 = vector.load %arg4[%c0_84, %c0_85] : memref<128x512xbf16, #tpu.memory_space<vmem>>, vector<128x512xbf16>
    %cst_86 = arith.constant dense<0.000000e+00> : vector<8x512xf32>
    %195 = tpu.matmul %193, %194, %cst_86 {dimension_numbers = #tpu.dot_dimension_numbers<[1], [0], [0], [1], [0, 0, 1, 1], [], []>} : vector<8x128xbf16>, vector<128x512xbf16>, vector<8x512xf32> -> vector<8x512xf32>
    %196 = arith.extf %192 : vector<8x512xbf16> to vector<8x512xf32>
    %197 = arith.addf %195, %196 : vector<8x512xf32>
    %c0_87 = arith.constant 0 : index
    %c0_88 = arith.constant 0 : index
    %198 = vector.load %arg6[%c0_87, %c0_88] : memref<1x512xf32, #tpu.memory_space<vmem>>, vector<1x512xf32>
    %199 = vector.broadcast %198 : vector<1x512xf32> to vector<8x512xf32>
    %200 = arith.addf %197, %199 : vector<8x512xf32>
    %201 = math.tanh %200 : vector<8x512xf32>
    %202 = vector.extract_strided_slice %201 {offsets = [0, 0], sizes = [8, 128], strides = [1, 1]} : vector<8x512xf32> to vector<8x128xf32>
    %cst_89 = arith.constant 5.000000e-01 : f32
    %203 = vector.broadcast %cst_89 : f32 to vector<8x128xf32>
    %204 = arith.mulf %202, %203 : vector<8x128xf32>
    %cst_90 = arith.constant 5.000000e-01 : f32
    %205 = vector.broadcast %cst_90 : f32 to vector<8x128xf32>
    %206 = arith.addf %204, %205 : vector<8x128xf32>
    %207 = vector.extract_strided_slice %201 {offsets = [0, 128], sizes = [8, 128], strides = [1, 1]} : vector<8x512xf32> to vector<8x128xf32>
    %cst_91 = arith.constant 5.000000e-01 : f32
    %208 = vector.broadcast %cst_91 : f32 to vector<8x128xf32>
    %209 = arith.mulf %207, %208 : vector<8x128xf32>
    %cst_92 = arith.constant 5.000000e-01 : f32
    %210 = vector.broadcast %cst_92 : f32 to vector<8x128xf32>
    %211 = arith.addf %209, %210 : vector<8x128xf32>
    %212 = vector.extract_strided_slice %201 {offsets = [0, 256], sizes = [8, 128], strides = [1, 1]} : vector<8x512xf32> to vector<8x128xf32>
    %213 = vector.extract_strided_slice %201 {offsets = [0, 384], sizes = [8, 128], strides = [1, 1]} : vector<8x512xf32> to vector<8x128xf32>
    %cst_93 = arith.constant 5.000000e-01 : f32
    %214 = vector.broadcast %cst_93 : f32 to vector<8x128xf32>
    %215 = arith.mulf %213, %214 : vector<8x128xf32>
    %cst_94 = arith.constant 5.000000e-01 : f32
    %216 = vector.broadcast %cst_94 : f32 to vector<8x128xf32>
    %217 = arith.addf %215, %216 : vector<8x128xf32>
    %218 = arith.mulf %211, %145 : vector<8x128xf32>
    %219 = arith.mulf %206, %212 : vector<8x128xf32>
    %220 = arith.addf %218, %219 : vector<8x128xf32>
    %221 = math.tanh %220 : vector<8x128xf32>
    %222 = arith.mulf %217, %221 : vector<8x128xf32>
    %223 = arith.index_cast %c2_i32 : i32 to index
    %c0_95 = arith.constant 0 : index
    %c0_96 = arith.constant 0 : index
    %224 = vector.load %arg7[%223, %c0_95, %c0_96] : memref<8x8x128xf32, #tpu.memory_space<vmem>>, vector<1x8x128xf32>
    %225 = vector.shape_cast %224 : vector<1x8x128xf32> to vector<8x128xf32>
    %226 = vector.shape_cast %189 : vector<8x128xf32> to vector<1x8x128xf32>
    tpu.vector_store %arg7[%223, %c0_95, %c0_96], %226 {strides = array<i32>} : memref<8x8x128xf32, #tpu.memory_space<vmem>>, vector<1x8x128xf32>,
    %c7_i32_97 = arith.constant 7 : i32
    %227 = arith.subi %c7_i32_97, %c2_i32 : i32
    %228 = arith.index_cast %227 : i32 to index
    %c0_98 = arith.constant 0 : index
    %c0_99 = arith.constant 0 : index
    %229 = vector.load %arg8[%228, %c0_98, %c0_99] : memref<8x8x128xf32, #tpu.memory_space<vmem>>, vector<1x8x128xf32>
    %230 = vector.shape_cast %229 : vector<1x8x128xf32> to vector<8x128xf32>
    %231 = vector.shape_cast %222 : vector<8x128xf32> to vector<1x8x128xf32>
    tpu.vector_store %arg8[%228, %c0_98, %c0_99], %231 {strides = array<i32>} : memref<8x8x128xf32, #tpu.memory_space<vmem>>, vector<1x8x128xf32>,
    %c3_i32 = arith.constant 3 : i32
    %232 = arith.index_cast %c3_i32 : i32 to index
    %c0_100 = arith.constant 0 : index
    %c0_101 = arith.constant 0 : index
    %233 = vector.load %arg1[%232, %c0_100, %c0_101] : memref<8x8x512xbf16, #tpu.memory_space<vmem>>, vector<1x8x512xbf16>
    %234 = vector.shape_cast %233 : vector<1x8x512xbf16> to vector<8x512xbf16>
    %235 = arith.truncf %189 : vector<8x128xf32> to vector<8x128xbf16>
    %c0_102 = arith.constant 0 : index
    %c0_103 = arith.constant 0 : index
    %236 = vector.load %arg3[%c0_102, %c0_103] : memref<128x512xbf16, #tpu.memory_space<vmem>>, vector<128x512xbf16>
    %cst_104 = arith.constant dense<0.000000e+00> : vector<8x512xf32>
    %237 = tpu.matmul %235, %236, %cst_104 {dimension_numbers = #tpu.dot_dimension_numbers<[1], [0], [0], [1], [0, 0, 1, 1], [], []>} : vector<8x128xbf16>, vector<128x512xbf16>, vector<8x512xf32> -> vector<8x512xf32>
    %238 = arith.extf %234 : vector<8x512xbf16> to vector<8x512xf32>
    %239 = arith.addf %237, %238 : vector<8x512xf32>
    %c0_105 = arith.constant 0 : index
    %c0_106 = arith.constant 0 : index
    %240 = vector.load %arg5[%c0_105, %c0_106] : memref<1x512xf32, #tpu.memory_space<vmem>>, vector<1x512xf32>
    %241 = vector.broadcast %240 : vector<1x512xf32> to vector<8x512xf32>
    %242 = arith.addf %239, %241 : vector<8x512xf32>
    %243 = math.tanh %242 : vector<8x512xf32>
    %244 = vector.extract_strided_slice %243 {offsets = [0, 0], sizes = [8, 128], strides = [1, 1]} : vector<8x512xf32> to vector<8x128xf32>
    %cst_107 = arith.constant 5.000000e-01 : f32
    %245 = vector.broadcast %cst_107 : f32 to vector<8x128xf32>
    %246 = arith.mulf %244, %245 : vector<8x128xf32>
    %cst_108 = arith.constant 5.000000e-01 : f32
    %247 = vector.broadcast %cst_108 : f32 to vector<8x128xf32>
    %248 = arith.addf %246, %247 : vector<8x128xf32>
    %249 = vector.extract_strided_slice %243 {offsets = [0, 128], sizes = [8, 128], strides = [1, 1]} : vector<8x512xf32> to vector<8x128xf32>
    %cst_109 = arith.constant 5.000000e-01 : f32
    %250 = vector.broadcast %cst_109 : f32 to vector<8x128xf32>
    %251 = arith.mulf %249, %250 : vector<8x128xf32>
    %cst_110 = arith.constant 5.000000e-01 : f32
    %252 = vector.broadcast %cst_110 : f32 to vector<8x128xf32>
    %253 = arith.addf %251, %252 : vector<8x128xf32>
    %254 = vector.extract_strided_slice %243 {offsets = [0, 256], sizes = [8, 128], strides = [1, 1]} : vector<8x512xf32> to vector<8x128xf32>
    %255 = vector.extract_strided_slice %243 {offsets = [0, 384], sizes = [8, 128], strides = [1, 1]} : vector<8x512xf32> to vector<8x128xf32>
    %cst_111 = arith.constant 5.000000e-01 : f32
    %256 = vector.broadcast %cst_111 : f32 to vector<8x128xf32>
    %257 = arith.mulf %255, %256 : vector<8x128xf32>
    %cst_112 = arith.constant 5.000000e-01 : f32
    %258 = vector.broadcast %cst_112 : f32 to vector<8x128xf32>
    %259 = arith.addf %257, %258 : vector<8x128xf32>
    %260 = arith.mulf %253, %187 : vector<8x128xf32>
    %261 = arith.mulf %248, %254 : vector<8x128xf32>
    %262 = arith.addf %260, %261 : vector<8x128xf32>
    %263 = math.tanh %262 : vector<8x128xf32>
    %264 = arith.mulf %259, %263 : vector<8x128xf32>
    %265 = arith.index_cast %c3_i32 : i32 to index
    %c0_113 = arith.constant 0 : index
    %c0_114 = arith.constant 0 : index
    %266 = vector.load %arg2[%265, %c0_113, %c0_114] : memref<8x8x512xbf16, #tpu.memory_space<vmem>>, vector<1x8x512xbf16>
    %267 = vector.shape_cast %266 : vector<1x8x512xbf16> to vector<8x512xbf16>
    %268 = arith.truncf %222 : vector<8x128xf32> to vector<8x128xbf16>
    %c0_115 = arith.constant 0 : index
    %c0_116 = arith.constant 0 : index
    %269 = vector.load %arg4[%c0_115, %c0_116] : memref<128x512xbf16, #tpu.memory_space<vmem>>, vector<128x512xbf16>
    %cst_117 = arith.constant dense<0.000000e+00> : vector<8x512xf32>
    %270 = tpu.matmul %268, %269, %cst_117 {dimension_numbers = #tpu.dot_dimension_numbers<[1], [0], [0], [1], [0, 0, 1, 1], [], []>} : vector<8x128xbf16>, vector<128x512xbf16>, vector<8x512xf32> -> vector<8x512xf32>
    %271 = arith.extf %267 : vector<8x512xbf16> to vector<8x512xf32>
    %272 = arith.addf %270, %271 : vector<8x512xf32>
    %c0_118 = arith.constant 0 : index
    %c0_119 = arith.constant 0 : index
    %273 = vector.load %arg6[%c0_118, %c0_119] : memref<1x512xf32, #tpu.memory_space<vmem>>, vector<1x512xf32>
    %274 = vector.broadcast %273 : vector<1x512xf32> to vector<8x512xf32>
    %275 = arith.addf %272, %274 : vector<8x512xf32>
    %276 = math.tanh %275 : vector<8x512xf32>
    %277 = vector.extract_strided_slice %276 {offsets = [0, 0], sizes = [8, 128], strides = [1, 1]} : vector<8x512xf32> to vector<8x128xf32>
    %cst_120 = arith.constant 5.000000e-01 : f32
    %278 = vector.broadcast %cst_120 : f32 to vector<8x128xf32>
    %279 = arith.mulf %277, %278 : vector<8x128xf32>
    %cst_121 = arith.constant 5.000000e-01 : f32
    %280 = vector.broadcast %cst_121 : f32 to vector<8x128xf32>
    %281 = arith.addf %279, %280 : vector<8x128xf32>
    %282 = vector.extract_strided_slice %276 {offsets = [0, 128], sizes = [8, 128], strides = [1, 1]} : vector<8x512xf32> to vector<8x128xf32>
    %cst_122 = arith.constant 5.000000e-01 : f32
    %283 = vector.broadcast %cst_122 : f32 to vector<8x128xf32>
    %284 = arith.mulf %282, %283 : vector<8x128xf32>
    %cst_123 = arith.constant 5.000000e-01 : f32
    %285 = vector.broadcast %cst_123 : f32 to vector<8x128xf32>
    %286 = arith.addf %284, %285 : vector<8x128xf32>
    %287 = vector.extract_strided_slice %276 {offsets = [0, 256], sizes = [8, 128], strides = [1, 1]} : vector<8x512xf32> to vector<8x128xf32>
    %288 = vector.extract_strided_slice %276 {offsets = [0, 384], sizes = [8, 128], strides = [1, 1]} : vector<8x512xf32> to vector<8x128xf32>
    %cst_124 = arith.constant 5.000000e-01 : f32
    %289 = vector.broadcast %cst_124 : f32 to vector<8x128xf32>
    %290 = arith.mulf %288, %289 : vector<8x128xf32>
    %cst_125 = arith.constant 5.000000e-01 : f32
    %291 = vector.broadcast %cst_125 : f32 to vector<8x128xf32>
    %292 = arith.addf %290, %291 : vector<8x128xf32>
    %293 = arith.mulf %286, %220 : vector<8x128xf32>
    %294 = arith.mulf %281, %287 : vector<8x128xf32>
    %295 = arith.addf %293, %294 : vector<8x128xf32>
    %296 = math.tanh %295 : vector<8x128xf32>
    %297 = arith.mulf %292, %296 : vector<8x128xf32>
    %298 = arith.index_cast %c3_i32 : i32 to index
    %c0_126 = arith.constant 0 : index
    %c0_127 = arith.constant 0 : index
    %299 = vector.load %arg7[%298, %c0_126, %c0_127] : memref<8x8x128xf32, #tpu.memory_space<vmem>>, vector<1x8x128xf32>
    %300 = vector.shape_cast %299 : vector<1x8x128xf32> to vector<8x128xf32>
    %301 = vector.shape_cast %264 : vector<8x128xf32> to vector<1x8x128xf32>
    tpu.vector_store %arg7[%298, %c0_126, %c0_127], %301 {strides = array<i32>} : memref<8x8x128xf32, #tpu.memory_space<vmem>>, vector<1x8x128xf32>,
    %c7_i32_128 = arith.constant 7 : i32
    %302 = arith.subi %c7_i32_128, %c3_i32 : i32
    %303 = arith.index_cast %302 : i32 to index
    %c0_129 = arith.constant 0 : index
    %c0_130 = arith.constant 0 : index
    %304 = vector.load %arg8[%303, %c0_129, %c0_130] : memref<8x8x128xf32, #tpu.memory_space<vmem>>, vector<1x8x128xf32>
    %305 = vector.shape_cast %304 : vector<1x8x128xf32> to vector<8x128xf32>
    %306 = vector.shape_cast %297 : vector<8x128xf32> to vector<1x8x128xf32>
    tpu.vector_store %arg8[%303, %c0_129, %c0_130], %306 {strides = array<i32>} : memref<8x8x128xf32, #tpu.memory_space<vmem>>, vector<1x8x128xf32>,
    %c4_i32 = arith.constant 4 : i32
    %307 = arith.index_cast %c4_i32 : i32 to index
    %c0_131 = arith.constant 0 : index
    %c0_132 = arith.constant 0 : index
    %308 = vector.load %arg1[%307, %c0_131, %c0_132] : memref<8x8x512xbf16, #tpu.memory_space<vmem>>, vector<1x8x512xbf16>
    %309 = vector.shape_cast %308 : vector<1x8x512xbf16> to vector<8x512xbf16>
    %310 = arith.truncf %264 : vector<8x128xf32> to vector<8x128xbf16>
    %c0_133 = arith.constant 0 : index
    %c0_134 = arith.constant 0 : index
    %311 = vector.load %arg3[%c0_133, %c0_134] : memref<128x512xbf16, #tpu.memory_space<vmem>>, vector<128x512xbf16>
    %cst_135 = arith.constant dense<0.000000e+00> : vector<8x512xf32>
    %312 = tpu.matmul %310, %311, %cst_135 {dimension_numbers = #tpu.dot_dimension_numbers<[1], [0], [0], [1], [0, 0, 1, 1], [], []>} : vector<8x128xbf16>, vector<128x512xbf16>, vector<8x512xf32> -> vector<8x512xf32>
    %313 = arith.extf %309 : vector<8x512xbf16> to vector<8x512xf32>
    %314 = arith.addf %312, %313 : vector<8x512xf32>
    %c0_136 = arith.constant 0 : index
    %c0_137 = arith.constant 0 : index
    %315 = vector.load %arg5[%c0_136, %c0_137] : memref<1x512xf32, #tpu.memory_space<vmem>>, vector<1x512xf32>
    %316 = vector.broadcast %315 : vector<1x512xf32> to vector<8x512xf32>
    %317 = arith.addf %314, %316 : vector<8x512xf32>
    %318 = math.tanh %317 : vector<8x512xf32>
    %319 = vector.extract_strided_slice %318 {offsets = [0, 0], sizes = [8, 128], strides = [1, 1]} : vector<8x512xf32> to vector<8x128xf32>
    %cst_138 = arith.constant 5.000000e-01 : f32
    %320 = vector.broadcast %cst_138 : f32 to vector<8x128xf32>
    %321 = arith.mulf %319, %320 : vector<8x128xf32>
    %cst_139 = arith.constant 5.000000e-01 : f32
    %322 = vector.broadcast %cst_139 : f32 to vector<8x128xf32>
    %323 = arith.addf %321, %322 : vector<8x128xf32>
    %324 = vector.extract_strided_slice %318 {offsets = [0, 128], sizes = [8, 128], strides = [1, 1]} : vector<8x512xf32> to vector<8x128xf32>
    %cst_140 = arith.constant 5.000000e-01 : f32
    %325 = vector.broadcast %cst_140 : f32 to vector<8x128xf32>
    %326 = arith.mulf %324, %325 : vector<8x128xf32>
    %cst_141 = arith.constant 5.000000e-01 : f32
    %327 = vector.broadcast %cst_141 : f32 to vector<8x128xf32>
    %328 = arith.addf %326, %327 : vector<8x128xf32>
    %329 = vector.extract_strided_slice %318 {offsets = [0, 256], sizes = [8, 128], strides = [1, 1]} : vector<8x512xf32> to vector<8x128xf32>
    %330 = vector.extract_strided_slice %318 {offsets = [0, 384], sizes = [8, 128], strides = [1, 1]} : vector<8x512xf32> to vector<8x128xf32>
    %cst_142 = arith.constant 5.000000e-01 : f32
    %331 = vector.broadcast %cst_142 : f32 to vector<8x128xf32>
    %332 = arith.mulf %330, %331 : vector<8x128xf32>
    %cst_143 = arith.constant 5.000000e-01 : f32
    %333 = vector.broadcast %cst_143 : f32 to vector<8x128xf32>
    %334 = arith.addf %332, %333 : vector<8x128xf32>
    %335 = arith.mulf %328, %262 : vector<8x128xf32>
    %336 = arith.mulf %323, %329 : vector<8x128xf32>
    %337 = arith.addf %335, %336 : vector<8x128xf32>
    %338 = math.tanh %337 : vector<8x128xf32>
    %339 = arith.mulf %334, %338 : vector<8x128xf32>
    %340 = arith.index_cast %c4_i32 : i32 to index
    %c0_144 = arith.constant 0 : index
    %c0_145 = arith.constant 0 : index
    %341 = vector.load %arg2[%340, %c0_144, %c0_145] : memref<8x8x512xbf16, #tpu.memory_space<vmem>>, vector<1x8x512xbf16>
    %342 = vector.shape_cast %341 : vector<1x8x512xbf16> to vector<8x512xbf16>
    %343 = arith.truncf %297 : vector<8x128xf32> to vector<8x128xbf16>
    %c0_146 = arith.constant 0 : index
    %c0_147 = arith.constant 0 : index
    %344 = vector.load %arg4[%c0_146, %c0_147] : memref<128x512xbf16, #tpu.memory_space<vmem>>, vector<128x512xbf16>
    %cst_148 = arith.constant dense<0.000000e+00> : vector<8x512xf32>
    %345 = tpu.matmul %343, %344, %cst_148 {dimension_numbers = #tpu.dot_dimension_numbers<[1], [0], [0], [1], [0, 0, 1, 1], [], []>} : vector<8x128xbf16>, vector<128x512xbf16>, vector<8x512xf32> -> vector<8x512xf32>
    %346 = arith.extf %342 : vector<8x512xbf16> to vector<8x512xf32>
    %347 = arith.addf %345, %346 : vector<8x512xf32>
    %c0_149 = arith.constant 0 : index
    %c0_150 = arith.constant 0 : index
    %348 = vector.load %arg6[%c0_149, %c0_150] : memref<1x512xf32, #tpu.memory_space<vmem>>, vector<1x512xf32>
    %349 = vector.broadcast %348 : vector<1x512xf32> to vector<8x512xf32>
    %350 = arith.addf %347, %349 : vector<8x512xf32>
    %351 = math.tanh %350 : vector<8x512xf32>
    %352 = vector.extract_strided_slice %351 {offsets = [0, 0], sizes = [8, 128], strides = [1, 1]} : vector<8x512xf32> to vector<8x128xf32>
    %cst_151 = arith.constant 5.000000e-01 : f32
    %353 = vector.broadcast %cst_151 : f32 to vector<8x128xf32>
    %354 = arith.mulf %352, %353 : vector<8x128xf32>
    %cst_152 = arith.constant 5.000000e-01 : f32
    %355 = vector.broadcast %cst_152 : f32 to vector<8x128xf32>
    %356 = arith.addf %354, %355 : vector<8x128xf32>
    %357 = vector.extract_strided_slice %351 {offsets = [0, 128], sizes = [8, 128], strides = [1, 1]} : vector<8x512xf32> to vector<8x128xf32>
    %cst_153 = arith.constant 5.000000e-01 : f32
    %358 = vector.broadcast %cst_153 : f32 to vector<8x128xf32>
    %359 = arith.mulf %357, %358 : vector<8x128xf32>
    %cst_154 = arith.constant 5.000000e-01 : f32
    %360 = vector.broadcast %cst_154 : f32 to vector<8x128xf32>
    %361 = arith.addf %359, %360 : vector<8x128xf32>
    %362 = vector.extract_strided_slice %351 {offsets = [0, 256], sizes = [8, 128], strides = [1, 1]} : vector<8x512xf32> to vector<8x128xf32>
    %363 = vector.extract_strided_slice %351 {offsets = [0, 384], sizes = [8, 128], strides = [1, 1]} : vector<8x512xf32> to vector<8x128xf32>
    %cst_155 = arith.constant 5.000000e-01 : f32
    %364 = vector.broadcast %cst_155 : f32 to vector<8x128xf32>
    %365 = arith.mulf %363, %364 : vector<8x128xf32>
    %cst_156 = arith.constant 5.000000e-01 : f32
    %366 = vector.broadcast %cst_156 : f32 to vector<8x128xf32>
    %367 = arith.addf %365, %366 : vector<8x128xf32>
    %368 = arith.mulf %361, %295 : vector<8x128xf32>
    %369 = arith.mulf %356, %362 : vector<8x128xf32>
    %370 = arith.addf %368, %369 : vector<8x128xf32>
    %371 = math.tanh %370 : vector<8x128xf32>
    %372 = arith.mulf %367, %371 : vector<8x128xf32>
    %373 = arith.index_cast %c4_i32 : i32 to index
    %c0_157 = arith.constant 0 : index
    %c0_158 = arith.constant 0 : index
    %374 = vector.load %arg7[%373, %c0_157, %c0_158] : memref<8x8x128xf32, #tpu.memory_space<vmem>>, vector<1x8x128xf32>
    %375 = vector.shape_cast %374 : vector<1x8x128xf32> to vector<8x128xf32>
    %376 = vector.shape_cast %339 : vector<8x128xf32> to vector<1x8x128xf32>
    tpu.vector_store %arg7[%373, %c0_157, %c0_158], %376 {strides = array<i32>} : memref<8x8x128xf32, #tpu.memory_space<vmem>>, vector<1x8x128xf32>,
    %c7_i32_159 = arith.constant 7 : i32
    %377 = arith.subi %c7_i32_159, %c4_i32 : i32
    %378 = arith.index_cast %377 : i32 to index
    %c0_160 = arith.constant 0 : index
    %c0_161 = arith.constant 0 : index
    %379 = vector.load %arg8[%378, %c0_160, %c0_161] : memref<8x8x128xf32, #tpu.memory_space<vmem>>, vector<1x8x128xf32>
    %380 = vector.shape_cast %379 : vector<1x8x128xf32> to vector<8x128xf32>
    %381 = vector.shape_cast %372 : vector<8x128xf32> to vector<1x8x128xf32>
    tpu.vector_store %arg8[%378, %c0_160, %c0_161], %381 {strides = array<i32>} : memref<8x8x128xf32, #tpu.memory_space<vmem>>, vector<1x8x128xf32>,
    %c5_i32 = arith.constant 5 : i32
    %382 = arith.index_cast %c5_i32 : i32 to index
    %c0_162 = arith.constant 0 : index
    %c0_163 = arith.constant 0 : index
    %383 = vector.load %arg1[%382, %c0_162, %c0_163] : memref<8x8x512xbf16, #tpu.memory_space<vmem>>, vector<1x8x512xbf16>
    %384 = vector.shape_cast %383 : vector<1x8x512xbf16> to vector<8x512xbf16>
    %385 = arith.truncf %339 : vector<8x128xf32> to vector<8x128xbf16>
    %c0_164 = arith.constant 0 : index
    %c0_165 = arith.constant 0 : index
    %386 = vector.load %arg3[%c0_164, %c0_165] : memref<128x512xbf16, #tpu.memory_space<vmem>>, vector<128x512xbf16>
    %cst_166 = arith.constant dense<0.000000e+00> : vector<8x512xf32>
    %387 = tpu.matmul %385, %386, %cst_166 {dimension_numbers = #tpu.dot_dimension_numbers<[1], [0], [0], [1], [0, 0, 1, 1], [], []>} : vector<8x128xbf16>, vector<128x512xbf16>, vector<8x512xf32> -> vector<8x512xf32>
    %388 = arith.extf %384 : vector<8x512xbf16> to vector<8x512xf32>
    %389 = arith.addf %387, %388 : vector<8x512xf32>
    %c0_167 = arith.constant 0 : index
    %c0_168 = arith.constant 0 : index
    %390 = vector.load %arg5[%c0_167, %c0_168] : memref<1x512xf32, #tpu.memory_space<vmem>>, vector<1x512xf32>
    %391 = vector.broadcast %390 : vector<1x512xf32> to vector<8x512xf32>
    %392 = arith.addf %389, %391 : vector<8x512xf32>
    %393 = math.tanh %392 : vector<8x512xf32>
    %394 = vector.extract_strided_slice %393 {offsets = [0, 0], sizes = [8, 128], strides = [1, 1]} : vector<8x512xf32> to vector<8x128xf32>
    %cst_169 = arith.constant 5.000000e-01 : f32
    %395 = vector.broadcast %cst_169 : f32 to vector<8x128xf32>
    %396 = arith.mulf %394, %395 : vector<8x128xf32>
    %cst_170 = arith.constant 5.000000e-01 : f32
    %397 = vector.broadcast %cst_170 : f32 to vector<8x128xf32>
    %398 = arith.addf %396, %397 : vector<8x128xf32>
    %399 = vector.extract_strided_slice %393 {offsets = [0, 128], sizes = [8, 128], strides = [1, 1]} : vector<8x512xf32> to vector<8x128xf32>
    %cst_171 = arith.constant 5.000000e-01 : f32
    %400 = vector.broadcast %cst_171 : f32 to vector<8x128xf32>
    %401 = arith.mulf %399, %400 : vector<8x128xf32>
    %cst_172 = arith.constant 5.000000e-01 : f32
    %402 = vector.broadcast %cst_172 : f32 to vector<8x128xf32>
    %403 = arith.addf %401, %402 : vector<8x128xf32>
    %404 = vector.extract_strided_slice %393 {offsets = [0, 256], sizes = [8, 128], strides = [1, 1]} : vector<8x512xf32> to vector<8x128xf32>
    %405 = vector.extract_strided_slice %393 {offsets = [0, 384], sizes = [8, 128], strides = [1, 1]} : vector<8x512xf32> to vector<8x128xf32>
    %cst_173 = arith.constant 5.000000e-01 : f32
    %406 = vector.broadcast %cst_173 : f32 to vector<8x128xf32>
    %407 = arith.mulf %405, %406 : vector<8x128xf32>
    %cst_174 = arith.constant 5.000000e-01 : f32
    %408 = vector.broadcast %cst_174 : f32 to vector<8x128xf32>
    %409 = arith.addf %407, %408 : vector<8x128xf32>
    %410 = arith.mulf %403, %337 : vector<8x128xf32>
    %411 = arith.mulf %398, %404 : vector<8x128xf32>
    %412 = arith.addf %410, %411 : vector<8x128xf32>
    %413 = math.tanh %412 : vector<8x128xf32>
    %414 = arith.mulf %409, %413 : vector<8x128xf32>
    %415 = arith.index_cast %c5_i32 : i32 to index
    %c0_175 = arith.constant 0 : index
    %c0_176 = arith.constant 0 : index
    %416 = vector.load %arg2[%415, %c0_175, %c0_176] : memref<8x8x512xbf16, #tpu.memory_space<vmem>>, vector<1x8x512xbf16>
    %417 = vector.shape_cast %416 : vector<1x8x512xbf16> to vector<8x512xbf16>
    %418 = arith.truncf %372 : vector<8x128xf32> to vector<8x128xbf16>
    %c0_177 = arith.constant 0 : index
    %c0_178 = arith.constant 0 : index
    %419 = vector.load %arg4[%c0_177, %c0_178] : memref<128x512xbf16, #tpu.memory_space<vmem>>, vector<128x512xbf16>
    %cst_179 = arith.constant dense<0.000000e+00> : vector<8x512xf32>
    %420 = tpu.matmul %418, %419, %cst_179 {dimension_numbers = #tpu.dot_dimension_numbers<[1], [0], [0], [1], [0, 0, 1, 1], [], []>} : vector<8x128xbf16>, vector<128x512xbf16>, vector<8x512xf32> -> vector<8x512xf32>
    %421 = arith.extf %417 : vector<8x512xbf16> to vector<8x512xf32>
    %422 = arith.addf %420, %421 : vector<8x512xf32>
    %c0_180 = arith.constant 0 : index
    %c0_181 = arith.constant 0 : index
    %423 = vector.load %arg6[%c0_180, %c0_181] : memref<1x512xf32, #tpu.memory_space<vmem>>, vector<1x512xf32>
    %424 = vector.broadcast %423 : vector<1x512xf32> to vector<8x512xf32>
    %425 = arith.addf %422, %424 : vector<8x512xf32>
    %426 = math.tanh %425 : vector<8x512xf32>
    %427 = vector.extract_strided_slice %426 {offsets = [0, 0], sizes = [8, 128], strides = [1, 1]} : vector<8x512xf32> to vector<8x128xf32>
    %cst_182 = arith.constant 5.000000e-01 : f32
    %428 = vector.broadcast %cst_182 : f32 to vector<8x128xf32>
    %429 = arith.mulf %427, %428 : vector<8x128xf32>
    %cst_183 = arith.constant 5.000000e-01 : f32
    %430 = vector.broadcast %cst_183 : f32 to vector<8x128xf32>
    %431 = arith.addf %429, %430 : vector<8x128xf32>
    %432 = vector.extract_strided_slice %426 {offsets = [0, 128], sizes = [8, 128], strides = [1, 1]} : vector<8x512xf32> to vector<8x128xf32>
    %cst_184 = arith.constant 5.000000e-01 : f32
    %433 = vector.broadcast %cst_184 : f32 to vector<8x128xf32>
    %434 = arith.mulf %432, %433 : vector<8x128xf32>
    %cst_185 = arith.constant 5.000000e-01 : f32
    %435 = vector.broadcast %cst_185 : f32 to vector<8x128xf32>
    %436 = arith.addf %434, %435 : vector<8x128xf32>
    %437 = vector.extract_strided_slice %426 {offsets = [0, 256], sizes = [8, 128], strides = [1, 1]} : vector<8x512xf32> to vector<8x128xf32>
    %438 = vector.extract_strided_slice %426 {offsets = [0, 384], sizes = [8, 128], strides = [1, 1]} : vector<8x512xf32> to vector<8x128xf32>
    %cst_186 = arith.constant 5.000000e-01 : f32
    %439 = vector.broadcast %cst_186 : f32 to vector<8x128xf32>
    %440 = arith.mulf %438, %439 : vector<8x128xf32>
    %cst_187 = arith.constant 5.000000e-01 : f32
    %441 = vector.broadcast %cst_187 : f32 to vector<8x128xf32>
    %442 = arith.addf %440, %441 : vector<8x128xf32>
    %443 = arith.mulf %436, %370 : vector<8x128xf32>
    %444 = arith.mulf %431, %437 : vector<8x128xf32>
    %445 = arith.addf %443, %444 : vector<8x128xf32>
    %446 = math.tanh %445 : vector<8x128xf32>
    %447 = arith.mulf %442, %446 : vector<8x128xf32>
    %448 = arith.index_cast %c5_i32 : i32 to index
    %c0_188 = arith.constant 0 : index
    %c0_189 = arith.constant 0 : index
    %449 = vector.load %arg7[%448, %c0_188, %c0_189] : memref<8x8x128xf32, #tpu.memory_space<vmem>>, vector<1x8x128xf32>
    %450 = vector.shape_cast %449 : vector<1x8x128xf32> to vector<8x128xf32>
    %451 = vector.shape_cast %414 : vector<8x128xf32> to vector<1x8x128xf32>
    tpu.vector_store %arg7[%448, %c0_188, %c0_189], %451 {strides = array<i32>} : memref<8x8x128xf32, #tpu.memory_space<vmem>>, vector<1x8x128xf32>,
    %c7_i32_190 = arith.constant 7 : i32
    %452 = arith.subi %c7_i32_190, %c5_i32 : i32
    %453 = arith.index_cast %452 : i32 to index
    %c0_191 = arith.constant 0 : index
    %c0_192 = arith.constant 0 : index
    %454 = vector.load %arg8[%453, %c0_191, %c0_192] : memref<8x8x128xf32, #tpu.memory_space<vmem>>, vector<1x8x128xf32>
    %455 = vector.shape_cast %454 : vector<1x8x128xf32> to vector<8x128xf32>
    %456 = vector.shape_cast %447 : vector<8x128xf32> to vector<1x8x128xf32>
    tpu.vector_store %arg8[%453, %c0_191, %c0_192], %456 {strides = array<i32>} : memref<8x8x128xf32, #tpu.memory_space<vmem>>, vector<1x8x128xf32>,
    %c6_i32 = arith.constant 6 : i32
    %457 = arith.index_cast %c6_i32 : i32 to index
    %c0_193 = arith.constant 0 : index
    %c0_194 = arith.constant 0 : index
    %458 = vector.load %arg1[%457, %c0_193, %c0_194] : memref<8x8x512xbf16, #tpu.memory_space<vmem>>, vector<1x8x512xbf16>
    %459 = vector.shape_cast %458 : vector<1x8x512xbf16> to vector<8x512xbf16>
    %460 = arith.truncf %414 : vector<8x128xf32> to vector<8x128xbf16>
    %c0_195 = arith.constant 0 : index
    %c0_196 = arith.constant 0 : index
    %461 = vector.load %arg3[%c0_195, %c0_196] : memref<128x512xbf16, #tpu.memory_space<vmem>>, vector<128x512xbf16>
    %cst_197 = arith.constant dense<0.000000e+00> : vector<8x512xf32>
    %462 = tpu.matmul %460, %461, %cst_197 {dimension_numbers = #tpu.dot_dimension_numbers<[1], [0], [0], [1], [0, 0, 1, 1], [], []>} : vector<8x128xbf16>, vector<128x512xbf16>, vector<8x512xf32> -> vector<8x512xf32>
    %463 = arith.extf %459 : vector<8x512xbf16> to vector<8x512xf32>
    %464 = arith.addf %462, %463 : vector<8x512xf32>
    %c0_198 = arith.constant 0 : index
    %c0_199 = arith.constant 0 : index
    %465 = vector.load %arg5[%c0_198, %c0_199] : memref<1x512xf32, #tpu.memory_space<vmem>>, vector<1x512xf32>
    %466 = vector.broadcast %465 : vector<1x512xf32> to vector<8x512xf32>
    %467 = arith.addf %464, %466 : vector<8x512xf32>
    %468 = math.tanh %467 : vector<8x512xf32>
    %469 = vector.extract_strided_slice %468 {offsets = [0, 0], sizes = [8, 128], strides = [1, 1]} : vector<8x512xf32> to vector<8x128xf32>
    %cst_200 = arith.constant 5.000000e-01 : f32
    %470 = vector.broadcast %cst_200 : f32 to vector<8x128xf32>
    %471 = arith.mulf %469, %470 : vector<8x128xf32>
    %cst_201 = arith.constant 5.000000e-01 : f32
    %472 = vector.broadcast %cst_201 : f32 to vector<8x128xf32>
    %473 = arith.addf %471, %472 : vector<8x128xf32>
    %474 = vector.extract_strided_slice %468 {offsets = [0, 128], sizes = [8, 128], strides = [1, 1]} : vector<8x512xf32> to vector<8x128xf32>
    %cst_202 = arith.constant 5.000000e-01 : f32
    %475 = vector.broadcast %cst_202 : f32 to vector<8x128xf32>
    %476 = arith.mulf %474, %475 : vector<8x128xf32>
    %cst_203 = arith.constant 5.000000e-01 : f32
    %477 = vector.broadcast %cst_203 : f32 to vector<8x128xf32>
    %478 = arith.addf %476, %477 : vector<8x128xf32>
    %479 = vector.extract_strided_slice %468 {offsets = [0, 256], sizes = [8, 128], strides = [1, 1]} : vector<8x512xf32> to vector<8x128xf32>
    %480 = vector.extract_strided_slice %468 {offsets = [0, 384], sizes = [8, 128], strides = [1, 1]} : vector<8x512xf32> to vector<8x128xf32>
    %cst_204 = arith.constant 5.000000e-01 : f32
    %481 = vector.broadcast %cst_204 : f32 to vector<8x128xf32>
    %482 = arith.mulf %480, %481 : vector<8x128xf32>
    %cst_205 = arith.constant 5.000000e-01 : f32
    %483 = vector.broadcast %cst_205 : f32 to vector<8x128xf32>
    %484 = arith.addf %482, %483 : vector<8x128xf32>
    %485 = arith.mulf %478, %412 : vector<8x128xf32>
    %486 = arith.mulf %473, %479 : vector<8x128xf32>
    %487 = arith.addf %485, %486 : vector<8x128xf32>
    %488 = math.tanh %487 : vector<8x128xf32>
    %489 = arith.mulf %484, %488 : vector<8x128xf32>
    %490 = arith.index_cast %c6_i32 : i32 to index
    %c0_206 = arith.constant 0 : index
    %c0_207 = arith.constant 0 : index
    %491 = vector.load %arg2[%490, %c0_206, %c0_207] : memref<8x8x512xbf16, #tpu.memory_space<vmem>>, vector<1x8x512xbf16>
    %492 = vector.shape_cast %491 : vector<1x8x512xbf16> to vector<8x512xbf16>
    %493 = arith.truncf %447 : vector<8x128xf32> to vector<8x128xbf16>
    %c0_208 = arith.constant 0 : index
    %c0_209 = arith.constant 0 : index
    %494 = vector.load %arg4[%c0_208, %c0_209] : memref<128x512xbf16, #tpu.memory_space<vmem>>, vector<128x512xbf16>
    %cst_210 = arith.constant dense<0.000000e+00> : vector<8x512xf32>
    %495 = tpu.matmul %493, %494, %cst_210 {dimension_numbers = #tpu.dot_dimension_numbers<[1], [0], [0], [1], [0, 0, 1, 1], [], []>} : vector<8x128xbf16>, vector<128x512xbf16>, vector<8x512xf32> -> vector<8x512xf32>
    %496 = arith.extf %492 : vector<8x512xbf16> to vector<8x512xf32>
    %497 = arith.addf %495, %496 : vector<8x512xf32>
    %c0_211 = arith.constant 0 : index
    %c0_212 = arith.constant 0 : index
    %498 = vector.load %arg6[%c0_211, %c0_212] : memref<1x512xf32, #tpu.memory_space<vmem>>, vector<1x512xf32>
    %499 = vector.broadcast %498 : vector<1x512xf32> to vector<8x512xf32>
    %500 = arith.addf %497, %499 : vector<8x512xf32>
    %501 = math.tanh %500 : vector<8x512xf32>
    %502 = vector.extract_strided_slice %501 {offsets = [0, 0], sizes = [8, 128], strides = [1, 1]} : vector<8x512xf32> to vector<8x128xf32>
    %cst_213 = arith.constant 5.000000e-01 : f32
    %503 = vector.broadcast %cst_213 : f32 to vector<8x128xf32>
    %504 = arith.mulf %502, %503 : vector<8x128xf32>
    %cst_214 = arith.constant 5.000000e-01 : f32
    %505 = vector.broadcast %cst_214 : f32 to vector<8x128xf32>
    %506 = arith.addf %504, %505 : vector<8x128xf32>
    %507 = vector.extract_strided_slice %501 {offsets = [0, 128], sizes = [8, 128], strides = [1, 1]} : vector<8x512xf32> to vector<8x128xf32>
    %cst_215 = arith.constant 5.000000e-01 : f32
    %508 = vector.broadcast %cst_215 : f32 to vector<8x128xf32>
    %509 = arith.mulf %507, %508 : vector<8x128xf32>
    %cst_216 = arith.constant 5.000000e-01 : f32
    %510 = vector.broadcast %cst_216 : f32 to vector<8x128xf32>
    %511 = arith.addf %509, %510 : vector<8x128xf32>
    %512 = vector.extract_strided_slice %501 {offsets = [0, 256], sizes = [8, 128], strides = [1, 1]} : vector<8x512xf32> to vector<8x128xf32>
    %513 = vector.extract_strided_slice %501 {offsets = [0, 384], sizes = [8, 128], strides = [1, 1]} : vector<8x512xf32> to vector<8x128xf32>
    %cst_217 = arith.constant 5.000000e-01 : f32
    %514 = vector.broadcast %cst_217 : f32 to vector<8x128xf32>
    %515 = arith.mulf %513, %514 : vector<8x128xf32>
    %cst_218 = arith.constant 5.000000e-01 : f32
    %516 = vector.broadcast %cst_218 : f32 to vector<8x128xf32>
    %517 = arith.addf %515, %516 : vector<8x128xf32>
    %518 = arith.mulf %511, %445 : vector<8x128xf32>
    %519 = arith.mulf %506, %512 : vector<8x128xf32>
    %520 = arith.addf %518, %519 : vector<8x128xf32>
    %521 = math.tanh %520 : vector<8x128xf32>
    %522 = arith.mulf %517, %521 : vector<8x128xf32>
    %523 = arith.index_cast %c6_i32 : i32 to index
    %c0_219 = arith.constant 0 : index
    %c0_220 = arith.constant 0 : index
    %524 = vector.load %arg7[%523, %c0_219, %c0_220] : memref<8x8x128xf32, #tpu.memory_space<vmem>>, vector<1x8x128xf32>
    %525 = vector.shape_cast %524 : vector<1x8x128xf32> to vector<8x128xf32>
    %526 = vector.shape_cast %489 : vector<8x128xf32> to vector<1x8x128xf32>
    tpu.vector_store %arg7[%523, %c0_219, %c0_220], %526 {strides = array<i32>} : memref<8x8x128xf32, #tpu.memory_space<vmem>>, vector<1x8x128xf32>,
    %c7_i32_221 = arith.constant 7 : i32
    %527 = arith.subi %c7_i32_221, %c6_i32 : i32
    %528 = arith.index_cast %527 : i32 to index
    %c0_222 = arith.constant 0 : index
    %c0_223 = arith.constant 0 : index
    %529 = vector.load %arg8[%528, %c0_222, %c0_223] : memref<8x8x128xf32, #tpu.memory_space<vmem>>, vector<1x8x128xf32>
    %530 = vector.shape_cast %529 : vector<1x8x128xf32> to vector<8x128xf32>
    %531 = vector.shape_cast %522 : vector<8x128xf32> to vector<1x8x128xf32>
    tpu.vector_store %arg8[%528, %c0_222, %c0_223], %531 {strides = array<i32>} : memref<8x8x128xf32, #tpu.memory_space<vmem>>, vector<1x8x128xf32>,
    %c7_i32_224 = arith.constant 7 : i32
    %532 = arith.index_cast %c7_i32_224 : i32 to index
    %c0_225 = arith.constant 0 : index
    %c0_226 = arith.constant 0 : index
    %533 = vector.load %arg1[%532, %c0_225, %c0_226] : memref<8x8x512xbf16, #tpu.memory_space<vmem>>, vector<1x8x512xbf16>
    %534 = vector.shape_cast %533 : vector<1x8x512xbf16> to vector<8x512xbf16>
    %535 = arith.truncf %489 : vector<8x128xf32> to vector<8x128xbf16>
    %c0_227 = arith.constant 0 : index
    %c0_228 = arith.constant 0 : index
    %536 = vector.load %arg3[%c0_227, %c0_228] : memref<128x512xbf16, #tpu.memory_space<vmem>>, vector<128x512xbf16>
    %cst_229 = arith.constant dense<0.000000e+00> : vector<8x512xf32>
    %537 = tpu.matmul %535, %536, %cst_229 {dimension_numbers = #tpu.dot_dimension_numbers<[1], [0], [0], [1], [0, 0, 1, 1], [], []>} : vector<8x128xbf16>, vector<128x512xbf16>, vector<8x512xf32> -> vector<8x512xf32>
    %538 = arith.extf %534 : vector<8x512xbf16> to vector<8x512xf32>
    %539 = arith.addf %537, %538 : vector<8x512xf32>
    %c0_230 = arith.constant 0 : index
    %c0_231 = arith.constant 0 : index
    %540 = vector.load %arg5[%c0_230, %c0_231] : memref<1x512xf32, #tpu.memory_space<vmem>>, vector<1x512xf32>
    %541 = vector.broadcast %540 : vector<1x512xf32> to vector<8x512xf32>
    %542 = arith.addf %539, %541 : vector<8x512xf32>
    %543 = math.tanh %542 : vector<8x512xf32>
    %544 = vector.extract_strided_slice %543 {offsets = [0, 0], sizes = [8, 128], strides = [1, 1]} : vector<8x512xf32> to vector<8x128xf32>
    %cst_232 = arith.constant 5.000000e-01 : f32
    %545 = vector.broadcast %cst_232 : f32 to vector<8x128xf32>
    %546 = arith.mulf %544, %545 : vector<8x128xf32>
    %cst_233 = arith.constant 5.000000e-01 : f32
    %547 = vector.broadcast %cst_233 : f32 to vector<8x128xf32>
    %548 = arith.addf %546, %547 : vector<8x128xf32>
    %549 = vector.extract_strided_slice %543 {offsets = [0, 128], sizes = [8, 128], strides = [1, 1]} : vector<8x512xf32> to vector<8x128xf32>
    %cst_234 = arith.constant 5.000000e-01 : f32
    %550 = vector.broadcast %cst_234 : f32 to vector<8x128xf32>
    %551 = arith.mulf %549, %550 : vector<8x128xf32>
    %cst_235 = arith.constant 5.000000e-01 : f32
    %552 = vector.broadcast %cst_235 : f32 to vector<8x128xf32>
    %553 = arith.addf %551, %552 : vector<8x128xf32>
    %554 = vector.extract_strided_slice %543 {offsets = [0, 256], sizes = [8, 128], strides = [1, 1]} : vector<8x512xf32> to vector<8x128xf32>
    %555 = vector.extract_strided_slice %543 {offsets = [0, 384], sizes = [8, 128], strides = [1, 1]} : vector<8x512xf32> to vector<8x128xf32>
    %cst_236 = arith.constant 5.000000e-01 : f32
    %556 = vector.broadcast %cst_236 : f32 to vector<8x128xf32>
    %557 = arith.mulf %555, %556 : vector<8x128xf32>
    %cst_237 = arith.constant 5.000000e-01 : f32
    %558 = vector.broadcast %cst_237 : f32 to vector<8x128xf32>
    %559 = arith.addf %557, %558 : vector<8x128xf32>
    %560 = arith.mulf %553, %487 : vector<8x128xf32>
    %561 = arith.mulf %548, %554 : vector<8x128xf32>
    %562 = arith.addf %560, %561 : vector<8x128xf32>
    %563 = math.tanh %562 : vector<8x128xf32>
    %564 = arith.mulf %559, %563 : vector<8x128xf32>
    %565 = arith.index_cast %c7_i32_224 : i32 to index
    %c0_238 = arith.constant 0 : index
    %c0_239 = arith.constant 0 : index
    %566 = vector.load %arg2[%565, %c0_238, %c0_239] : memref<8x8x512xbf16, #tpu.memory_space<vmem>>, vector<1x8x512xbf16>
    %567 = vector.shape_cast %566 : vector<1x8x512xbf16> to vector<8x512xbf16>
    %568 = arith.truncf %522 : vector<8x128xf32> to vector<8x128xbf16>
    %c0_240 = arith.constant 0 : index
    %c0_241 = arith.constant 0 : index
    %569 = vector.load %arg4[%c0_240, %c0_241] : memref<128x512xbf16, #tpu.memory_space<vmem>>, vector<128x512xbf16>
    %cst_242 = arith.constant dense<0.000000e+00> : vector<8x512xf32>
    %570 = tpu.matmul %568, %569, %cst_242 {dimension_numbers = #tpu.dot_dimension_numbers<[1], [0], [0], [1], [0, 0, 1, 1], [], []>} : vector<8x128xbf16>, vector<128x512xbf16>, vector<8x512xf32> -> vector<8x512xf32>
    %571 = arith.extf %567 : vector<8x512xbf16> to vector<8x512xf32>
    %572 = arith.addf %570, %571 : vector<8x512xf32>
    %c0_243 = arith.constant 0 : index
    %c0_244 = arith.constant 0 : index
    %573 = vector.load %arg6[%c0_243, %c0_244] : memref<1x512xf32, #tpu.memory_space<vmem>>, vector<1x512xf32>
    %574 = vector.broadcast %573 : vector<1x512xf32> to vector<8x512xf32>
    %575 = arith.addf %572, %574 : vector<8x512xf32>
    %576 = math.tanh %575 : vector<8x512xf32>
    %577 = vector.extract_strided_slice %576 {offsets = [0, 0], sizes = [8, 128], strides = [1, 1]} : vector<8x512xf32> to vector<8x128xf32>
    %cst_245 = arith.constant 5.000000e-01 : f32
    %578 = vector.broadcast %cst_245 : f32 to vector<8x128xf32>
    %579 = arith.mulf %577, %578 : vector<8x128xf32>
    %cst_246 = arith.constant 5.000000e-01 : f32
    %580 = vector.broadcast %cst_246 : f32 to vector<8x128xf32>
    %581 = arith.addf %579, %580 : vector<8x128xf32>
    %582 = vector.extract_strided_slice %576 {offsets = [0, 128], sizes = [8, 128], strides = [1, 1]} : vector<8x512xf32> to vector<8x128xf32>
    %cst_247 = arith.constant 5.000000e-01 : f32
    %583 = vector.broadcast %cst_247 : f32 to vector<8x128xf32>
    %584 = arith.mulf %582, %583 : vector<8x128xf32>
    %cst_248 = arith.constant 5.000000e-01 : f32
    %585 = vector.broadcast %cst_248 : f32 to vector<8x128xf32>
    %586 = arith.addf %584, %585 : vector<8x128xf32>
    %587 = vector.extract_strided_slice %576 {offsets = [0, 256], sizes = [8, 128], strides = [1, 1]} : vector<8x512xf32> to vector<8x128xf32>
    %588 = vector.extract_strided_slice %576 {offsets = [0, 384], sizes = [8, 128], strides = [1, 1]} : vector<8x512xf32> to vector<8x128xf32>
    %cst_249 = arith.constant 5.000000e-01 : f32
    %589 = vector.broadcast %cst_249 : f32 to vector<8x128xf32>
    %590 = arith.mulf %588, %589 : vector<8x128xf32>
    %cst_250 = arith.constant 5.000000e-01 : f32
    %591 = vector.broadcast %cst_250 : f32 to vector<8x128xf32>
    %592 = arith.addf %590, %591 : vector<8x128xf32>
    %593 = arith.mulf %586, %520 : vector<8x128xf32>
    %594 = arith.mulf %581, %587 : vector<8x128xf32>
    %595 = arith.addf %593, %594 : vector<8x128xf32>
    %596 = math.tanh %595 : vector<8x128xf32>
    %597 = arith.mulf %592, %596 : vector<8x128xf32>
    %598 = arith.index_cast %c7_i32_224 : i32 to index
    %c0_251 = arith.constant 0 : index
    %c0_252 = arith.constant 0 : index
    %599 = vector.load %arg7[%598, %c0_251, %c0_252] : memref<8x8x128xf32, #tpu.memory_space<vmem>>, vector<1x8x128xf32>
    %600 = vector.shape_cast %599 : vector<1x8x128xf32> to vector<8x128xf32>
    %601 = vector.shape_cast %564 : vector<8x128xf32> to vector<1x8x128xf32>
    tpu.vector_store %arg7[%598, %c0_251, %c0_252], %601 {strides = array<i32>} : memref<8x8x128xf32, #tpu.memory_space<vmem>>, vector<1x8x128xf32>,
    %c7_i32_253 = arith.constant 7 : i32
    %602 = arith.subi %c7_i32_253, %c7_i32_224 : i32
    %603 = arith.index_cast %602 : i32 to index
    %c0_254 = arith.constant 0 : index
    %c0_255 = arith.constant 0 : index
    %604 = vector.load %arg8[%603, %c0_254, %c0_255] : memref<8x8x128xf32, #tpu.memory_space<vmem>>, vector<1x8x128xf32>
    %605 = vector.shape_cast %604 : vector<1x8x128xf32> to vector<8x128xf32>
    %606 = vector.shape_cast %597 : vector<8x128xf32> to vector<1x8x128xf32>
    tpu.vector_store %arg8[%603, %c0_254, %c0_255], %606 {strides = array<i32>} : memref<8x8x128xf32, #tpu.memory_space<vmem>>, vector<1x8x128xf32>,
    %c8_i32 = arith.constant 8 : i32
    %c0_256 = arith.constant 0 : index
    %c0_257 = arith.constant 0 : index
    %607 = vector.load %arg11[%c0_256, %c0_257] : memref<8x128xf32, #tpu.memory_space<vmem>>, vector<8x128xf32>
    tpu.vector_store %arg11[%c0_256, %c0_257], %564 {strides = array<i32>} : memref<8x128xf32, #tpu.memory_space<vmem>>, vector<8x128xf32>,
    %c0_258 = arith.constant 0 : index
    %c0_259 = arith.constant 0 : index
    %608 = vector.load %arg12[%c0_258, %c0_259] : memref<8x128xf32, #tpu.memory_space<vmem>>, vector<8x128xf32>
    tpu.vector_store %arg12[%c0_258, %c0_259], %562 {strides = array<i32>} : memref<8x128xf32, #tpu.memory_space<vmem>>, vector<8x128xf32>,
    %c0_260 = arith.constant 0 : index
    %c0_261 = arith.constant 0 : index
    %609 = vector.load %arg13[%c0_260, %c0_261] : memref<8x128xf32, #tpu.memory_space<vmem>>, vector<8x128xf32>
    tpu.vector_store %arg13[%c0_260, %c0_261], %597 {strides = array<i32>} : memref<8x128xf32, #tpu.memory_space<vmem>>, vector<8x128xf32>,
    %c0_262 = arith.constant 0 : index
    %c0_263 = arith.constant 0 : index
    %610 = vector.load %arg14[%c0_262, %c0_263] : memref<8x128xf32, #tpu.memory_space<vmem>>, vector<8x128xf32>
    tpu.vector_store %arg14[%c0_262, %c0_263], %595 {strides = array<i32>} : memref<8x128xf32, #tpu.memory_space<vmem>>, vector<8x128xf32>,
    %c0_i32_264 = arith.constant 0 : i32
    %611 = arith.cmpi eq, %arg0, %c0_i32_264 : i32
    %612 = arith.extui %611 : i1 to i32
    %c0_i32_265 = arith.constant 0 : i32
    %613 = arith.cmpi ne, %612, %c0_i32_265 : i32
    scf.if %613 {
      %c0_266 = arith.constant 0 : index
      %c0_267 = arith.constant 0 : index
      %614 = vector.load %arg9[%c0_266, %c0_267] : memref<8x128xf32, #tpu.memory_space<vmem>>, vector<8x128xf32>
      tpu.vector_store %arg9[%c0_266, %c0_267], %562 {strides = array<i32>} : memref<8x128xf32, #tpu.memory_space<vmem>>, vector<8x128xf32>,
      %c0_268 = arith.constant 0 : index
      %c0_269 = arith.constant 0 : index
      %615 = vector.load %arg10[%c0_268, %c0_269] : memref<8x128xf32, #tpu.memory_space<vmem>>, vector<8x128xf32>
      tpu.vector_store %arg10[%c0_268, %c0_269], %595 {strides = array<i32>} : memref<8x128xf32, #tpu.memory_space<vmem>>, vector<8x128xf32>,
    } else {
    }
    return
  }
  func.func @transform_0(%arg0: i32) -> (i32, i32, i32) {
    %c0_i32 = arith.constant 0 : i32
    %c0_i32_0 = arith.constant 0 : i32
    %c0_i32_1 = arith.constant 0 : i32
    return %arg0, %c0_i32, %c0_i32_0 : i32, i32, i32
  }
  func.func @transform_1(%arg0: i32) -> (i32, i32, i32) {
    %c0_i32 = arith.constant 0 : i32
    %c0_i32_0 = arith.constant 0 : i32
    %c0_i32_1 = arith.constant 0 : i32
    return %arg0, %c0_i32, %c0_i32_0 : i32, i32, i32
  }
  func.func @transform_2(%arg0: i32) -> (i32, i32) {
    %c0_i32 = arith.constant 0 : i32
    %c0_i32_0 = arith.constant 0 : i32
    %c0_i32_1 = arith.constant 0 : i32
    return %c0_i32, %c0_i32_0 : i32, i32
  }
  func.func @transform_3(%arg0: i32) -> (i32, i32) {
    %c0_i32 = arith.constant 0 : i32
    %c0_i32_0 = arith.constant 0 : i32
    %c0_i32_1 = arith.constant 0 : i32
    return %c0_i32, %c0_i32_0 : i32, i32
  }
  func.func @transform_4(%arg0: i32) -> (i32, i32) {
    %c0_i32 = arith.constant 0 : i32
    %c0_i32_0 = arith.constant 0 : i32
    %c0_i32_1 = arith.constant 0 : i32
    return %c0_i32, %c0_i32_0 : i32, i32
  }
  func.func @transform_5(%arg0: i32) -> (i32, i32) {
    %c0_i32 = arith.constant 0 : i32
    %c0_i32_0 = arith.constant 0 : i32
    %c0_i32_1 = arith.constant 0 : i32
    return %c0_i32, %c0_i32_0 : i32, i32
  }
  func.func @transform_6(%arg0: i32) -> (i32, i32, i32) {
    %c0_i32 = arith.constant 0 : i32
    %c0_i32_0 = arith.constant 0 : i32
    %c0_i32_1 = arith.constant 0 : i32
    return %arg0, %c0_i32, %c0_i32_0 : i32, i32, i32
  }
  func.func @transform_7(%arg0: i32) -> (i32, i32, i32) {
    %c0_i32 = arith.constant 0 : i32
    %0 = arith.subi %c0_i32, %arg0 : i32
    %c0_i32_0 = arith.constant 0 : i32
    %c0_i32_1 = arith.constant 0 : i32
    %c0_i32_2 = arith.constant 0 : i32
    return %0, %c0_i32_0, %c0_i32_1 : i32, i32, i32
  }
  func.func @transform_8(%arg0: i32) -> (i32, i32) {
    %c0_i32 = arith.constant 0 : i32
    %c0_i32_0 = arith.constant 0 : i32
    %c0_i32_1 = arith.constant 0 : i32
    return %c0_i32, %c0_i32_0 : i32, i32
  }
  func.func @transform_9(%arg0: i32) -> (i32, i32) {
    %c0_i32 = arith.constant 0 : i32
    %c0_i32_0 = arith.constant 0 : i32
    %c0_i32_1 = arith.constant 0 : i32
    return %c0_i32, %c0_i32_0 : i32, i32
  }
}

</mosaic_0001>

<bundles_post_ra>
// kernel: encoder_rnn_forward.1
= control target key start
LH: loop header
LB: loop body
LE: loop exit
PB: predicated region body
PF: predicated region fallthrough
CT: control target
= control target key end

     0   :  { %v8613_v1 = vmov 0   ;;  %v8615_v38 = vmov 0.0|0.0   ;;  %s8603_s2 = inlined_call_operand.vmem [shape: bf16[128,512], index: 2, kind: input, shape index: {}]   ;;  %s8604_s3 = inlined_call_operand.vmem [shape: bf16[128,512], index: 3, kind: input, shape index: {}]   ;;  %s8605_s0 = inlined_call_operand.vmem [shape: bf16[8,8,512], index: 0, kind: input, shape index: {}]   ;;  %s8606_s4 = inlined_call_operand.vmem [shape: f32[1,512], index: 4, kind: input, shape index: {}]   ;;  %s8607_s1 = inlined_call_operand.vmem [shape: bf16[8,8,512], index: 1, kind: input, shape index: {}]   ;;  %s8608_s5 = inlined_call_operand.vmem [shape: f32[1,512], index: 5, kind: input, shape index: {}]   ;;  %s8609_s6 = inlined_call_operand.vmem [shape: f32[8,8,128], index: 6, kind: output, shape index: {0}]   ;;  %s8610_s7 = inlined_call_operand.vmem [shape: f32[8,8,128], index: 7, kind: output, shape index: {1}]   ;;  %s8611_s8 = inlined_call_operand.vmem [shape: f32[8,128], index: 8, kind: output, shape index: {2}]   ;;  %s8612_s9 = inlined_call_operand.vmem [shape: f32[8,128], index: 9, kind: output, shape index: {3}]  }
   0x1   :  { %v6452_v0 = vld [vmem:[%s8603_s2 + $0x4] ss:$16 sps:$4 sm:$0xff]   ;;  %285 = vmatprep.mubr.bf16.mxu0 %v8613_v1  ;;  %326 = vmatprep.mubr.bf16.mxu1 %v8613_v1  ;;  %v6459_v2 = vld [vmem:[%s8603_s2] ss:$16 sps:$4 sm:$0xff]   ;;  %v6465_v3 = vld [vmem:[%s8603_s2 + $0xc] ss:$16 sps:$4 sm:$0xff]  }
   0x2   :  { %253 = vmatprep.subr.bf16.mxu0 %v6452_v0  ;;  %v6470_v4 = vld [vmem:[%s8603_s2 + $0x8] ss:$16 sps:$4 sm:$0xff]   ;;  %v6476_v5 = vld [vmem:[%s8603_s2 + $0x24] ss:$16 sps:$4 sm:$0xff]   ;;  %v6481_v6 = vld [vmem:[%s8603_s2 + $0x20] ss:$16 sps:$4 sm:$0xff]   ;;  %294 = vmatprep.subr.bf16.mxu1 %v6465_v3 }
   0x3   :  { %254 = vmatpush1.bf16.msra.mxu0 %v6459_v2  ;;  %v6487_v7 = vld [vmem:[%s8603_s2 + $0x2c] ss:$16 sps:$4 sm:$0xff]   ;;  %295 = vmatpush1.bf16.msra.mxu1 %v6470_v4  ;;  %v6494_v8 = vld [vmem:[%s8603_s2 + $0x28] ss:$16 sps:$4 sm:$0xff]   ;;  %v6500_v9 = vld [vmem:[%s8603_s2 + $0x44] ss:$16 sps:$4 sm:$0xff]  }
   0x4   :  { %255 = vmatprep.subr.bf16.mxu0 %v6476_v5  ;;  %296 = vmatprep.subr.bf16.mxu1 %v6487_v7  ;;  %v6506_v10 = vld [vmem:[%s8603_s2 + $0x40] ss:$16 sps:$4 sm:$0xff]   ;;  %v6511_v11 = vld [vmem:[%s8603_s2 + $0x4c] ss:$16 sps:$4 sm:$0xff]   ;;  %v6517_v12 = vld [vmem:[%s8603_s2 + $0x64] ss:$16 sps:$4 sm:$0xff]  }
   0x5   :  { %v6523_v13 = vld [vmem:[%s8603_s2 + $0x48] ss:$16 sps:$4 sm:$0xff]   ;;  %v6529_v14 = vld [vmem:[%s8603_s2 + $0x6c] ss:$16 sps:$4 sm:$0xff]   ;;  %v6535_v15 = vld [vmem:[%s8603_s2 + $0x60] ss:$16 sps:$4 sm:$0xff]  }
   0x6   :  { %v6541_v16 = vld [vmem:[%s8603_s2 + $0x84] ss:$16 sps:$4 sm:$0xff]   ;;  %v6547_v17 = vld [vmem:[%s8603_s2 + $0x68] ss:$16 sps:$4 sm:$0xff]   ;;  %v6553_v18 = vld [vmem:[%s8603_s2 + $0x8c] ss:$16 sps:$4 sm:$0xff]  }
   0x7   :  { %256 = vmatpush1.bf16.msra.mxu0 %v6481_v6  ;;  %297 = vmatpush1.bf16.msra.mxu1 %v6494_v8  ;;  %v6559_v19 = vld [vmem:[%s8603_s2 + $0x80] ss:$16 sps:$4 sm:$0xff]   ;;  %v6565_v20 = vld [vmem:[%s8603_s2 + $0xa4] ss:$16 sps:$4 sm:$0xff]   ;;  %v6571_v21 = vld [vmem:[%s8603_s2 + $0x88] ss:$16 sps:$4 sm:$0xff]  }
   0x8   :  { %257 = vmatprep.subr.bf16.mxu0 %v6500_v9  ;;  %298 = vmatprep.subr.bf16.mxu1 %v6511_v11  ;;  %v6577_v22 = vld [vmem:[%s8603_s2 + $0xac] ss:$16 sps:$4 sm:$0xff]   ;;  %v6583_v23 = vld [vmem:[%s8603_s2 + $0xa0] ss:$16 sps:$4 sm:$0xff]   ;;  %v6589_v24 = vld [vmem:[%s8603_s2 + $0xc4] ss:$16 sps:$4 sm:$0xff]  }
   0x9   :  { %v6595_v25 = vld [vmem:[%s8603_s2 + $0xa8] ss:$16 sps:$4 sm:$0xff]   ;;  %v6601_v26 = vld [vmem:[%s8603_s2 + $0xcc] ss:$16 sps:$4 sm:$0xff]   ;;  %v6607_v27 = vld [vmem:[%s8603_s2 + $0xc0] ss:$16 sps:$4 sm:$0xff]  }
   0xa   :  { %v6613_v28 = vld [vmem:[%s8603_s2 + $0xe4] ss:$16 sps:$4 sm:$0xff]   ;;  %v6619_v29 = vld [vmem:[%s8603_s2 + $0xc8] ss:$16 sps:$4 sm:$0xff]   ;;  %v6625_v30 = vld [vmem:[%s8603_s2 + $0xec] ss:$16 sps:$4 sm:$0xff]  }
   0xb   :  { %258 = vmatpush1.bf16.msra.mxu0 %v6506_v10  ;;  %299 = vmatpush1.bf16.msra.mxu1 %v6523_v13  ;;  %v6631_v31 = vld [vmem:[%s8603_s2 + $0xe0] ss:$16 sps:$4 sm:$0xff]   ;;  %v6637_v32 = vld [vmem:[%s8604_s3 + $0x4] ss:$16 sps:$4 sm:$0xff]   ;;  %v6643_v33 = vld [vmem:[%s8603_s2 + $0xe8] ss:$16 sps:$4 sm:$0xff]  }
   0xc   :  { %259 = vmatprep.subr.bf16.mxu0 %v6517_v12  ;;  %300 = vmatprep.subr.bf16.mxu1 %v6529_v14  ;;  %v6649_v34 = vld [vmem:[%s8604_s3 + $0xc] ss:$16 sps:$4 sm:$0xff]   ;;  %v6655_v35 = vld [vmem:[%s8604_s3] ss:$16 sps:$4 sm:$0xff]   ;;  %v6661_v36 = vld [vmem:[%s8604_s3 + $0x24] ss:$16 sps:$4 sm:$0xff]  }
   0xd   :  { %v6667_v37 = vld [vmem:[%s8604_s3 + $0x8] ss:$16 sps:$4 sm:$0xff]   ;;  %v6674_v39 = vld [vmem:[%s8604_s3 + $0x2c] ss:$16 sps:$4 sm:$0xff]   ;;  %v6680_v40 = vld [vmem:[%s8604_s3 + $0x20] ss:$16 sps:$4 sm:$0xff]  }
   0xe   :  { %v6688_v41 = vld [vmem:[%s8604_s3 + $0x44] ss:$16 sps:$4 sm:$0xff]   ;;  %v6694_v42 = vld [vmem:[%s8604_s3 + $0x28] ss:$16 sps:$4 sm:$0xff]   ;;  %v6701_v43 = vld [vmem:[%s8604_s3 + $0x4c] ss:$16 sps:$4 sm:$0xff]  }
   0xf   :  { %260 = vmatpush1.bf16.msra.mxu0 %v6535_v15  ;;  %301 = vmatpush1.bf16.msra.mxu1 %v6547_v17  ;;  %v6707_v44 = vld [vmem:[%s8604_s3 + $0x40] ss:$16 sps:$4 sm:$0xff]   ;;  %v6713_v45 = vld [vmem:[%s8604_s3 + $0x64] ss:$16 sps:$4 sm:$0xff]   ;;  %v6719_v46 = vld [vmem:[%s8604_s3 + $0x48] ss:$16 sps:$4 sm:$0xff]  }
  0x10   :  { %261 = vmatprep.subr.bf16.mxu0 %v6541_v16  ;;  %302 = vmatprep.subr.bf16.mxu1 %v6553_v18  ;;  %v6725_v47 = vld [vmem:[%s8604_s3 + $0x60] ss:$16 sps:$4 sm:$0xff]   ;;  %v6730_v48 = vld [vmem:[%s8604_s3 + $0x6c] ss:$16 sps:$4 sm:$0xff]   ;;  %v6735_v49 = vld [vmem:[%s8604_s3 + $0x84] ss:$16 sps:$4 sm:$0xff]  }
  0x11   :  { %v6741_v50 = vld [vmem:[%s8604_s3 + $0x68] ss:$16 sps:$4 sm:$0xff]   ;;  %v6747_v51 = vld [vmem:[%s8604_s3 + $0x8c] ss:$16 sps:$4 sm:$0xff]   ;;  %v6753_v52 = vld [vmem:[%s8604_s3 + $0x80] ss:$16 sps:$4 sm:$0xff]  }
  0x12   :  { %v6759_v53 = vld [vmem:[%s8604_s3 + $0xa4] ss:$16 sps:$4 sm:$0xff]   ;;  %v6765_v54 = vld [vmem:[%s8604_s3 + $0x88] ss:$16 sps:$4 sm:$0xff]   ;;  %v6771_v55 = vld [vmem:[%s8604_s3 + $0xac] ss:$16 sps:$4 sm:$0xff]  }
  0x13   :  { %262 = vmatpush1.bf16.msra.mxu0 %v6559_v19  ;;  %303 = vmatpush1.bf16.msra.mxu1 %v6571_v21  ;;  %v6777_v56 = vld [vmem:[%s8604_s3 + $0xa0] ss:$16 sps:$4 sm:$0xff]   ;;  %v6783_v57 = vld [vmem:[%s8604_s3 + $0xc4] ss:$16 sps:$4 sm:$0xff]   ;;  %v6789_v58 = vld [vmem:[%s8604_s3 + $0xa8] ss:$16 sps:$4 sm:$0xff]  }
  0x14   :  { %263 = vmatprep.subr.bf16.mxu0 %v6565_v20  ;;  %304 = vmatprep.subr.bf16.mxu1 %v6577_v22  ;;  %v6795_v59 = vld [vmem:[%s8604_s3 + $0xcc] ss:$16 sps:$4 sm:$0xff]   ;;  %v6801_v60 = vld [vmem:[%s8604_s3 + $0xc0] ss:$16 sps:$4 sm:$0xff]   ;;  %v6807_v61 = vld [vmem:[%s8604_s3 + $0xe4] ss:$16 sps:$4 sm:$0xff]  }
  0x15   :  { %8655 = vst [vmem:[#allocation6_spill] sm:$0xff] %v6795_v59  ;;  %8656 = vst [vmem:[#allocation7_spill] sm:$0xff] %v6801_v60  ;;  %v6813_v62 = vld [vmem:[%s8604_s3 + $0xc8] ss:$16 sps:$4 sm:$0xff]   ;;  %v6819_v63 = vld [vmem:[%s8604_s3 + $0xec] ss:$16 sps:$4 sm:$0xff]  }
  0x17   :  { %264 = vmatpush1.bf16.msra.mxu0 %v6583_v23  ;;  %305 = vmatpush1.bf16.msra.mxu1 %v6595_v25 }
  0x18   :  { %265 = vmatprep.subr.bf16.mxu0 %v6589_v24  ;;  %306 = vmatprep.subr.bf16.mxu1 %v6601_v26 }
  0x1b   :  { %266 = vmatpush1.bf16.msra.mxu0 %v6607_v27  ;;  %307 = vmatpush1.bf16.msra.mxu1 %v6619_v29 }
  0x1c   :  { %267 = vmatprep.subr.bf16.mxu0 %v6613_v28  ;;  %308 = vmatprep.subr.bf16.mxu1 %v6625_v30 }
  0x1f   :  { %268 = vmatpush1.bf16.msra.mxu0 %v6631_v31  ;;  %309 = vmatpush1.bf16.msra.mxu1 %v6643_v33 }
  0x20   :  { %575 = vmatprep.subr.bf16.mxu0 %v6637_v32  ;;  %616 = vmatprep.subr.bf16.mxu1 %v6649_v34 }
  0x22   :  { %286 = vmatmul.mubr.bf16.vlgmr.msra.gmra.mrb[0].mxu0 %v8615_v38  ;;  %327 = vmatmul.mubr.bf16.vlgmr.msra.gmra.mrb[0].mxu1 %v8615_v38  ;;  %v6832_v38 = vld [vmem:[%s8604_s3 + $0xe8] ss:$16 sps:$4 sm:$0xff]  }
  0x23   :  { %576 = vmatpush1.bf16.msra.mxu0 %v6655_v35  ;;  %607 = vmatprep.mubr.bf16.mxu0 %v8613_v1 }
  0x24   :  { %577 = vmatprep.subr.bf16.mxu0 %v6661_v36  ;;  %617 = vmatpush1.bf16.msra.mxu1 %v6667_v37 }
  0x25   :  { %648 = vmatprep.mubr.bf16.mxu1 %v8613_v1  ;;  %618 = vmatprep.subr.bf16.mxu1 %v6674_v39  ;;  %v6825_v1 = vld [vmem:[%s8604_s3 + $0xe0] ss:$16 sps:$4 sm:$0xff]  }
  0x27   :  { %578 = vmatpush1.bf16.msra.mxu0 %v6680_v40 }
  0x28   :  { %579 = vmatprep.subr.bf16.mxu0 %v6688_v41  ;;  %619 = vmatpush1.bf16.msra.mxu1 %v6694_v42 }
  0x29   :  { %620 = vmatprep.subr.bf16.mxu1 %v6701_v43 }
  0x2b   :  { %580 = vmatpush1.bf16.msra.mxu0 %v6707_v44 }
  0x2c   :  { %581 = vmatprep.subr.bf16.mxu0 %v6713_v45  ;;  %621 = vmatpush1.bf16.msra.mxu1 %v6719_v46 }
  0x2d   :  { %622 = vmatprep.subr.bf16.mxu1 %v6730_v48 }
  0x2f   :  { %582 = vmatpush1.bf16.msra.mxu0 %v6725_v47 }
  0x30   :  { %583 = vmatprep.subr.bf16.mxu0 %v6735_v49  ;;  %623 = vmatpush1.bf16.msra.mxu1 %v6741_v50 }
  0x31   :  { %624 = vmatprep.subr.bf16.mxu1 %v6747_v51 }
  0x33   :  { %584 = vmatpush1.bf16.msra.mxu0 %v6753_v52 }
  0x34   :  { %585 = vmatprep.subr.bf16.mxu0 %v6759_v53  ;;  %625 = vmatpush1.bf16.msra.mxu1 %v6765_v54 }
  0x35   :  { %626 = vmatprep.subr.bf16.mxu1 %v6771_v55 }
  0x37   :  { %586 = vmatpush1.bf16.msra.mxu0 %v6777_v56 }
  0x38   :  { %587 = vmatprep.subr.bf16.mxu0 %v6783_v57  ;;  %627 = vmatpush1.bf16.msra.mxu1 %v6789_v58 }
  0x39   :  { %628 = vmatprep.subr.bf16.mxu1 %v6795_v59  ;;  %v8657_v59 = vmov 0.0|0.0  }
  0x3b   :  { %588 = vmatpush1.bf16.msra.mxu0 %v6801_v60  ;;  %v8658_v60 = vmov 0  }
  0x3c   :  { %589 = vmatprep.subr.bf16.mxu0 %v6807_v61  ;;  %629 = vmatpush1.bf16.msra.mxu1 %v6813_v62 }
  0x3d   :  { %630 = vmatprep.subr.bf16.mxu1 %v6819_v63 }
  0x3f   :  { %590 = vmatpush1.bf16.msra.mxu0 %v6825_v1 }
  0x40   :  { %901 = vmatprep.subr.bf16.mxu0 %v6452_v0  ;;  %631 = vmatpush1.bf16.msra.mxu1 %v6832_v38  ;;  %v337_v0 = vlaneseq }
  0x41   :  { %942 = vmatprep.subr.bf16.mxu1 %v6465_v3  ;;  %v54_v3 = vld [vmem:[%s8605_s0] sm:$0xff] }
  0x42   :  { %608 = vmatmul.mubr.bf16.vlgmr.msra.gmra.mrb[4].mxu0 %v8657_v59 }
  0x43   :  { %902 = vmatpush1.bf16.msra.mxu0 %v6459_v2  ;;  %933 = vmatprep.mubr.bf16.mxu0 %v8658_v60  ;;  %v338_v2 = vshrl.u32 %v337_v0, 7 }
  0x44   :  { %649 = vmatmul.mubr.bf16.vlgmr.msra.gmra.mrb[4].mxu1 %v8657_v59  ;;  %903 = vmatprep.subr.bf16.mxu0 %v6476_v5  ;;  %v335_v5 = vld [vmem:[%s8606_s4] sm:$0xf] }
  0x45   :  { %943 = vmatpush1.bf16.msra.mxu1 %v6470_v4  ;;  %974 = vmatprep.mubr.bf16.mxu1 %v8658_v60  ;;  %v6880_v4 = vsub.s32 0, %v338_v2 }
  0x46   :  { %944 = vmatprep.subr.bf16.mxu1 %v6487_v7  ;;  %v55_v7 = vld [vmem:[%s8605_s0 + $0x8] sm:$0xff] }
  0x47   :  { %904 = vmatpush1.bf16.msra.mxu0 %v6481_v6  ;;  %v6885_v6 = vsub.s32 1, %v338_v2 }
  0x48   :  { %905 = vmatprep.subr.bf16.mxu0 %v6500_v9  ;;  %v6890_v9 = vsub.s32 2, %v338_v2 }
  0x49   :  { %945 = vmatpush1.bf16.msra.mxu1 %v6494_v8  ;;  %v89_v8 = vunpack.c.l.bf16 %v54_v3 }
  0x4a   :  { %946 = vmatprep.subr.bf16.mxu1 %v6511_v11  ;;  %v340_v11 = vrot.slane %v335_v5, %v6880_v4 }
  0x4b   :  { %906 = vmatpush1.bf16.msra.mxu0 %v6506_v10  ;;  %v90_v10 = vunpack.c.h.bf16 %v54_v3 }
  0x4c   :  { %907 = vmatprep.subr.bf16.mxu0 %v6517_v12  ;;  %v91_v12 = vunpack.c.l.bf16 %v55_v7 }
  0x4d   :  { %947 = vmatpush1.bf16.msra.mxu1 %v6523_v13 }
  0x4e   :  { %948 = vmatprep.subr.bf16.mxu1 %v6529_v14  ;;  %v344_v14 = vrot.slane %v335_v5, %v6885_v6 }
  0x4f   :  { %908 = vmatpush1.bf16.msra.mxu0 %v6535_v15 }
  0x50   :  { %909 = vmatprep.subr.bf16.mxu0 %v6541_v16 }
  0x51   :  { %949 = vmatpush1.bf16.msra.mxu1 %v6547_v17  ;;  %v348_v17 = vrot.slane %v335_v5, %v6890_v9 }
  0x52   :  { %950 = vmatprep.subr.bf16.mxu1 %v6553_v18 }
  0x53   :  { %910 = vmatpush1.bf16.msra.mxu0 %v6559_v19 }
  0x54   :  { %911 = vmatprep.subr.bf16.mxu0 %v6565_v20 }
  0x55   :  { %951 = vmatpush1.bf16.msra.mxu1 %v6571_v21 }
  0x56   :  { %952 = vmatprep.subr.bf16.mxu1 %v6577_v22 }
  0x57   :  { %912 = vmatpush1.bf16.msra.mxu0 %v6583_v23 }
  0x58   :  { %913 = vmatprep.subr.bf16.mxu0 %v6589_v24 }
  0x59   :  { %953 = vmatpush1.bf16.msra.mxu1 %v6595_v25 }
  0x5a   :  { %954 = vmatprep.subr.bf16.mxu1 %v6601_v26 }
  0x5b   :  { %914 = vmatpush1.bf16.msra.mxu0 %v6607_v27 }
  0x5c   :  { %915 = vmatprep.subr.bf16.mxu0 %v6613_v28  ;;  %v92_v28 = vunpack.c.h.bf16 %v55_v7 }
  0x5d   :  { %955 = vmatpush1.bf16.msra.mxu1 %v6619_v29  ;;  %v6895_v29 = vsub.s32 3, %v338_v2  ;;  %v376_v2 = vld [vmem:[%s8607_s1] sm:$0xff] }
  0x5e   :  { %956 = vmatprep.subr.bf16.mxu1 %v6625_v30 }
  0x5f   :  { %916 = vmatpush1.bf16.msra.mxu0 %v6631_v31 }
  0x60   :  { %1224 = vmatprep.subr.bf16.mxu0 %v6637_v32  ;;  %v352_v32 = vrot.slane %v335_v5, %v6895_v29 }
  0x61   :  { %957 = vmatpush1.bf16.msra.mxu1 %v6643_v33 }
  0x62   :  { %1265 = vmatprep.subr.bf16.mxu1 %v6649_v34 }
  0xf5   :  { %v287_v13 = vpop.f32.mrb[0].mxu0  ;;  %v328_v20 = vpop.f32.mrb[0].mxu1 }
  0xf6   :  { %v288_v15 = vadd.f32 %v287_v13, %v89_v8  ;;  %v289_v16 = vpop.f32.mrb[1].mxu0  ;;  %v329_v23 = vadd.f32 %v328_v20, %v91_v12  ;;  %v330_v24 = vpop.f32.mrb[1].mxu1 }
  0xf7   :  { %v290_v18 = vadd.f32 %v289_v16, %v90_v10  ;;  %v291_v19 = vpop.f32.mrb[2].mxu0  ;;  %v332_v26 = vpop.f32.mrb[2].mxu1  ;;  %v331_v31 = vadd.f32 %v330_v24, %v92_v28  ;;  %v411_v16 = vunpack.c.l.bf16 %v376_v2 }
  0xf8   :  { %v357_v21 = vadd.f32 %v340_v11, %v288_v15  ;;  %v292_v22 = vpop.f32.mrb[3].mxu0  ;;  %v359_v27 = vadd.f32 %v348_v17, %v329_v23  ;;  %v333_v30 = vpop.f32.mrb[3].mxu1  ;;  %v377_v15 = vld [vmem:[%s8607_s1 + $0x8] sm:$0xff] }
  0xf9   :  { %v358_v25 = vadd.f32 %v344_v14, %v290_v18  ;;  %v360_v33 = vadd.f32 %v352_v32, %v331_v31  ;;  %v657_v14 = vld [vmem:[%s8608_s5] sm:$0xf]  ;;  %v412_v18 = vunpack.c.h.bf16 %v376_v2  ;;  %v413_v20 = vunpack.c.l.bf16 %v377_v15 }
  0xfa   :  { %6237 = vtanh.f32 %v357_v21  ;;  %v662_v19 = vrot.slane %v657_v14, %v6880_v4  ;;  %v666_v22 = vrot.slane %v657_v14, %v6885_v6 }
  0xfb   :  { %6239 = vtanh.f32 %v358_v25  ;;  %v670_v25 = vrot.slane %v657_v14, %v6890_v9 }
  0xfc   :  { %6241 = vtanh.f32 %v359_v27 }
  0xfd   :  { %6243 = vtanh.f32 %v360_v33 }
 0x104   :  { %v6238_v34 = vpop.eup %6237 }
 0x105   :  { %v6240_v59 = vpop.eup %6239  ;;  %v365_v0 = vmul.f32 0.5, %v6238_v34 }
 0x106   :  { %v6242_v3 = vpop.eup %6241  ;;  %v367_v8 = vmul.f32 0.5, %v6240_v59 }
 0x107   :  { %v366_v10 = vadd.f32 0.5, %v365_v0  ;;  %v6244_v5 = vpop.eup %6243 }
 0x108   :  { %v368_v11 = vadd.f32 0.5, %v367_v8  ;;  %v369_v17 = vmul.f32 0.5, %v6244_v5  ;;  %v674_v5 = vrot.slane %v657_v14, %v6895_v29 }
 0x109   :  { %v372_v12 = vmul.f32 %v6242_v3, %v366_v10 }
 0x10a   :  { %v371_v13 = vmul.f32 0.0, %v368_v11  ;;  %v370_v26 = vadd.f32 0.5, %v369_v17  ;;  %v414_v11 = vunpack.c.h.bf16 %v377_v15  ;;  %v7032_v17 = vld [vmem:[%s8603_s2 + $0x64] ss:$16 sps:$4 sm:$0xff]  }
 0x10c   :  { %v6898_v7 = vadd.f32 %v372_v12, %v371_v13 }
 0x10e   :  { %6245 = vtanh.f32 %v6898_v7 }
 0x115   :  { %v609_v21 = vpop.f32.mrb[4].mxu0 }
 0x116   :  { %v610_v23 = vadd.f32 %v609_v21, %v411_v16  ;;  %v611_v24 = vpop.f32.mrb[5].mxu0  ;;  %v7056_v21 = vld [vmem:[%s8603_s2 + $0x84] ss:$16 sps:$4 sm:$0xff]  }
 0x117   :  { %v612_v27 = vadd.f32 %v611_v24, %v412_v18  ;;  %v613_v28 = vpop.f32.mrb[6].mxu0  ;;  %v650_v30 = vpop.f32.mrb[4].mxu1  ;;  %v7037_v18 = vld [vmem:[%s8603_s2 + $0x6c] ss:$16 sps:$4 sm:$0xff]   ;;  %v7071_v24 = vld [vmem:[%s8603_s2 + $0x88] ss:$16 sps:$4 sm:$0xff]  }
 0x118   :  { %v6246_v31 = vpop.eup %6245  ;;  %v679_v32 = vadd.f32 %v662_v19, %v610_v23  ;;  %v651_v33 = vadd.f32 %v650_v30, %v413_v20  ;;  %v614_v34 = vpop.f32.mrb[7].mxu0  ;;  %v7042_v19 = vld [vmem:[%s8603_s2 + $0x60] ss:$16 sps:$4 sm:$0xff]   ;;  %v7047_v20 = vld [vmem:[%s8603_s2 + $0x68] ss:$16 sps:$4 sm:$0xff]  }
 0x119   :  { %v652_v59 = vpop.f32.mrb[5].mxu1  ;;  %v375_v0 = vmul.f32 %v6246_v31, %v370_v26  ;;  %v680_v3 = vadd.f32 %v666_v22, %v612_v27  ;;  %v7061_v22 = vld [vmem:[%s8603_s2 + $0x8c] ss:$16 sps:$4 sm:$0xff]   ;;  %v7066_v23 = vld [vmem:[%s8603_s2 + $0x80] ss:$16 sps:$4 sm:$0xff]  }
 0x11a   :  { %v654_v8 = vpop.f32.mrb[6].mxu1  ;;  %6247 = vtanh.f32 %v679_v32  ;;  %v681_v10 = vadd.f32 %v670_v25, %v651_v33  ;;  %v653_v2 = vadd.f32 %v652_v59, %v414_v11  ;;  %v7080_v25 = vld [vmem:[%s8603_s2 + $0xa4] ss:$16 sps:$4 sm:$0xff]   ;;  %v7085_v26 = vld [vmem:[%s8603_s2 + $0xac] ss:$16 sps:$4 sm:$0xff]  }
 0x11b   :  { %v655_v12 = vpop.f32.mrb[7].mxu1  ;;  %698 = vst [vmem:[%s8609_s6] sm:$0xff] %v375_v0  ;;  %6249 = vtanh.f32 %v680_v3  ;;  %v704_v13 = vpack.c.bf16 %v375_v0, %v375_v0  ;;  %v7090_v27 = vld [vmem:[%s8603_s2 + $0xa0] ss:$16 sps:$4 sm:$0xff]   ;;  %v7095_v28 = vld [vmem:[%s8603_s2 + $0xa8] ss:$16 sps:$4 sm:$0xff]  }
 0x11c   :  { %6251 = vtanh.f32 %v681_v10  ;;  %v682_v15 = vadd.f32 %v674_v5, %v653_v2  ;;  %v7104_v30 = vld [vmem:[%s8603_s2 + $0xc4] ss:$16 sps:$4 sm:$0xff]   ;;  %v7109_v31 = vld [vmem:[%s8603_s2 + $0xc0] ss:$16 sps:$4 sm:$0xff]   ;;  %v7114_v32 = vld [vmem:[%s8603_s2 + $0xc8] ss:$16 sps:$4 sm:$0xff]  }
 0x11d   :  { %934 = vmatmul.mubr.bf16.vlgmr.msra.gmra.mrb[8].mxu0 %v704_v13  ;;  %975 = vmatmul.mubr.bf16.vlgmr.msra.gmra.mrb[8].mxu1 %v704_v13  ;;  %v7119_v33 = vld [vmem:[%s8603_s2 + $0xcc] ss:$16 sps:$4 sm:$0xff]   ;;  %v7128_v34 = vld [vmem:[%s8603_s2 + $0xe4] ss:$16 sps:$4 sm:$0xff]   ;;  %v7138_v0 = vld [vmem:[%s8603_s2 + $0xe0] ss:$16 sps:$4 sm:$0xff]  }
 0x11e   :  { %1225 = vmatpush1.bf16.msra.mxu0 %v6655_v35  ;;  %1266 = vmatpush1.bf16.msra.mxu1 %v6667_v37  ;;  %6253 = vtanh.f32 %v682_v15  ;;  %v7133_v59 = vld [vmem:[%s8603_s2 + $0xec] ss:$16 sps:$4 sm:$0xff]   ;;  %v7143_v3 = vld [vmem:[%s8603_s2 + $0xe8] ss:$16 sps:$4 sm:$0xff]   ;;  %v7152_v8 = vld [vmem:[%s8604_s3 + $0x4] ss:$16 sps:$4 sm:$0xff]  }
 0x11f   :  { %1226 = vmatprep.subr.bf16.mxu0 %v6661_v36  ;;  %1267 = vmatprep.subr.bf16.mxu1 %v6674_v39  ;;  %v7157_v10 = vld [vmem:[%s8604_s3 + $0xc] ss:$16 sps:$4 sm:$0xff]   ;;  %v5362_v11 = vld [vmem:[%s8605_s0 + $0x10] sm:$0xff]  ;;  %v983_v13 = vld [vmem:[%s8606_s4] sm:$0xf] }
 0x120   :  { %1256 = vmatprep.mubr.bf16.mxu0 %v8658_v60  ;;  %1297 = vmatprep.mubr.bf16.mxu1 %v8658_v60  ;;  %8663 = vst [vmem:[#allocation8_spill] sm:$0xff] %v7157_v10  ;;  %v5363_v12 = vld [vmem:[%s8605_s0 + $0x18] sm:$0xff]  ;;  %v737_v2 = vunpack.c.l.bf16 %v5362_v11  ;;  %v738_v15 = vunpack.c.h.bf16 %v5362_v11 }
 0x121   :  { %v739_v5 = vunpack.c.l.bf16 %v5363_v12  ;;  %v740_v11 = vunpack.c.h.bf16 %v5363_v12  ;;  %v5396_v12 = vld [vmem:[%s8607_s1 + $0x10] sm:$0xff] }
 0x122   :  { %1227 = vmatpush1.bf16.msra.mxu0 %v6680_v40  ;;  %1268 = vmatpush1.bf16.msra.mxu1 %v6694_v42 }
 0x123   :  { %1228 = vmatprep.subr.bf16.mxu0 %v6688_v41  ;;  %1269 = vmatprep.subr.bf16.mxu1 %v6701_v43 }
 0x124   :  { %v6248_v35 = vpop.eup %6247 }
 0x125   :  { %v6250_v14 = vpop.eup %6249  ;;  %v687_v37 = vmul.f32 0.5, %v6248_v35  ;;  %v988_v35 = vrot.slane %v983_v13, %v6880_v4 }
 0x126   :  { %v6252_v16 = vpop.eup %6251  ;;  %v689_v36 = vmul.f32 0.5, %v6250_v14  ;;  %1229 = vmatpush1.bf16.msra.mxu0 %v6707_v44  ;;  %1270 = vmatpush1.bf16.msra.mxu1 %v6719_v46  ;;  %v8659_v46 = vld [vmem:[#allocation6_spill] sm:$0xff] }
 0x127   :  { %v688_v39 = vadd.f32 0.5, %v687_v37  ;;  %1230 = vmatprep.subr.bf16.mxu0 %v6713_v45  ;;  %1271 = vmatprep.subr.bf16.mxu1 %v6730_v48  ;;  %8661 = vst [vmem:[#allocation6_spill] sm:$0xff] %v7143_v3 }
 0x128   :  { %v690_v40 = vadd.f32 0.5, %v689_v36  ;;  %v6254_v44 = vpop.eup %6253 }
 0x129   :  { %v694_v42 = vmul.f32 %v6252_v16, %v688_v39  ;;  %v691_v45 = vmul.f32 0.5, %v6254_v44  ;;  %v992_v16 = vrot.slane %v983_v13, %v6885_v6 }
 0x12a   :  { %v693_v41 = vmul.f32 0.0, %v690_v40  ;;  %1231 = vmatpush1.bf16.msra.mxu0 %v6725_v47  ;;  %1272 = vmatpush1.bf16.msra.mxu1 %v6741_v50  ;;  %v8660_v47 = vld [vmem:[#allocation7_spill] sm:$0xff]  ;;  %v996_v40 = vrot.slane %v983_v13, %v6890_v9 }
 0x12b   :  { %1232 = vmatprep.subr.bf16.mxu0 %v6735_v49  ;;  %1273 = vmatprep.subr.bf16.mxu1 %v6747_v51  ;;  %v692_v48 = vadd.f32 0.5, %v691_v45  ;;  %8662 = vst [vmem:[#allocation7_spill] sm:$0xff] %v7152_v8 }
 0x12c   :  { %v6935_v43 = vadd.f32 %v694_v42, %v693_v41 }
 0x12e   :  { %6255 = vtanh.f32 %v6935_v43  ;;  %1233 = vmatpush1.bf16.msra.mxu0 %v6753_v52  ;;  %1274 = vmatpush1.bf16.msra.mxu1 %v6765_v54  ;;  %v6960_v52 = vld [vmem:[%s8603_s2 + $0x4] ss:$16 sps:$4 sm:$0xff]  }
 0x12f   :  { %1234 = vmatprep.subr.bf16.mxu0 %v6759_v53  ;;  %1275 = vmatprep.subr.bf16.mxu1 %v6771_v55  ;;  %v6975_v53 = vld [vmem:[%s8603_s2 + $0x8] ss:$16 sps:$4 sm:$0xff]   ;;  %v6984_v54 = vld [vmem:[%s8603_s2 + $0x24] ss:$16 sps:$4 sm:$0xff]   ;;  %v6989_v55 = vld [vmem:[%s8603_s2 + $0x2c] ss:$16 sps:$4 sm:$0xff]  }
 0x132   :  { %1235 = vmatpush1.bf16.msra.mxu0 %v6777_v56  ;;  %1276 = vmatpush1.bf16.msra.mxu1 %v6789_v58  ;;  %v6994_v56 = vld [vmem:[%s8603_s2 + $0x20] ss:$16 sps:$4 sm:$0xff]   ;;  %v7008_v58 = vld [vmem:[%s8603_s2 + $0x44] ss:$16 sps:$4 sm:$0xff]  }
 0x133   :  { %1236 = vmatprep.subr.bf16.mxu0 %v6783_v57  ;;  %1277 = vmatprep.subr.bf16.mxu1 %v8659_v46  ;;  %v6999_v57 = vld [vmem:[%s8603_s2 + $0x28] ss:$16 sps:$4 sm:$0xff]  }
 0x136   :  { %1237 = vmatpush1.bf16.msra.mxu0 %v8660_v47  ;;  %1278 = vmatpush1.bf16.msra.mxu1 %v6813_v62  ;;  %v7018_v62 = vld [vmem:[%s8603_s2 + $0x40] ss:$16 sps:$4 sm:$0xff]  }
 0x137   :  { %1238 = vmatprep.subr.bf16.mxu0 %v6807_v61  ;;  %1279 = vmatprep.subr.bf16.mxu1 %v6819_v63  ;;  %v7013_v61 = vld [vmem:[%s8603_s2 + $0x4c] ss:$16 sps:$4 sm:$0xff]   ;;  %v7023_v63 = vld [vmem:[%s8603_s2 + $0x48] ss:$16 sps:$4 sm:$0xff]  }
 0x138   :  { %v6256_v49 = vpop.eup %6255 }
 0x139   :  { %v697_v50 = vmul.f32 %v6256_v49, %v692_v48 }
 0x13a   :  { %1239 = vmatpush1.bf16.msra.mxu0 %v6825_v1  ;;  %1280 = vmatpush1.bf16.msra.mxu1 %v6832_v38  ;;  %v6965_v1 = vld [vmem:[%s8603_s2 + $0xc] ss:$16 sps:$4 sm:$0xff]   ;;  %v6970_v38 = vld [vmem:[%s8603_s2] ss:$16 sps:$4 sm:$0xff]  }
 0x13b   :  { %5361 = vst [vmem:[%s8610_s7 + $0x38] sm:$0xff] %v697_v50  ;;  %v1027_v51 = vpack.c.bf16 %v697_v50, %v697_v50  ;;  %1551 = vmatprep.subr.bf16.mxu0 %v6960_v52  ;;  %1592 = vmatprep.subr.bf16.mxu1 %v6965_v1 }
 0x13d   :  { %1257 = vmatmul.mubr.bf16.vlgmr.msra.gmra.mrb[12].mxu0 %v1027_v51  ;;  %1298 = vmatmul.mubr.bf16.vlgmr.msra.gmra.mrb[12].mxu1 %v1027_v51 }
 0x13e   :  { %1583 = vmatprep.mubr.bf16.mxu0 %v8658_v60  ;;  %1624 = vmatprep.mubr.bf16.mxu1 %v8658_v60 }
 0x13f   :  { %1552 = vmatpush1.bf16.msra.mxu0 %v6970_v38  ;;  %1593 = vmatpush1.bf16.msra.mxu1 %v6975_v53 }
 0x140   :  { %1553 = vmatprep.subr.bf16.mxu0 %v6984_v54  ;;  %1594 = vmatprep.subr.bf16.mxu1 %v6989_v55 }
 0x143   :  { %1554 = vmatpush1.bf16.msra.mxu0 %v6994_v56  ;;  %1595 = vmatpush1.bf16.msra.mxu1 %v6999_v57 }
 0x144   :  { %1555 = vmatprep.subr.bf16.mxu0 %v7008_v58  ;;  %1596 = vmatprep.subr.bf16.mxu1 %v7013_v61 }
 0x147   :  { %1556 = vmatpush1.bf16.msra.mxu0 %v7018_v62  ;;  %1597 = vmatpush1.bf16.msra.mxu1 %v7023_v63 }
 0x148   :  { %1557 = vmatprep.subr.bf16.mxu0 %v7032_v17  ;;  %1598 = vmatprep.subr.bf16.mxu1 %v7037_v18 }
 0x14b   :  { %1558 = vmatpush1.bf16.msra.mxu0 %v7042_v19  ;;  %1599 = vmatpush1.bf16.msra.mxu1 %v7047_v20 }
 0x14c   :  { %1559 = vmatprep.subr.bf16.mxu0 %v7056_v21  ;;  %1600 = vmatprep.subr.bf16.mxu1 %v7061_v22 }
 0x14f   :  { %1560 = vmatpush1.bf16.msra.mxu0 %v7066_v23  ;;  %1601 = vmatpush1.bf16.msra.mxu1 %v7071_v24 }
 0x150   :  { %1561 = vmatprep.subr.bf16.mxu0 %v7080_v25  ;;  %1602 = vmatprep.subr.bf16.mxu1 %v7085_v26 }
 0x153   :  { %1562 = vmatpush1.bf16.msra.mxu0 %v7090_v27  ;;  %1603 = vmatpush1.bf16.msra.mxu1 %v7095_v28 }
 0x154   :  { %1563 = vmatprep.subr.bf16.mxu0 %v7104_v30  ;;  %1604 = vmatprep.subr.bf16.mxu1 %v7119_v33 }
 0x157   :  { %1564 = vmatpush1.bf16.msra.mxu0 %v7109_v31  ;;  %1605 = vmatpush1.bf16.msra.mxu1 %v7114_v32 }
 0x158   :  { %1565 = vmatprep.subr.bf16.mxu0 %v7128_v34  ;;  %1606 = vmatprep.subr.bf16.mxu1 %v7133_v59 }
 0x15b   :  { %1566 = vmatpush1.bf16.msra.mxu0 %v7138_v0  ;;  %1607 = vmatpush1.bf16.msra.mxu1 %v7143_v3 }
 0x15c   :  { %1874 = vmatprep.subr.bf16.mxu0 %v7152_v8  ;;  %1915 = vmatprep.subr.bf16.mxu1 %v7157_v10 }
 0x1f0   :  { %v935_v14 = vpop.f32.mrb[8].mxu0  ;;  %v976_v37 = vpop.f32.mrb[8].mxu1 }
 0x1f1   :  { %v936_v36 = vadd.f32 %v935_v14, %v737_v2  ;;  %v977_v39 = vadd.f32 %v976_v37, %v739_v5  ;;  %v937_v42 = vpop.f32.mrb[9].mxu0  ;;  %v978_v41 = vpop.f32.mrb[9].mxu1  ;;  %v1000_v2 = vrot.slane %v983_v13, %v6895_v29 }
 0x1f2   :  { %v938_v44 = vadd.f32 %v937_v42, %v738_v15  ;;  %v939_v45 = vpop.f32.mrb[10].mxu0  ;;  %v980_v46 = vpop.f32.mrb[10].mxu1  ;;  %v979_v10 = vadd.f32 %v978_v41, %v740_v11 }
 0x1f3   :  { %v1005_v47 = vadd.f32 %v988_v35, %v936_v36  ;;  %v940_v48 = vpop.f32.mrb[11].mxu0  ;;  %v981_v49 = vpop.f32.mrb[11].mxu1  ;;  %v1007_v51 = vadd.f32 %v996_v40, %v977_v39 }
 0x1f4   :  { %v1006_v50 = vadd.f32 %v992_v16, %v938_v44  ;;  %v1008_v5 = vadd.f32 %v1000_v2, %v979_v10  ;;  %v5397_v10 = vld [vmem:[%s8607_s1 + $0x18] sm:$0xff] }
 0x1f5   :  { %6257 = vtanh.f32 %v1005_v47  ;;  %v1062_v39 = vunpack.c.l.bf16 %v5397_v10 }
 0x1f6   :  { %6259 = vtanh.f32 %v1006_v50 }
 0x1f7   :  { %6261 = vtanh.f32 %v1007_v51 }
 0x1f8   :  { %6263 = vtanh.f32 %v1008_v5 }
 0x1ff   :  { %v6258_v14 = vpop.eup %6257 }
 0x200   :  { %v1013_v37 = vmul.f32 0.5, %v6258_v14  ;;  %v6260_v8 = vpop.eup %6259 }
 0x201   :  { %v1015_v15 = vmul.f32 0.5, %v6260_v8  ;;  %v6262_v42 = vpop.eup %6261  ;;  %v1306_v8 = vld [vmem:[%s8608_s5] sm:$0xf] }
 0x202   :  { %v1014_v3 = vadd.f32 0.5, %v1013_v37  ;;  %v6264_v13 = vpop.eup %6263  ;;  %v1311_v41 = vrot.slane %v1306_v8, %v6880_v4  ;;  %v1315_v47 = vrot.slane %v1306_v8, %v6885_v6  ;;  %v1319_v50 = vrot.slane %v1306_v8, %v6890_v9 }
 0x203   :  { %v1016_v35 = vadd.f32 0.5, %v1015_v15  ;;  %v1017_v40 = vmul.f32 0.5, %v6264_v13 }
 0x204   :  { %v1020_v36 = vmul.f32 %v6262_v42, %v1014_v3  ;;  %v1060_v3 = vunpack.c.l.bf16 %v5396_v12 }
 0x205   :  { %v1019_v16 = vmul.f32 %v1016_v35, %v6898_v7  ;;  %v1061_v7 = vunpack.c.h.bf16 %v5396_v12  ;;  %v1018_v37 = vadd.f32 0.5, %v1017_v40  ;;  %v7211_v40 = vld [vmem:[%s8604_s3 + $0x2c] ss:$16 sps:$4 sm:$0xff]  }
 0x207   :  { %v7175_v44 = vadd.f32 %v1020_v36, %v1019_v16 }
 0x209   :  { %8664 = vst [vmem:[#allocation9_spill] sm:$0xff] %v7175_v44  ;;  %6265 = vtanh.f32 %v7175_v44  ;;  %v1063_v44 = vunpack.c.h.bf16 %v5397_v10  ;;  %v7206_v10 = vld [vmem:[%s8604_s3 + $0x24] ss:$16 sps:$4 sm:$0xff]  }
 0x210   :  { %v1258_v45 = vpop.f32.mrb[12].mxu0  ;;  %v1299_v46 = vpop.f32.mrb[12].mxu1 }
 0x211   :  { %v1259_v48 = vadd.f32 %v1258_v45, %v1060_v3  ;;  %v1300_v49 = vadd.f32 %v1299_v46, %v1062_v39  ;;  %v1260_v51 = vpop.f32.mrb[13].mxu0  ;;  %v1301_v11 = vpop.f32.mrb[13].mxu1  ;;  %v7193_v3 = vld [vmem:[%s8604_s3] ss:$16 sps:$4 sm:$0xff]   ;;  %v7198_v39 = vld [vmem:[%s8604_s3 + $0x8] ss:$16 sps:$4 sm:$0xff]   ;;  %v1323_v45 = vrot.slane %v1306_v8, %v6895_v29 }
 0x212   :  { %v1261_v2 = vadd.f32 %v1260_v51, %v1061_v7  ;;  %v1262_v5 = vpop.f32.mrb[14].mxu0  ;;  %v1303_v14 = vpop.f32.mrb[14].mxu1  ;;  %v7219_v46 = vld [vmem:[%s8604_s3 + $0x20] ss:$16 sps:$4 sm:$0xff]   ;;  %v7236_v8 = vld [vmem:[%s8604_s3 + $0x4c] ss:$16 sps:$4 sm:$0xff]  }
 0x213   :  { %v1328_v15 = vadd.f32 %v1311_v41, %v1259_v48  ;;  %v1263_v42 = vpop.f32.mrb[15].mxu0  ;;  %v1304_v35 = vpop.f32.mrb[15].mxu1  ;;  %v1330_v13 = vadd.f32 %v1319_v50, %v1300_v49  ;;  %v1302_v41 = vadd.f32 %v1301_v11, %v1063_v44  ;;  %v7231_v44 = vld [vmem:[%s8604_s3 + $0x44] ss:$16 sps:$4 sm:$0xff]   ;;  %v7245_v49 = vld [vmem:[%s8604_s3 + $0x40] ss:$16 sps:$4 sm:$0xff]  }
 0x214   :  { %v6266_v36 = vpop.eup %6265  ;;  %v1329_v16 = vadd.f32 %v1315_v47, %v1261_v2  ;;  %v7224_v47 = vld [vmem:[%s8604_s3 + $0x28] ss:$16 sps:$4 sm:$0xff]   ;;  %v7257_v11 = vld [vmem:[%s8604_s3 + $0x64] ss:$16 sps:$4 sm:$0xff]   ;;  %v7262_v2 = vld [vmem:[%s8604_s3 + $0x6c] ss:$16 sps:$4 sm:$0xff]  }
 0x215   :  { %v1023_v12 = vmul.f32 %v6266_v36, %v1018_v37  ;;  %6267 = vtanh.f32 %v1328_v15  ;;  %v1331_v48 = vadd.f32 %v1323_v45, %v1302_v41  ;;  %v7250_v50 = vld [vmem:[%s8604_s3 + $0x48] ss:$16 sps:$4 sm:$0xff]   ;;  %v7269_v42 = vld [vmem:[%s8604_s3 + $0x60] ss:$16 sps:$4 sm:$0xff]  }
 0x216   :  { %6269 = vtanh.f32 %v1329_v16  ;;  %v7274_v35 = vld [vmem:[%s8604_s3 + $0x68] ss:$16 sps:$4 sm:$0xff]   ;;  %v7281_v16 = vld [vmem:[%s8604_s3 + $0x84] ss:$16 sps:$4 sm:$0xff]   ;;  %v7294_v45 = vld [vmem:[%s8604_s3 + $0x80] ss:$16 sps:$4 sm:$0xff]  }
 0x217   :  { %5430 = vst [vmem:[%s8609_s6 + $0x8] sm:$0xff] %v1023_v12  ;;  %v1354_v7 = vpack.c.bf16 %v1023_v12, %v1023_v12  ;;  %6271 = vtanh.f32 %v1330_v13  ;;  %v7286_v12 = vld [vmem:[%s8604_s3 + $0x8c] ss:$16 sps:$4 sm:$0xff]  }
 0x218   :  { %6273 = vtanh.f32 %v1331_v48  ;;  %v7299_v48 = vld [vmem:[%s8604_s3 + $0x88] ss:$16 sps:$4 sm:$0xff]  }
 0x219   :  { %1584 = vmatmul.mubr.bf16.vlgmr.msra.gmra.mrb[16].mxu0 %v1354_v7  ;;  %1625 = vmatmul.mubr.bf16.vlgmr.msra.gmra.mrb[16].mxu1 %v1354_v7  ;;  %8665 = vst [vmem:[#allocation10_spill] sm:$0xff] %v7299_v48 }
 0x21a   :  { %1875 = vmatpush1.bf16.msra.mxu0 %v7193_v3  ;;  %1916 = vmatpush1.bf16.msra.mxu1 %v7198_v39 }
 0x21b   :  { %1876 = vmatprep.subr.bf16.mxu0 %v7206_v10  ;;  %1917 = vmatprep.subr.bf16.mxu1 %v7211_v40 }
 0x21c   :  { %1906 = vmatprep.mubr.bf16.mxu0 %v8658_v60  ;;  %1947 = vmatprep.mubr.bf16.mxu1 %v8658_v60 }
 0x21e   :  { %1877 = vmatpush1.bf16.msra.mxu0 %v7219_v46  ;;  %1918 = vmatpush1.bf16.msra.mxu1 %v7224_v47 }
 0x21f   :  { %v6268_v51 = vpop.eup %6267  ;;  %1878 = vmatprep.subr.bf16.mxu0 %v7231_v44  ;;  %1919 = vmatprep.subr.bf16.mxu1 %v7236_v8 }
 0x220   :  { %v1336_v5 = vmul.f32 0.5, %v6268_v51  ;;  %v6270_v14 = vpop.eup %6269  ;;  %v7311_v51 = vld [vmem:[%s8604_s3 + $0xac] ss:$16 sps:$4 sm:$0xff]  }
 0x221   :  { %v1338_v15 = vmul.f32 0.5, %v6270_v14  ;;  %v6272_v36 = vpop.eup %6271  ;;  %8667 = vst [vmem:[#allocation12_spill] sm:$0xff] %v7311_v51  ;;  %v7321_v14 = vld [vmem:[%s8604_s3 + $0xa0] ss:$16 sps:$4 sm:$0xff]  }
 0x222   :  { %v1337_v37 = vadd.f32 0.5, %v1336_v5  ;;  %1879 = vmatpush1.bf16.msra.mxu0 %v7245_v49  ;;  %1920 = vmatpush1.bf16.msra.mxu1 %v7250_v50  ;;  %8668 = vst [vmem:[#allocation13_spill] sm:$0xff] %v7321_v14 }
 0x223   :  { %1880 = vmatprep.subr.bf16.mxu0 %v7257_v11  ;;  %1921 = vmatprep.subr.bf16.mxu1 %v7262_v2  ;;  %v1339_v13 = vadd.f32 0.5, %v1338_v15  ;;  %v7333_v15 = vld [vmem:[%s8604_s3 + $0xc4] ss:$16 sps:$4 sm:$0xff]  }
 0x224   :  { %v1343_v7 = vmul.f32 %v6272_v36, %v1337_v37  ;;  %v7326_v37 = vld [vmem:[%s8604_s3 + $0xa8] ss:$16 sps:$4 sm:$0xff]   ;;  %8670 = vst [vmem:[#allocation15_spill] sm:$0xff] %v7333_v15  ;;  %v7338_v36 = vld [vmem:[%s8604_s3 + $0xcc] ss:$16 sps:$4 sm:$0xff]  }
 0x225   :  { %v1342_v41 = vmul.f32 %v1339_v13, %v6935_v43  ;;  %v7306_v43 = vld [vmem:[%s8604_s3 + $0xa4] ss:$16 sps:$4 sm:$0xff]   ;;  %8669 = vst [vmem:[#allocation14_spill] sm:$0xff] %v7326_v37  ;;  %8671 = vst [vmem:[#allocation16_spill] sm:$0xff] %v7338_v36  ;;  %v6274_v13 = vpop.eup %6273 }
 0x226   :  { %1881 = vmatpush1.bf16.msra.mxu0 %v7269_v42  ;;  %1922 = vmatpush1.bf16.msra.mxu1 %v7274_v35  ;;  %8666 = vst [vmem:[#allocation11_spill] sm:$0xff] %v7306_v43 }
 0x227   :  { %1882 = vmatprep.subr.bf16.mxu0 %v7281_v16  ;;  %1923 = vmatprep.subr.bf16.mxu1 %v7286_v12  ;;  %v7313_v5 = vadd.f32 %v1343_v7, %v1342_v41  ;;  %v7345_v7 = vld [vmem:[%s8604_s3 + $0xc0] ss:$16 sps:$4 sm:$0xff]   ;;  %v7350_v41 = vld [vmem:[%s8604_s3 + $0xc8] ss:$16 sps:$4 sm:$0xff]  }
 0x228   :  { %8672 = vst [vmem:[#allocation17_spill] sm:$0xff] %v7350_v41 }
 0x229   :  { %6275 = vtanh.f32 %v7313_v5 }
 0x22a   :  { %1883 = vmatpush1.bf16.msra.mxu0 %v7294_v45  ;;  %1924 = vmatpush1.bf16.msra.mxu1 %v7299_v48 }
 0x22b   :  { %1884 = vmatprep.subr.bf16.mxu0 %v7306_v43  ;;  %1925 = vmatprep.subr.bf16.mxu1 %v7311_v51  ;;  %v1340_v51 = vmul.f32 0.5, %v6274_v13  ;;  %v7369_v13 = vld [vmem:[%s8604_s3 + $0xe0] ss:$16 sps:$4 sm:$0xff]  }
 0x22e   :  { %1885 = vmatpush1.bf16.msra.mxu0 %v7321_v14  ;;  %1926 = vmatpush1.bf16.msra.mxu1 %v7326_v37  ;;  %v7357_v14 = vld [vmem:[%s8604_s3 + $0xe4] ss:$16 sps:$4 sm:$0xff]   ;;  %v7362_v37 = vld [vmem:[%s8604_s3 + $0xec] ss:$16 sps:$4 sm:$0xff]  }
 0x22f   :  { %1886 = vmatprep.subr.bf16.mxu0 %v7333_v15  ;;  %1927 = vmatprep.subr.bf16.mxu1 %v7338_v36  ;;  %v7374_v36 = vld [vmem:[%s8604_s3 + $0xe8] ss:$16 sps:$4 sm:$0xff]   ;;  %v1341_v15 = vadd.f32 0.5, %v1340_v51 }
 0x232   :  { %1887 = vmatpush1.bf16.msra.mxu0 %v7345_v7  ;;  %1928 = vmatpush1.bf16.msra.mxu1 %v7350_v41 }
 0x233   :  { %1888 = vmatprep.subr.bf16.mxu0 %v7357_v14  ;;  %1929 = vmatprep.subr.bf16.mxu1 %v7362_v37  ;;  %v6276_v43 = vpop.eup %6275 }
 0x234   :  { %v1346_v48 = vmul.f32 %v6276_v43, %v1341_v15 }
 0x236   :  { %1889 = vmatpush1.bf16.msra.mxu0 %v7369_v13  ;;  %1930 = vmatpush1.bf16.msra.mxu1 %v7374_v36  ;;  %5431 = vst [vmem:[%s8610_s7 + $0x30] sm:$0xff] %v1346_v48  ;;  %v1677_v41 = vpack.c.bf16 %v1346_v48, %v1346_v48 }
 0x237   :  { %2201 = vmatprep.subr.bf16.mxu0 %v6960_v52  ;;  %2242 = vmatprep.subr.bf16.mxu1 %v6965_v1  ;;  %v8673_v52 = vld [vmem:[#allocation6_spill] sm:$0xff]  ;;  %v8674_v1 = vld [vmem:[#allocation7_spill] sm:$0xff] }
 0x239   :  { %1907 = vmatmul.mubr.bf16.vlgmr.msra.gmra.mrb[20].mxu0 %v1677_v41  ;;  %1948 = vmatmul.mubr.bf16.vlgmr.msra.gmra.mrb[20].mxu1 %v1677_v41 }
 0x23a   :  { %2202 = vmatpush1.bf16.msra.mxu0 %v6970_v38  ;;  %2243 = vmatpush1.bf16.msra.mxu1 %v6975_v53  ;;  %v8675_v38 = vld [vmem:[#allocation8_spill] sm:$0xff]  ;;  %v5432_v53 = vld [vmem:[%s8605_s0 + $0x20] sm:$0xff] }
 0x23b   :  { %2203 = vmatprep.subr.bf16.mxu0 %v6984_v54  ;;  %2244 = vmatprep.subr.bf16.mxu1 %v6989_v55  ;;  %v5433_v54 = vld [vmem:[%s8605_s0 + $0x28] sm:$0xff]  ;;  %v1633_v55 = vld [vmem:[%s8606_s4] sm:$0xf] }
 0x23c   :  { %2233 = vmatprep.mubr.bf16.mxu0 %v8658_v60  ;;  %2274 = vmatprep.mubr.bf16.mxu1 %v8658_v60 }
 0x23e   :  { %2204 = vmatpush1.bf16.msra.mxu0 %v6994_v56  ;;  %2245 = vmatpush1.bf16.msra.mxu1 %v6999_v57  ;;  %v1387_v56 = vunpack.c.l.bf16 %v5432_v53  ;;  %v1389_v57 = vunpack.c.l.bf16 %v5433_v54 }
 0x23f   :  { %2205 = vmatprep.subr.bf16.mxu0 %v7008_v58  ;;  %2246 = vmatprep.subr.bf16.mxu1 %v7013_v61  ;;  %v1388_v58 = vunpack.c.h.bf16 %v5432_v53  ;;  %v1638_v61 = vrot.slane %v1633_v55, %v6880_v4 }
 0x242   :  { %2206 = vmatpush1.bf16.msra.mxu0 %v7018_v62  ;;  %2247 = vmatpush1.bf16.msra.mxu1 %v7023_v63 }
 0x243   :  { %2207 = vmatprep.subr.bf16.mxu0 %v7032_v17  ;;  %2248 = vmatprep.subr.bf16.mxu1 %v7037_v18  ;;  %v1642_v17 = vrot.slane %v1633_v55, %v6885_v6 }
 0x246   :  { %2208 = vmatpush1.bf16.msra.mxu0 %v7042_v19  ;;  %2249 = vmatpush1.bf16.msra.mxu1 %v7047_v20  ;;  %v1646_v20 = vrot.slane %v1633_v55, %v6890_v9 }
 0x247   :  { %2209 = vmatprep.subr.bf16.mxu0 %v7056_v21  ;;  %2250 = vmatprep.subr.bf16.mxu1 %v7061_v22 }
 0x24a   :  { %2210 = vmatpush1.bf16.msra.mxu0 %v7066_v23  ;;  %2251 = vmatpush1.bf16.msra.mxu1 %v7071_v24 }
 0x24b   :  { %2211 = vmatprep.subr.bf16.mxu0 %v7080_v25  ;;  %2252 = vmatprep.subr.bf16.mxu1 %v7085_v26 }
 0x24e   :  { %2212 = vmatpush1.bf16.msra.mxu0 %v7090_v27  ;;  %2253 = vmatpush1.bf16.msra.mxu1 %v7095_v28 }
 0x24f   :  { %2213 = vmatprep.subr.bf16.mxu0 %v7104_v30  ;;  %2254 = vmatprep.subr.bf16.mxu1 %v7119_v33 }
 0x252   :  { %2214 = vmatpush1.bf16.msra.mxu0 %v7109_v31  ;;  %2255 = vmatpush1.bf16.msra.mxu1 %v7114_v32  ;;  %v1390_v32 = vunpack.c.h.bf16 %v5433_v54  ;;  %v5466_v54 = vld [vmem:[%s8607_s1 + $0x20] sm:$0xff] }
 0x253   :  { %2215 = vmatprep.subr.bf16.mxu0 %v7128_v34  ;;  %2256 = vmatprep.subr.bf16.mxu1 %v7133_v59  ;;  %v1650_v34 = vrot.slane %v1633_v55, %v6895_v29  ;;  %v5467_v55 = vld [vmem:[%s8607_s1 + $0x28] sm:$0xff] }
 0x256   :  { %2216 = vmatpush1.bf16.msra.mxu0 %v7138_v0  ;;  %2257 = vmatpush1.bf16.msra.mxu1 %v8673_v52 }
 0x257   :  { %2524 = vmatprep.subr.bf16.mxu0 %v8674_v1  ;;  %2565 = vmatprep.subr.bf16.mxu1 %v8675_v38  ;;  %v8676_v38 = vld [vmem:[#allocation9_spill] sm:$0xff] }
 0x2ec   :  { %v1585_v62 = vpop.f32.mrb[16].mxu0  ;;  %v1626_v63 = vpop.f32.mrb[16].mxu1 }
 0x2ed   :  { %v1586_v18 = vadd.f32 %v1585_v62, %v1387_v56  ;;  %v1627_v19 = vadd.f32 %v1626_v63, %v1389_v57  ;;  %v1587_v21 = vpop.f32.mrb[17].mxu0  ;;  %v1628_v22 = vpop.f32.mrb[17].mxu1  ;;  %v1712_v62 = vunpack.c.l.bf16 %v5467_v55  ;;  %v1711_v63 = vunpack.c.h.bf16 %v5466_v54 }
 0x2ee   :  { %v1588_v23 = vadd.f32 %v1587_v21, %v1388_v58  ;;  %v1589_v24 = vpop.f32.mrb[18].mxu0  ;;  %v1630_v25 = vpop.f32.mrb[18].mxu1  ;;  %v1629_v33 = vadd.f32 %v1628_v22, %v1390_v32  ;;  %v1956_v58 = vld [vmem:[%s8608_s5] sm:$0xf] }
 0x2ef   :  { %v1655_v26 = vadd.f32 %v1638_v61, %v1586_v18  ;;  %v1590_v27 = vpop.f32.mrb[19].mxu0  ;;  %v1631_v28 = vpop.f32.mrb[19].mxu1  ;;  %v1657_v31 = vadd.f32 %v1646_v20, %v1627_v19  ;;  %v1710_v61 = vunpack.c.l.bf16 %v5466_v54  ;;  %v1961_v18 = vrot.slane %v1956_v58, %v6880_v4  ;;  %v8684_v54 = vld [vmem:[#allocation17_spill] sm:$0xff] }
 0x2f0   :  { %v1656_v30 = vadd.f32 %v1642_v17, %v1588_v23  ;;  %v1658_v59 = vadd.f32 %v1650_v34, %v1629_v33  ;;  %v1965_v21 = vrot.slane %v1956_v58, %v6885_v6  ;;  %v1969_v24 = vrot.slane %v1956_v58, %v6890_v9 }
 0x2f1   :  { %6277 = vtanh.f32 %v1655_v26 }
 0x2f2   :  { %6279 = vtanh.f32 %v1656_v30 }
 0x2f3   :  { %6281 = vtanh.f32 %v1657_v31 }
 0x2f4   :  { %6283 = vtanh.f32 %v1658_v59 }
 0x2fb   :  { %v6278_v0 = vpop.eup %6277 }
 0x2fc   :  { %v1663_v48 = vmul.f32 0.5, %v6278_v0  ;;  %v6280_v43 = vpop.eup %6279 }
 0x2fd   :  { %v1665_v15 = vmul.f32 0.5, %v6280_v43  ;;  %v6282_v41 = vpop.eup %6281 }
 0x2fe   :  { %v1664_v51 = vadd.f32 0.5, %v1663_v48  ;;  %v6284_v57 = vpop.eup %6283 }
 0x2ff   :  { %v1666_v52 = vadd.f32 0.5, %v1665_v15  ;;  %v1667_v17 = vmul.f32 0.5, %v6284_v57 }
 0x300   :  { %v1670_v1 = vmul.f32 %v6282_v41, %v1664_v51  ;;  %v1713_v51 = vunpack.c.h.bf16 %v5467_v55 }
 0x301   :  { %v1669_v53 = vmul.f32 %v1666_v52, %v8676_v38  ;;  %v1668_v31 = vadd.f32 0.5, %v1667_v17  ;;  %v1973_v52 = vrot.slane %v1956_v58, %v6895_v29  ;;  %v7544_v17 = vld [vmem:[%s8603_s2 + $0x44] ss:$16 sps:$4 sm:$0xff]  }
 0x303   :  { %v7433_v56 = vadd.f32 %v1670_v1, %v1669_v53 }
 0x305   :  { %6285 = vtanh.f32 %v7433_v56 }
 0x30c   :  { %v1908_v19 = vpop.f32.mrb[20].mxu0  ;;  %v1949_v20 = vpop.f32.mrb[20].mxu1 }
 0x30d   :  { %v1909_v22 = vadd.f32 %v1908_v19, %v1710_v61  ;;  %v1950_v23 = vadd.f32 %v1949_v20, %v1712_v62  ;;  %v1910_v25 = vpop.f32.mrb[21].mxu0  ;;  %v1951_v26 = vpop.f32.mrb[21].mxu1  ;;  %v7525_v61 = vld [vmem:[%s8603_s2 + $0x2c] ss:$16 sps:$4 sm:$0xff]   ;;  %v7530_v62 = vld [vmem:[%s8603_s2 + $0x20] ss:$16 sps:$4 sm:$0xff]  }
 0x30e   :  { %v1911_v27 = vadd.f32 %v1910_v25, %v1711_v63  ;;  %v1912_v28 = vpop.f32.mrb[22].mxu0  ;;  %v1953_v30 = vpop.f32.mrb[22].mxu1  ;;  %v1952_v41 = vadd.f32 %v1951_v26, %v1713_v51  ;;  %v7535_v63 = vld [vmem:[%s8603_s2 + $0x28] ss:$16 sps:$4 sm:$0xff]   ;;  %v7554_v19 = vld [vmem:[%s8603_s2 + $0x40] ss:$16 sps:$4 sm:$0xff]  }
 0x30f   :  { %v1978_v32 = vadd.f32 %v1961_v18, %v1909_v22  ;;  %v1913_v33 = vpop.f32.mrb[23].mxu0  ;;  %v1954_v34 = vpop.f32.mrb[23].mxu1  ;;  %v1980_v43 = vadd.f32 %v1969_v24, %v1950_v23  ;;  %v7549_v18 = vld [vmem:[%s8603_s2 + $0x4c] ss:$16 sps:$4 sm:$0xff]   ;;  %v7559_v20 = vld [vmem:[%s8603_s2 + $0x48] ss:$16 sps:$4 sm:$0xff]  }
 0x310   :  { %v6286_v59 = vpop.eup %6285  ;;  %v1979_v0 = vadd.f32 %v1965_v21, %v1911_v27  ;;  %v1981_v1 = vadd.f32 %v1973_v52, %v1952_v41  ;;  %v7568_v21 = vld [vmem:[%s8603_s2 + $0x64] ss:$16 sps:$4 sm:$0xff]   ;;  %v7573_v22 = vld [vmem:[%s8603_s2 + $0x6c] ss:$16 sps:$4 sm:$0xff]   ;;  %v7578_v23 = vld [vmem:[%s8603_s2 + $0x60] ss:$16 sps:$4 sm:$0xff]  }
 0x311   :  { %v1673_v48 = vmul.f32 %v6286_v59, %v1668_v31  ;;  %6287 = vtanh.f32 %v1978_v32  ;;  %v7583_v24 = vld [vmem:[%s8603_s2 + $0x68] ss:$16 sps:$4 sm:$0xff]   ;;  %v7592_v25 = vld [vmem:[%s8603_s2 + $0x84] ss:$16 sps:$4 sm:$0xff]   ;;  %v7597_v26 = vld [vmem:[%s8603_s2 + $0x8c] ss:$16 sps:$4 sm:$0xff]  }
 0x312   :  { %6289 = vtanh.f32 %v1979_v0  ;;  %v7602_v27 = vld [vmem:[%s8603_s2 + $0x80] ss:$16 sps:$4 sm:$0xff]   ;;  %v7607_v28 = vld [vmem:[%s8603_s2 + $0x88] ss:$16 sps:$4 sm:$0xff]   ;;  %v7616_v30 = vld [vmem:[%s8603_s2 + $0xa4] ss:$16 sps:$4 sm:$0xff]  }
 0x313   :  { %5500 = vst [vmem:[%s8609_s6 + $0x10] sm:$0xff] %v1673_v48  ;;  %v2004_v15 = vpack.c.bf16 %v1673_v48, %v1673_v48  ;;  %6291 = vtanh.f32 %v1980_v43  ;;  %v7621_v31 = vld [vmem:[%s8603_s2 + $0xac] ss:$16 sps:$4 sm:$0xff]   ;;  %v7626_v32 = vld [vmem:[%s8603_s2 + $0xa0] ss:$16 sps:$4 sm:$0xff]  }
 0x314   :  { %6293 = vtanh.f32 %v1981_v1  ;;  %v7631_v33 = vld [vmem:[%s8603_s2 + $0xa8] ss:$16 sps:$4 sm:$0xff]   ;;  %v7640_v34 = vld [vmem:[%s8603_s2 + $0xc4] ss:$16 sps:$4 sm:$0xff]   ;;  %v7645_v59 = vld [vmem:[%s8603_s2 + $0xc0] ss:$16 sps:$4 sm:$0xff]  }
 0x315   :  { %2234 = vmatmul.mubr.bf16.vlgmr.msra.gmra.mrb[24].mxu0 %v2004_v15  ;;  %2275 = vmatmul.mubr.bf16.vlgmr.msra.gmra.mrb[24].mxu1 %v2004_v15  ;;  %v7650_v0 = vld [vmem:[%s8603_s2 + $0xc8] ss:$16 sps:$4 sm:$0xff]   ;;  %v7655_v48 = vld [vmem:[%s8603_s2 + $0xcc] ss:$16 sps:$4 sm:$0xff]   ;;  %v7664_v43 = vld [vmem:[%s8603_s2 + $0xe4] ss:$16 sps:$4 sm:$0xff]  }
 0x316   :  { %2525 = vmatpush1.bf16.msra.mxu0 %v7193_v3  ;;  %2566 = vmatpush1.bf16.msra.mxu1 %v7198_v39  ;;  %v7669_v51 = vld [vmem:[%s8603_s2 + $0xec] ss:$16 sps:$4 sm:$0xff]   ;;  %v7674_v15 = vld [vmem:[%s8603_s2 + $0xe0] ss:$16 sps:$4 sm:$0xff]   ;;  %v7679_v41 = vld [vmem:[%s8603_s2 + $0xe8] ss:$16 sps:$4 sm:$0xff]  }
 0x317   :  { %2526 = vmatprep.subr.bf16.mxu0 %v7206_v10  ;;  %2567 = vmatprep.subr.bf16.mxu1 %v7211_v40  ;;  %8685 = vst [vmem:[#allocation6_spill] sm:$0xff] %v7679_v41  ;;  %v7688_v52 = vld [vmem:[%s8604_s3 + $0x4] ss:$16 sps:$4 sm:$0xff]   ;;  %v7693_v1 = vld [vmem:[%s8604_s3 + $0xc] ss:$16 sps:$4 sm:$0xff]  }
 0x318   :  { %2556 = vmatprep.mubr.bf16.mxu0 %v8658_v60  ;;  %2597 = vmatprep.mubr.bf16.mxu1 %v8658_v60  ;;  %8686 = vst [vmem:[#allocation7_spill] sm:$0xff] %v7688_v52  ;;  %8687 = vst [vmem:[#allocation8_spill] sm:$0xff] %v7693_v1 }
 0x31a   :  { %2527 = vmatpush1.bf16.msra.mxu0 %v7219_v46  ;;  %2568 = vmatpush1.bf16.msra.mxu1 %v7224_v47 }
 0x31b   :  { %v6288_v38 = vpop.eup %6287  ;;  %2528 = vmatprep.subr.bf16.mxu0 %v7231_v44  ;;  %2569 = vmatprep.subr.bf16.mxu1 %v7236_v8 }
 0x31c   :  { %v1986_v3 = vmul.f32 0.5, %v6288_v38  ;;  %v6290_v39 = vpop.eup %6289  ;;  %v5502_v38 = vld [vmem:[%s8605_s0 + $0x30] sm:$0xff] }
 0x31d   :  { %v1988_v10 = vmul.f32 0.5, %v6290_v39  ;;  %v6292_v40 = vpop.eup %6291  ;;  %v2283_v39 = vld [vmem:[%s8606_s4] sm:$0xf] }
 0x31e   :  { %v1987_v53 = vadd.f32 0.5, %v1986_v3  ;;  %2529 = vmatpush1.bf16.msra.mxu0 %v7245_v49  ;;  %2570 = vmatpush1.bf16.msra.mxu1 %v7250_v50  ;;  %v8677_v49 = vld [vmem:[#allocation10_spill] sm:$0xff]  ;;  %v8678_v50 = vld [vmem:[#allocation11_spill] sm:$0xff]  ;;  %v5503_v3 = vld [vmem:[%s8605_s0 + $0x38] sm:$0xff] }
 0x31f   :  { %2530 = vmatprep.subr.bf16.mxu0 %v7257_v11  ;;  %2571 = vmatprep.subr.bf16.mxu1 %v7262_v2  ;;  %v1989_v46 = vadd.f32 0.5, %v1988_v10  ;;  %v8679_v11 = vld [vmem:[#allocation12_spill] sm:$0xff]  ;;  %v6294_v2 = vpop.eup %6293  ;;  %v2039_v10 = vunpack.c.l.bf16 %v5503_v3 }
 0x320   :  { %v1993_v47 = vmul.f32 %v6292_v40, %v1987_v53  ;;  %v2037_v53 = vunpack.c.l.bf16 %v5502_v38  ;;  %v2038_v40 = vunpack.c.h.bf16 %v5502_v38  ;;  %v2040_v38 = vunpack.c.h.bf16 %v5503_v3  ;;  %v5536_v3 = vld [vmem:[%s8607_s1 + $0x30] sm:$0xff] }
 0x321   :  { %v1992_v44 = vmul.f32 %v1989_v46, %v7313_v5  ;;  %v8682_v5 = vld [vmem:[#allocation15_spill] sm:$0xff]  ;;  %v2288_v46 = vrot.slane %v2283_v39, %v6880_v4 }
 0x322   :  { %2531 = vmatpush1.bf16.msra.mxu0 %v7269_v42  ;;  %2572 = vmatpush1.bf16.msra.mxu1 %v7274_v35  ;;  %v8680_v42 = vld [vmem:[#allocation13_spill] sm:$0xff]  ;;  %v8681_v35 = vld [vmem:[#allocation14_spill] sm:$0xff] }
 0x323   :  { %2532 = vmatprep.subr.bf16.mxu0 %v7281_v16  ;;  %2573 = vmatprep.subr.bf16.mxu1 %v7286_v12  ;;  %v7471_v8 = vadd.f32 %v1993_v47, %v1992_v44  ;;  %v1990_v16 = vmul.f32 0.5, %v6294_v2  ;;  %v8683_v12 = vld [vmem:[#allocation16_spill] sm:$0xff]  ;;  %v2296_v2 = vrot.slane %v2283_v39, %v6890_v9 }
 0x325   :  { %6295 = vtanh.f32 %v7471_v8 }
 0x326   :  { %2533 = vmatpush1.bf16.msra.mxu0 %v7294_v45  ;;  %2574 = vmatpush1.bf16.msra.mxu1 %v8677_v49  ;;  %v1991_v45 = vadd.f32 0.5, %v1990_v16  ;;  %v2292_v49 = vrot.slane %v2283_v39, %v6885_v6 }
 0x327   :  { %2534 = vmatprep.subr.bf16.mxu0 %v8678_v50  ;;  %2575 = vmatprep.subr.bf16.mxu1 %v8679_v11 }
 0x32a   :  { %2535 = vmatpush1.bf16.msra.mxu0 %v8680_v42  ;;  %2576 = vmatpush1.bf16.msra.mxu1 %v8681_v35 }
 0x32b   :  { %2536 = vmatprep.subr.bf16.mxu0 %v8682_v5  ;;  %2577 = vmatprep.subr.bf16.mxu1 %v8683_v12 }
 0x32e   :  { %2537 = vmatpush1.bf16.msra.mxu0 %v7345_v7  ;;  %2578 = vmatpush1.bf16.msra.mxu1 %v8684_v54  ;;  %v7511_v7 = vld [vmem:[%s8603_s2 + $0x8] ss:$16 sps:$4 sm:$0xff]  }
 0x32f   :  { %2538 = vmatprep.subr.bf16.mxu0 %v7357_v14  ;;  %2579 = vmatprep.subr.bf16.mxu1 %v7362_v37  ;;  %v6296_v55 = vpop.eup %6295  ;;  %v7496_v14 = vld [vmem:[%s8603_s2 + $0x4] ss:$16 sps:$4 sm:$0xff]   ;;  %v7501_v37 = vld [vmem:[%s8603_s2 + $0xc] ss:$16 sps:$4 sm:$0xff]  }
 0x330   :  { %v1996_v57 = vmul.f32 %v6296_v55, %v1991_v45 }
 0x332   :  { %2539 = vmatpush1.bf16.msra.mxu0 %v7369_v13  ;;  %2580 = vmatpush1.bf16.msra.mxu1 %v7374_v36  ;;  %5501 = vst [vmem:[%s8610_s7 + $0x28] sm:$0xff] %v1996_v57  ;;  %v2327_v58 = vpack.c.bf16 %v1996_v57, %v1996_v57  ;;  %v7506_v36 = vld [vmem:[%s8603_s2] ss:$16 sps:$4 sm:$0xff]   ;;  %v7520_v13 = vld [vmem:[%s8603_s2 + $0x24] ss:$16 sps:$4 sm:$0xff]  }
 0x333   :  { %2851 = vmatprep.subr.bf16.mxu0 %v7496_v14  ;;  %2892 = vmatprep.subr.bf16.mxu1 %v7501_v37 }
 0x335   :  { %2557 = vmatmul.mubr.bf16.vlgmr.msra.gmra.mrb[28].mxu0 %v2327_v58  ;;  %2598 = vmatmul.mubr.bf16.vlgmr.msra.gmra.mrb[28].mxu1 %v2327_v58 }
 0x336   :  { %2883 = vmatprep.mubr.bf16.mxu0 %v8658_v60  ;;  %2924 = vmatprep.mubr.bf16.mxu1 %v8658_v60 }
 0x337   :  { %2852 = vmatpush1.bf16.msra.mxu0 %v7506_v36  ;;  %2893 = vmatpush1.bf16.msra.mxu1 %v7511_v7 }
 0x338   :  { %2853 = vmatprep.subr.bf16.mxu0 %v7520_v13  ;;  %2894 = vmatprep.subr.bf16.mxu1 %v7525_v61 }
 0x33b   :  { %2854 = vmatpush1.bf16.msra.mxu0 %v7530_v62  ;;  %2895 = vmatpush1.bf16.msra.mxu1 %v7535_v63 }
 0x33c   :  { %2855 = vmatprep.subr.bf16.mxu0 %v7544_v17  ;;  %2896 = vmatprep.subr.bf16.mxu1 %v7549_v18 }
 0x33f   :  { %2856 = vmatpush1.bf16.msra.mxu0 %v7554_v19  ;;  %2897 = vmatpush1.bf16.msra.mxu1 %v7559_v20 }
 0x340   :  { %2857 = vmatprep.subr.bf16.mxu0 %v7568_v21  ;;  %2898 = vmatprep.subr.bf16.mxu1 %v7573_v22 }
 0x343   :  { %2858 = vmatpush1.bf16.msra.mxu0 %v7578_v23  ;;  %2899 = vmatpush1.bf16.msra.mxu1 %v7583_v24 }
 0x344   :  { %2859 = vmatprep.subr.bf16.mxu0 %v7592_v25  ;;  %2900 = vmatprep.subr.bf16.mxu1 %v7597_v26 }
 0x347   :  { %2860 = vmatpush1.bf16.msra.mxu0 %v7602_v27  ;;  %2901 = vmatpush1.bf16.msra.mxu1 %v7607_v28 }
 0x348   :  { %2861 = vmatprep.subr.bf16.mxu0 %v7616_v30  ;;  %2902 = vmatprep.subr.bf16.mxu1 %v7621_v31 }
 0x34b   :  { %2862 = vmatpush1.bf16.msra.mxu0 %v7626_v32  ;;  %2903 = vmatpush1.bf16.msra.mxu1 %v7631_v33 }
 0x34c   :  { %2863 = vmatprep.subr.bf16.mxu0 %v7640_v34  ;;  %2904 = vmatprep.subr.bf16.mxu1 %v7655_v48 }
 0x34f   :  { %2864 = vmatpush1.bf16.msra.mxu0 %v7645_v59  ;;  %2905 = vmatpush1.bf16.msra.mxu1 %v7650_v0 }
 0x350   :  { %2865 = vmatprep.subr.bf16.mxu0 %v7664_v43  ;;  %2906 = vmatprep.subr.bf16.mxu1 %v7669_v51 }
 0x353   :  { %2866 = vmatpush1.bf16.msra.mxu0 %v7674_v15  ;;  %2907 = vmatpush1.bf16.msra.mxu1 %v7679_v41 }
 0x354   :  { %3174 = vmatprep.subr.bf16.mxu0 %v7688_v52  ;;  %3215 = vmatprep.subr.bf16.mxu1 %v7693_v1 }
 0x3e8   :  { %v2235_v47 = vpop.f32.mrb[24].mxu0  ;;  %v2276_v44 = vpop.f32.mrb[24].mxu1 }
 0x3e9   :  { %v2236_v50 = vadd.f32 %v2235_v47, %v2037_v53  ;;  %v2277_v11 = vadd.f32 %v2276_v44, %v2039_v10  ;;  %v2237_v42 = vpop.f32.mrb[25].mxu0  ;;  %v2278_v35 = vpop.f32.mrb[25].mxu1  ;;  %v2300_v53 = vrot.slane %v2283_v39, %v6895_v29 }
 0x3ea   :  { %v2238_v16 = vadd.f32 %v2237_v42, %v2038_v40  ;;  %v2239_v5 = vpop.f32.mrb[26].mxu0  ;;  %v2280_v12 = vpop.f32.mrb[26].mxu1  ;;  %v2279_v1 = vadd.f32 %v2278_v35, %v2040_v38 }
 0x3eb   :  { %v2305_v54 = vadd.f32 %v2288_v46, %v2236_v50  ;;  %v2240_v45 = vpop.f32.mrb[27].mxu0  ;;  %v2281_v55 = vpop.f32.mrb[27].mxu1  ;;  %v2307_v58 = vadd.f32 %v2296_v2, %v2277_v11 }
 0x3ec   :  { %v2306_v57 = vadd.f32 %v2292_v49, %v2238_v16  ;;  %v2308_v10 = vadd.f32 %v2300_v53, %v2279_v1  ;;  %v5537_v1 = vld [vmem:[%s8607_s1 + $0x38] sm:$0xff] }
 0x3ed   :  { %6297 = vtanh.f32 %v2305_v54  ;;  %v2362_v11 = vunpack.c.l.bf16 %v5537_v1 }
 0x3ee   :  { %6299 = vtanh.f32 %v2306_v57 }
 0x3ef   :  { %6301 = vtanh.f32 %v2307_v58 }
 0x3f0   :  { %6303 = vtanh.f32 %v2308_v10 }
 0x3f7   :  { %v6298_v47 = vpop.eup %6297 }
 0x3f8   :  { %v2313_v44 = vmul.f32 0.5, %v6298_v47  ;;  %v6300_v52 = vpop.eup %6299 }
 0x3f9   :  { %v2315_v40 = vmul.f32 0.5, %v6300_v52  ;;  %v6302_v42 = vpop.eup %6301  ;;  %v2606_v52 = vld [vmem:[%s8608_s5] sm:$0xf] }
 0x3fa   :  { %v2314_v41 = vadd.f32 0.5, %v2313_v44  ;;  %v6304_v39 = vpop.eup %6303  ;;  %v2611_v35 = vrot.slane %v2606_v52, %v6880_v4  ;;  %v2615_v54 = vrot.slane %v2606_v52, %v6885_v6  ;;  %v2619_v57 = vrot.slane %v2606_v52, %v6890_v9 }
 0x3fb   :  { %v2316_v46 = vadd.f32 0.5, %v2315_v40  ;;  %v2317_v2 = vmul.f32 0.5, %v6304_v39 }
 0x3fc   :  { %v2320_v50 = vmul.f32 %v6302_v42, %v2314_v41  ;;  %v2360_v41 = vunpack.c.l.bf16 %v5536_v3 }
 0x3fd   :  { %v2319_v49 = vmul.f32 %v2316_v46, %v7433_v56  ;;  %v2361_v56 = vunpack.c.h.bf16 %v5536_v3  ;;  %v2318_v44 = vadd.f32 0.5, %v2317_v2  ;;  %v7747_v2 = vld [vmem:[%s8604_s3 + $0x2c] ss:$16 sps:$4 sm:$0xff]  }
 0x3ff   :  { %v7711_v16 = vadd.f32 %v2320_v50, %v2319_v49 }
 0x401   :  { %8688 = vst [vmem:[#allocation9_spill] sm:$0xff] %v7711_v16  ;;  %6305 = vtanh.f32 %v7711_v16  ;;  %v2363_v16 = vunpack.c.h.bf16 %v5537_v1  ;;  %v7742_v1 = vld [vmem:[%s8604_s3 + $0x24] ss:$16 sps:$4 sm:$0xff]  }
 0x408   :  { %v2558_v5 = vpop.f32.mrb[28].mxu0  ;;  %v2599_v12 = vpop.f32.mrb[28].mxu1 }
 0x409   :  { %v2559_v45 = vadd.f32 %v2558_v5, %v2360_v41  ;;  %v2600_v55 = vadd.f32 %v2599_v12, %v2362_v11  ;;  %v2560_v58 = vpop.f32.mrb[29].mxu0  ;;  %v2601_v38 = vpop.f32.mrb[29].mxu1  ;;  %v7729_v41 = vld [vmem:[%s8604_s3] ss:$16 sps:$4 sm:$0xff]   ;;  %v7734_v11 = vld [vmem:[%s8604_s3 + $0x8] ss:$16 sps:$4 sm:$0xff]   ;;  %v2623_v5 = vrot.slane %v2606_v52, %v6895_v29 }
 0x40a   :  { %v2561_v53 = vadd.f32 %v2560_v58, %v2361_v56  ;;  %v2562_v10 = vpop.f32.mrb[30].mxu0  ;;  %v2603_v47 = vpop.f32.mrb[30].mxu1  ;;  %v7755_v12 = vld [vmem:[%s8604_s3 + $0x20] ss:$16 sps:$4 sm:$0xff]   ;;  %v7772_v52 = vld [vmem:[%s8604_s3 + $0x4c] ss:$16 sps:$4 sm:$0xff]  }
 0x40b   :  { %v2628_v40 = vadd.f32 %v2611_v35, %v2559_v45  ;;  %v2563_v42 = vpop.f32.mrb[31].mxu0  ;;  %v2604_v46 = vpop.f32.mrb[31].mxu1  ;;  %v2630_v39 = vadd.f32 %v2619_v57, %v2600_v55  ;;  %v2602_v35 = vadd.f32 %v2601_v38, %v2363_v16  ;;  %v7767_v16 = vld [vmem:[%s8604_s3 + $0x44] ss:$16 sps:$4 sm:$0xff]   ;;  %v7781_v55 = vld [vmem:[%s8604_s3 + $0x40] ss:$16 sps:$4 sm:$0xff]  }
 0x40c   :  { %v6306_v50 = vpop.eup %6305  ;;  %v2629_v49 = vadd.f32 %v2615_v54, %v2561_v53  ;;  %v7760_v54 = vld [vmem:[%s8604_s3 + $0x28] ss:$16 sps:$4 sm:$0xff]   ;;  %v7793_v38 = vld [vmem:[%s8604_s3 + $0x64] ss:$16 sps:$4 sm:$0xff]   ;;  %v7798_v53 = vld [vmem:[%s8604_s3 + $0x6c] ss:$16 sps:$4 sm:$0xff]  }
 0x40d   :  { %v2323_v3 = vmul.f32 %v6306_v50, %v2318_v44  ;;  %6307 = vtanh.f32 %v2628_v40  ;;  %v2631_v45 = vadd.f32 %v2623_v5, %v2602_v35  ;;  %v7786_v57 = vld [vmem:[%s8604_s3 + $0x48] ss:$16 sps:$4 sm:$0xff]   ;;  %v7805_v42 = vld [vmem:[%s8604_s3 + $0x60] ss:$16 sps:$4 sm:$0xff]  }
 0x40e   :  { %6309 = vtanh.f32 %v2629_v49  ;;  %v7810_v46 = vld [vmem:[%s8604_s3 + $0x68] ss:$16 sps:$4 sm:$0xff]   ;;  %v7817_v49 = vld [vmem:[%s8604_s3 + $0x84] ss:$16 sps:$4 sm:$0xff]   ;;  %v7830_v5 = vld [vmem:[%s8604_s3 + $0x80] ss:$16 sps:$4 sm:$0xff]  }
 0x40f   :  { %5570 = vst [vmem:[%s8609_s6 + $0x18] sm:$0xff] %v2323_v3  ;;  %v2654_v56 = vpack.c.bf16 %v2323_v3, %v2323_v3  ;;  %6311 = vtanh.f32 %v2630_v39  ;;  %v7822_v3 = vld [vmem:[%s8604_s3 + $0x8c] ss:$16 sps:$4 sm:$0xff]  }
 0x410   :  { %6313 = vtanh.f32 %v2631_v45  ;;  %v7835_v45 = vld [vmem:[%s8604_s3 + $0x88] ss:$16 sps:$4 sm:$0xff]  }
 0x411   :  { %2884 = vmatmul.mubr.bf16.vlgmr.msra.gmra.mrb[32].mxu0 %v2654_v56  ;;  %2925 = vmatmul.mubr.bf16.vlgmr.msra.gmra.mrb[32].mxu1 %v2654_v56  ;;  %8689 = vst [vmem:[#allocation10_spill] sm:$0xff] %v7835_v45 }
 0x412   :  { %3175 = vmatpush1.bf16.msra.mxu0 %v7729_v41  ;;  %3216 = vmatpush1.bf16.msra.mxu1 %v7734_v11 }
 0x413   :  { %3176 = vmatprep.subr.bf16.mxu0 %v7742_v1  ;;  %3217 = vmatprep.subr.bf16.mxu1 %v7747_v2 }
 0x414   :  { %3206 = vmatprep.mubr.bf16.mxu0 %v8658_v60  ;;  %3247 = vmatprep.mubr.bf16.mxu1 %v8658_v60 }
 0x416   :  { %3177 = vmatpush1.bf16.msra.mxu0 %v7755_v12  ;;  %3218 = vmatpush1.bf16.msra.mxu1 %v7760_v54 }
 0x417   :  { %v6308_v58 = vpop.eup %6307  ;;  %3178 = vmatprep.subr.bf16.mxu0 %v7767_v16  ;;  %3219 = vmatprep.subr.bf16.mxu1 %v7772_v52 }
 0x418   :  { %v2636_v10 = vmul.f32 0.5, %v6308_v58  ;;  %v6310_v47 = vpop.eup %6309  ;;  %v7847_v58 = vld [vmem:[%s8604_s3 + $0xac] ss:$16 sps:$4 sm:$0xff]  }
 0x419   :  { %v2638_v40 = vmul.f32 0.5, %v6310_v47  ;;  %v6312_v50 = vpop.eup %6311  ;;  %8691 = vst [vmem:[#allocation12_spill] sm:$0xff] %v7847_v58  ;;  %v7857_v47 = vld [vmem:[%s8604_s3 + $0xa0] ss:$16 sps:$4 sm:$0xff]  }
 0x41a   :  { %v2637_v44 = vadd.f32 0.5, %v2636_v10  ;;  %3179 = vmatpush1.bf16.msra.mxu0 %v7781_v55  ;;  %3220 = vmatpush1.bf16.msra.mxu1 %v7786_v57  ;;  %8692 = vst [vmem:[#allocation13_spill] sm:$0xff] %v7857_v47 }
 0x41b   :  { %3180 = vmatprep.subr.bf16.mxu0 %v7793_v38  ;;  %3221 = vmatprep.subr.bf16.mxu1 %v7798_v53  ;;  %v2639_v39 = vadd.f32 0.5, %v2638_v40  ;;  %v7869_v40 = vld [vmem:[%s8604_s3 + $0xc4] ss:$16 sps:$4 sm:$0xff]  }
 0x41c   :  { %v2643_v56 = vmul.f32 %v6312_v50, %v2637_v44  ;;  %v7862_v44 = vld [vmem:[%s8604_s3 + $0xa8] ss:$16 sps:$4 sm:$0xff]   ;;  %8694 = vst [vmem:[#allocation15_spill] sm:$0xff] %v7869_v40  ;;  %v7874_v50 = vld [vmem:[%s8604_s3 + $0xcc] ss:$16 sps:$4 sm:$0xff]  }
 0x41d   :  { %v2642_v35 = vmul.f32 %v2639_v39, %v7471_v8  ;;  %v7842_v8 = vld [vmem:[%s8604_s3 + $0xa4] ss:$16 sps:$4 sm:$0xff]   ;;  %8693 = vst [vmem:[#allocation14_spill] sm:$0xff] %v7862_v44  ;;  %8695 = vst [vmem:[#allocation16_spill] sm:$0xff] %v7874_v50  ;;  %v6314_v39 = vpop.eup %6313 }
 0x41e   :  { %3181 = vmatpush1.bf16.msra.mxu0 %v7805_v42  ;;  %3222 = vmatpush1.bf16.msra.mxu1 %v7810_v46  ;;  %8690 = vst [vmem:[#allocation11_spill] sm:$0xff] %v7842_v8 }
 0x41f   :  { %3182 = vmatprep.subr.bf16.mxu0 %v7817_v49  ;;  %3223 = vmatprep.subr.bf16.mxu1 %v7822_v3  ;;  %v7849_v10 = vadd.f32 %v2643_v56, %v2642_v35  ;;  %v7881_v56 = vld [vmem:[%s8604_s3 + $0xc0] ss:$16 sps:$4 sm:$0xff]   ;;  %v7886_v35 = vld [vmem:[%s8604_s3 + $0xc8] ss:$16 sps:$4 sm:$0xff]  }
 0x420   :  { %8696 = vst [vmem:[#allocation17_spill] sm:$0xff] %v7886_v35 }
 0x421   :  { %6315 = vtanh.f32 %v7849_v10 }
 0x422   :  { %3183 = vmatpush1.bf16.msra.mxu0 %v7830_v5  ;;  %3224 = vmatpush1.bf16.msra.mxu1 %v7835_v45 }
 0x423   :  { %3184 = vmatprep.subr.bf16.mxu0 %v7842_v8  ;;  %3225 = vmatprep.subr.bf16.mxu1 %v7847_v58  ;;  %v2640_v58 = vmul.f32 0.5, %v6314_v39  ;;  %v7905_v39 = vld [vmem:[%s8604_s3 + $0xe0] ss:$16 sps:$4 sm:$0xff]  }
 0x426   :  { %3185 = vmatpush1.bf16.msra.mxu0 %v7857_v47  ;;  %3226 = vmatpush1.bf16.msra.mxu1 %v7862_v44  ;;  %v7893_v47 = vld [vmem:[%s8604_s3 + $0xe4] ss:$16 sps:$4 sm:$0xff]   ;;  %v7898_v44 = vld [vmem:[%s8604_s3 + $0xec] ss:$16 sps:$4 sm:$0xff]  }
 0x427   :  { %3186 = vmatprep.subr.bf16.mxu0 %v7869_v40  ;;  %3227 = vmatprep.subr.bf16.mxu1 %v7874_v50  ;;  %v7910_v50 = vld [vmem:[%s8604_s3 + $0xe8] ss:$16 sps:$4 sm:$0xff]   ;;  %v2641_v40 = vadd.f32 0.5, %v2640_v58 }
 0x42a   :  { %3187 = vmatpush1.bf16.msra.mxu0 %v7881_v56  ;;  %3228 = vmatpush1.bf16.msra.mxu1 %v7886_v35 }
 0x42b   :  { %3188 = vmatprep.subr.bf16.mxu0 %v7893_v47  ;;  %3229 = vmatprep.subr.bf16.mxu1 %v7898_v44  ;;  %v6316_v8 = vpop.eup %6315 }
 0x42c   :  { %v2646_v45 = vmul.f32 %v6316_v8, %v2641_v40 }
 0x42e   :  { %3189 = vmatpush1.bf16.msra.mxu0 %v7905_v39  ;;  %3230 = vmatpush1.bf16.msra.mxu1 %v7910_v50  ;;  %5571 = vst [vmem:[%s8610_s7 + $0x20] sm:$0xff] %v2646_v45  ;;  %v2977_v35 = vpack.c.bf16 %v2646_v45, %v2646_v45 }
 0x42f   :  { %3501 = vmatprep.subr.bf16.mxu0 %v7496_v14  ;;  %3542 = vmatprep.subr.bf16.mxu1 %v7501_v37  ;;  %v8697_v14 = vld [vmem:[#allocation6_spill] sm:$0xff]  ;;  %v8698_v37 = vld [vmem:[#allocation7_spill] sm:$0xff] }
 0x431   :  { %3207 = vmatmul.mubr.bf16.vlgmr.msra.gmra.mrb[36].mxu0 %v2977_v35  ;;  %3248 = vmatmul.mubr.bf16.vlgmr.msra.gmra.mrb[36].mxu1 %v2977_v35 }
 0x432   :  { %3502 = vmatpush1.bf16.msra.mxu0 %v7506_v36  ;;  %3543 = vmatpush1.bf16.msra.mxu1 %v7511_v7  ;;  %v8699_v36 = vld [vmem:[#allocation8_spill] sm:$0xff]  ;;  %v5572_v7 = vld [vmem:[%s8605_s0 + $0x40] sm:$0xff] }
 0x433   :  { %3503 = vmatprep.subr.bf16.mxu0 %v7520_v13  ;;  %3544 = vmatprep.subr.bf16.mxu1 %v7525_v61  ;;  %v5573_v13 = vld [vmem:[%s8605_s0 + $0x48] sm:$0xff]  ;;  %v2933_v61 = vld [vmem:[%s8606_s4] sm:$0xf] }
 0x434   :  { %3533 = vmatprep.mubr.bf16.mxu0 %v8658_v60  ;;  %3574 = vmatprep.mubr.bf16.mxu1 %v8658_v60 }
 0x436   :  { %3504 = vmatpush1.bf16.msra.mxu0 %v7530_v62  ;;  %3545 = vmatpush1.bf16.msra.mxu1 %v7535_v63  ;;  %v2687_v62 = vunpack.c.l.bf16 %v5572_v7  ;;  %v2689_v63 = vunpack.c.l.bf16 %v5573_v13 }
 0x437   :  { %3505 = vmatprep.subr.bf16.mxu0 %v7544_v17  ;;  %3546 = vmatprep.subr.bf16.mxu1 %v7549_v18  ;;  %v2688_v17 = vunpack.c.h.bf16 %v5572_v7  ;;  %v2938_v18 = vrot.slane %v2933_v61, %v6880_v4 }
 0x43a   :  { %3506 = vmatpush1.bf16.msra.mxu0 %v7554_v19  ;;  %3547 = vmatpush1.bf16.msra.mxu1 %v7559_v20 }
 0x43b   :  { %3507 = vmatprep.subr.bf16.mxu0 %v7568_v21  ;;  %3548 = vmatprep.subr.bf16.mxu1 %v7573_v22  ;;  %v2942_v21 = vrot.slane %v2933_v61, %v6885_v6 }
 0x43e   :  { %3508 = vmatpush1.bf16.msra.mxu0 %v7578_v23  ;;  %3549 = vmatpush1.bf16.msra.mxu1 %v7583_v24  ;;  %v2946_v24 = vrot.slane %v2933_v61, %v6890_v9 }
 0x43f   :  { %3509 = vmatprep.subr.bf16.mxu0 %v7592_v25  ;;  %3550 = vmatprep.subr.bf16.mxu1 %v7597_v26 }
 0x442   :  { %3510 = vmatpush1.bf16.msra.mxu0 %v7602_v27  ;;  %3551 = vmatpush1.bf16.msra.mxu1 %v7607_v28 }
 0x443   :  { %3511 = vmatprep.subr.bf16.mxu0 %v7616_v30  ;;  %3552 = vmatprep.subr.bf16.mxu1 %v7621_v31 }
 0x446   :  { %3512 = vmatpush1.bf16.msra.mxu0 %v7626_v32  ;;  %3553 = vmatpush1.bf16.msra.mxu1 %v7631_v33 }
 0x447   :  { %3513 = vmatprep.subr.bf16.mxu0 %v7640_v34  ;;  %3554 = vmatprep.subr.bf16.mxu1 %v7655_v48 }
 0x44a   :  { %3514 = vmatpush1.bf16.msra.mxu0 %v7645_v59  ;;  %3555 = vmatpush1.bf16.msra.mxu1 %v7650_v0  ;;  %v2690_v0 = vunpack.c.h.bf16 %v5573_v13  ;;  %v5606_v13 = vld [vmem:[%s8607_s1 + $0x40] sm:$0xff] }
 0x44b   :  { %3515 = vmatprep.subr.bf16.mxu0 %v7664_v43  ;;  %3556 = vmatprep.subr.bf16.mxu1 %v7669_v51  ;;  %v2950_v43 = vrot.slane %v2933_v61, %v6895_v29  ;;  %v5607_v61 = vld [vmem:[%s8607_s1 + $0x48] sm:$0xff] }
 0x44e   :  { %3516 = vmatpush1.bf16.msra.mxu0 %v7674_v15  ;;  %3557 = vmatpush1.bf16.msra.mxu1 %v8697_v14 }
 0x44f   :  { %3824 = vmatprep.subr.bf16.mxu0 %v8698_v37  ;;  %3865 = vmatprep.subr.bf16.mxu1 %v8699_v36  ;;  %v8700_v36 = vld [vmem:[#allocation9_spill] sm:$0xff] }
 0x4e4   :  { %v2885_v19 = vpop.f32.mrb[32].mxu0  ;;  %v2926_v20 = vpop.f32.mrb[32].mxu1 }
 0x4e5   :  { %v2886_v22 = vadd.f32 %v2885_v19, %v2687_v62  ;;  %v2927_v23 = vadd.f32 %v2926_v20, %v2689_v63  ;;  %v2887_v25 = vpop.f32.mrb[33].mxu0  ;;  %v2928_v26 = vpop.f32.mrb[33].mxu1  ;;  %v3012_v19 = vunpack.c.l.bf16 %v5607_v61  ;;  %v3011_v20 = vunpack.c.h.bf16 %v5606_v13 }
 0x4e6   :  { %v2888_v27 = vadd.f32 %v2887_v25, %v2688_v17  ;;  %v2889_v28 = vpop.f32.mrb[34].mxu0  ;;  %v2930_v30 = vpop.f32.mrb[34].mxu1  ;;  %v2929_v48 = vadd.f32 %v2928_v26, %v2690_v0  ;;  %v3256_v17 = vld [vmem:[%s8608_s5] sm:$0xf] }
 0x4e7   :  { %v2955_v31 = vadd.f32 %v2938_v18, %v2886_v22  ;;  %v2890_v32 = vpop.f32.mrb[35].mxu0  ;;  %v2931_v33 = vpop.f32.mrb[35].mxu1  ;;  %v2957_v59 = vadd.f32 %v2946_v24, %v2927_v23  ;;  %v3010_v18 = vunpack.c.l.bf16 %v5606_v13  ;;  %v3261_v22 = vrot.slane %v3256_v17, %v6880_v4  ;;  %v8708_v13 = vld [vmem:[#allocation17_spill] sm:$0xff] }
 0x4e8   :  { %v2956_v34 = vadd.f32 %v2942_v21, %v2888_v27  ;;  %v2958_v51 = vadd.f32 %v2950_v43, %v2929_v48  ;;  %v3265_v25 = vrot.slane %v3256_v17, %v6885_v6  ;;  %v3269_v28 = vrot.slane %v3256_v17, %v6890_v9 }
 0x4e9   :  { %6317 = vtanh.f32 %v2955_v31 }
 0x4ea   :  { %6319 = vtanh.f32 %v2956_v34 }
 0x4eb   :  { %6321 = vtanh.f32 %v2957_v59 }
 0x4ec   :  { %6323 = vtanh.f32 %v2958_v51 }
 0x4f3   :  { %v6318_v15 = vpop.eup %6317 }
 0x4f4   :  { %v2963_v45 = vmul.f32 0.5, %v6318_v15  ;;  %v6320_v8 = vpop.eup %6319 }
 0x4f5   :  { %v2965_v40 = vmul.f32 0.5, %v6320_v8  ;;  %v6322_v35 = vpop.eup %6321 }
 0x4f6   :  { %v2964_v58 = vadd.f32 0.5, %v2963_v45  ;;  %v6324_v63 = vpop.eup %6323 }
 0x4f7   :  { %v2966_v14 = vadd.f32 0.5, %v2965_v40  ;;  %v2967_v21 = vmul.f32 0.5, %v6324_v63 }
 0x4f8   :  { %v2970_v37 = vmul.f32 %v6322_v35, %v2964_v58  ;;  %v3013_v58 = vunpack.c.h.bf16 %v5607_v61 }
 0x4f9   :  { %v2969_v7 = vmul.f32 %v2966_v14, %v8700_v36  ;;  %v2968_v59 = vadd.f32 0.5, %v2967_v21  ;;  %v3273_v14 = vrot.slane %v3256_v17, %v6895_v29  ;;  %v8080_v21 = vld [vmem:[%s8603_s2 + $0x44] ss:$16 sps:$4 sm:$0xff]  }
 0x4fb   :  { %v7969_v62 = vadd.f32 %v2970_v37, %v2969_v7 }
 0x4fd   :  { %6325 = vtanh.f32 %v7969_v62 }
 0x504   :  { %v3208_v23 = vpop.f32.mrb[36].mxu0  ;;  %v3249_v24 = vpop.f32.mrb[36].mxu1 }
 0x505   :  { %v3209_v26 = vadd.f32 %v3208_v23, %v3010_v18  ;;  %v3250_v27 = vadd.f32 %v3249_v24, %v3012_v19  ;;  %v3210_v30 = vpop.f32.mrb[37].mxu0  ;;  %v3251_v31 = vpop.f32.mrb[37].mxu1  ;;  %v8061_v18 = vld [vmem:[%s8603_s2 + $0x2c] ss:$16 sps:$4 sm:$0xff]   ;;  %v8066_v19 = vld [vmem:[%s8603_s2 + $0x20] ss:$16 sps:$4 sm:$0xff]  }
 0x506   :  { %v3211_v32 = vadd.f32 %v3210_v30, %v3011_v20  ;;  %v3212_v33 = vpop.f32.mrb[38].mxu0  ;;  %v3253_v34 = vpop.f32.mrb[38].mxu1  ;;  %v3252_v35 = vadd.f32 %v3251_v31, %v3013_v58  ;;  %v8071_v20 = vld [vmem:[%s8603_s2 + $0x28] ss:$16 sps:$4 sm:$0xff]   ;;  %v8090_v23 = vld [vmem:[%s8603_s2 + $0x40] ss:$16 sps:$4 sm:$0xff]  }
 0x507   :  { %v3278_v0 = vadd.f32 %v3261_v22, %v3209_v26  ;;  %v3213_v48 = vpop.f32.mrb[39].mxu0  ;;  %v3254_v43 = vpop.f32.mrb[39].mxu1  ;;  %v3280_v8 = vadd.f32 %v3269_v28, %v3250_v27  ;;  %v8085_v22 = vld [vmem:[%s8603_s2 + $0x4c] ss:$16 sps:$4 sm:$0xff]   ;;  %v8095_v24 = vld [vmem:[%s8603_s2 + $0x48] ss:$16 sps:$4 sm:$0xff]  }
 0x508   :  { %v6326_v51 = vpop.eup %6325  ;;  %v3279_v15 = vadd.f32 %v3265_v25, %v3211_v32  ;;  %v3281_v37 = vadd.f32 %v3273_v14, %v3252_v35  ;;  %v8104_v25 = vld [vmem:[%s8603_s2 + $0x64] ss:$16 sps:$4 sm:$0xff]   ;;  %v8109_v26 = vld [vmem:[%s8603_s2 + $0x6c] ss:$16 sps:$4 sm:$0xff]   ;;  %v8114_v27 = vld [vmem:[%s8603_s2 + $0x60] ss:$16 sps:$4 sm:$0xff]  }
 0x509   :  { %v2973_v45 = vmul.f32 %v6326_v51, %v2968_v59  ;;  %6327 = vtanh.f32 %v3278_v0  ;;  %v8119_v28 = vld [vmem:[%s8603_s2 + $0x68] ss:$16 sps:$4 sm:$0xff]   ;;  %v8128_v30 = vld [vmem:[%s8603_s2 + $0x84] ss:$16 sps:$4 sm:$0xff]   ;;  %v8133_v31 = vld [vmem:[%s8603_s2 + $0x8c] ss:$16 sps:$4 sm:$0xff]  }
 0x50a   :  { %6329 = vtanh.f32 %v3279_v15  ;;  %v8138_v32 = vld [vmem:[%s8603_s2 + $0x80] ss:$16 sps:$4 sm:$0xff]   ;;  %v8143_v33 = vld [vmem:[%s8603_s2 + $0x88] ss:$16 sps:$4 sm:$0xff]   ;;  %v8152_v34 = vld [vmem:[%s8603_s2 + $0xa4] ss:$16 sps:$4 sm:$0xff]  }
 0x50b   :  { %5640 = vst [vmem:[%s8609_s6 + $0x20] sm:$0xff] %v2973_v45  ;;  %v3304_v40 = vpack.c.bf16 %v2973_v45, %v2973_v45  ;;  %6331 = vtanh.f32 %v3280_v8  ;;  %v8157_v59 = vld [vmem:[%s8603_s2 + $0xac] ss:$16 sps:$4 sm:$0xff]   ;;  %v8162_v0 = vld [vmem:[%s8603_s2 + $0xa0] ss:$16 sps:$4 sm:$0xff]  }
 0x50c   :  { %6333 = vtanh.f32 %v3281_v37  ;;  %v8167_v48 = vld [vmem:[%s8603_s2 + $0xa8] ss:$16 sps:$4 sm:$0xff]   ;;  %v8176_v43 = vld [vmem:[%s8603_s2 + $0xc4] ss:$16 sps:$4 sm:$0xff]   ;;  %v8181_v51 = vld [vmem:[%s8603_s2 + $0xc0] ss:$16 sps:$4 sm:$0xff]  }
 0x50d   :  { %3534 = vmatmul.mubr.bf16.vlgmr.msra.gmra.mrb[40].mxu0 %v3304_v40  ;;  %3575 = vmatmul.mubr.bf16.vlgmr.msra.gmra.mrb[40].mxu1 %v3304_v40  ;;  %v8186_v15 = vld [vmem:[%s8603_s2 + $0xc8] ss:$16 sps:$4 sm:$0xff]   ;;  %v8191_v45 = vld [vmem:[%s8603_s2 + $0xcc] ss:$16 sps:$4 sm:$0xff]   ;;  %v8200_v8 = vld [vmem:[%s8603_s2 + $0xe4] ss:$16 sps:$4 sm:$0xff]  }
 0x50e   :  { %3825 = vmatpush1.bf16.msra.mxu0 %v7729_v41  ;;  %3866 = vmatpush1.bf16.msra.mxu1 %v7734_v11  ;;  %v8205_v58 = vld [vmem:[%s8603_s2 + $0xec] ss:$16 sps:$4 sm:$0xff]   ;;  %v8210_v40 = vld [vmem:[%s8603_s2 + $0xe0] ss:$16 sps:$4 sm:$0xff]   ;;  %v8215_v35 = vld [vmem:[%s8603_s2 + $0xe8] ss:$16 sps:$4 sm:$0xff]  }
 0x50f   :  { %3826 = vmatprep.subr.bf16.mxu0 %v7742_v1  ;;  %3867 = vmatprep.subr.bf16.mxu1 %v7747_v2  ;;  %8709 = vst [vmem:[#allocation6_spill] sm:$0xff] %v8215_v35  ;;  %v8224_v14 = vld [vmem:[%s8604_s3 + $0x4] ss:$16 sps:$4 sm:$0xff]   ;;  %v8229_v37 = vld [vmem:[%s8604_s3 + $0xc] ss:$16 sps:$4 sm:$0xff]  }
 0x510   :  { %3856 = vmatprep.mubr.bf16.mxu0 %v8658_v60  ;;  %3897 = vmatprep.mubr.bf16.mxu1 %v8658_v60  ;;  %8710 = vst [vmem:[#allocation7_spill] sm:$0xff] %v8224_v14  ;;  %8711 = vst [vmem:[#allocation8_spill] sm:$0xff] %v8229_v37 }
 0x512   :  { %3827 = vmatpush1.bf16.msra.mxu0 %v7755_v12  ;;  %3868 = vmatpush1.bf16.msra.mxu1 %v7760_v54 }
 0x513   :  { %v6328_v36 = vpop.eup %6327  ;;  %3828 = vmatprep.subr.bf16.mxu0 %v7767_v16  ;;  %3869 = vmatprep.subr.bf16.mxu1 %v7772_v52 }
 0x514   :  { %v3286_v41 = vmul.f32 0.5, %v6328_v36  ;;  %v6330_v11 = vpop.eup %6329  ;;  %v5642_v36 = vld [vmem:[%s8605_s0 + $0x50] sm:$0xff] }
 0x515   :  { %v3288_v1 = vmul.f32 0.5, %v6330_v11  ;;  %v6332_v2 = vpop.eup %6331  ;;  %v3583_v11 = vld [vmem:[%s8606_s4] sm:$0xf] }
 0x516   :  { %v3287_v7 = vadd.f32 0.5, %v3286_v41  ;;  %3829 = vmatpush1.bf16.msra.mxu0 %v7781_v55  ;;  %3870 = vmatpush1.bf16.msra.mxu1 %v7786_v57  ;;  %v8701_v55 = vld [vmem:[#allocation10_spill] sm:$0xff]  ;;  %v8702_v57 = vld [vmem:[#allocation11_spill] sm:$0xff]  ;;  %v5643_v41 = vld [vmem:[%s8605_s0 + $0x58] sm:$0xff] }
 0x517   :  { %3830 = vmatprep.subr.bf16.mxu0 %v7793_v38  ;;  %3871 = vmatprep.subr.bf16.mxu1 %v7798_v53  ;;  %v3289_v12 = vadd.f32 0.5, %v3288_v1  ;;  %v8703_v38 = vld [vmem:[#allocation12_spill] sm:$0xff]  ;;  %v6334_v53 = vpop.eup %6333  ;;  %v3339_v1 = vunpack.c.l.bf16 %v5643_v41 }
 0x518   :  { %v3293_v54 = vmul.f32 %v6332_v2, %v3287_v7  ;;  %v3337_v7 = vunpack.c.l.bf16 %v5642_v36  ;;  %v3338_v2 = vunpack.c.h.bf16 %v5642_v36  ;;  %v3340_v36 = vunpack.c.h.bf16 %v5643_v41  ;;  %v5676_v41 = vld [vmem:[%s8607_s1 + $0x50] sm:$0xff] }
 0x519   :  { %v3292_v16 = vmul.f32 %v3289_v12, %v7849_v10  ;;  %v8706_v10 = vld [vmem:[#allocation15_spill] sm:$0xff]  ;;  %v3588_v12 = vrot.slane %v3583_v11, %v6880_v4 }
 0x51a   :  { %3831 = vmatpush1.bf16.msra.mxu0 %v7805_v42  ;;  %3872 = vmatpush1.bf16.msra.mxu1 %v7810_v46  ;;  %v8704_v42 = vld [vmem:[#allocation13_spill] sm:$0xff]  ;;  %v8705_v46 = vld [vmem:[#allocation14_spill] sm:$0xff] }
 0x51b   :  { %3832 = vmatprep.subr.bf16.mxu0 %v7817_v49  ;;  %3873 = vmatprep.subr.bf16.mxu1 %v7822_v3  ;;  %v8007_v52 = vadd.f32 %v3293_v54, %v3292_v16  ;;  %v3290_v49 = vmul.f32 0.5, %v6334_v53  ;;  %v8707_v3 = vld [vmem:[#allocation16_spill] sm:$0xff]  ;;  %v3596_v53 = vrot.slane %v3583_v11, %v6890_v9 }
 0x51d   :  { %6335 = vtanh.f32 %v8007_v52 }
 0x51e   :  { %3833 = vmatpush1.bf16.msra.mxu0 %v7830_v5  ;;  %3874 = vmatpush1.bf16.msra.mxu1 %v8701_v55  ;;  %v3291_v5 = vadd.f32 0.5, %v3290_v49  ;;  %v3592_v55 = vrot.slane %v3583_v11, %v6885_v6 }
 0x51f   :  { %3834 = vmatprep.subr.bf16.mxu0 %v8702_v57  ;;  %3875 = vmatprep.subr.bf16.mxu1 %v8703_v38 }
 0x522   :  { %3835 = vmatpush1.bf16.msra.mxu0 %v8704_v42  ;;  %3876 = vmatpush1.bf16.msra.mxu1 %v8705_v46 }
 0x523   :  { %3836 = vmatprep.subr.bf16.mxu0 %v8706_v10  ;;  %3877 = vmatprep.subr.bf16.mxu1 %v8707_v3 }
 0x526   :  { %3837 = vmatpush1.bf16.msra.mxu0 %v7881_v56  ;;  %3878 = vmatpush1.bf16.msra.mxu1 %v8708_v13  ;;  %v8047_v56 = vld [vmem:[%s8603_s2 + $0x8] ss:$16 sps:$4 sm:$0xff]  }
 0x527   :  { %3838 = vmatprep.subr.bf16.mxu0 %v7893_v47  ;;  %3879 = vmatprep.subr.bf16.mxu1 %v7898_v44  ;;  %v6336_v61 = vpop.eup %6335  ;;  %v8032_v47 = vld [vmem:[%s8603_s2 + $0x4] ss:$16 sps:$4 sm:$0xff]   ;;  %v8037_v44 = vld [vmem:[%s8603_s2 + $0xc] ss:$16 sps:$4 sm:$0xff]  }
 0x528   :  { %v3296_v63 = vmul.f32 %v6336_v61, %v3291_v5 }
 0x52a   :  { %3839 = vmatpush1.bf16.msra.mxu0 %v7905_v39  ;;  %3880 = vmatpush1.bf16.msra.mxu1 %v7910_v50  ;;  %5641 = vst [vmem:[%s8610_s7 + $0x18] sm:$0xff] %v3296_v63  ;;  %v3627_v17 = vpack.c.bf16 %v3296_v63, %v3296_v63  ;;  %v8042_v50 = vld [vmem:[%s8603_s2] ss:$16 sps:$4 sm:$0xff]   ;;  %v8056_v39 = vld [vmem:[%s8603_s2 + $0x24] ss:$16 sps:$4 sm:$0xff]  }
 0x52b   :  { %4151 = vmatprep.subr.bf16.mxu0 %v8032_v47  ;;  %4192 = vmatprep.subr.bf16.mxu1 %v8037_v44 }
 0x52d   :  { %3857 = vmatmul.mubr.bf16.vlgmr.msra.gmra.mrb[44].mxu0 %v3627_v17  ;;  %3898 = vmatmul.mubr.bf16.vlgmr.msra.gmra.mrb[44].mxu1 %v3627_v17 }
 0x52e   :  { %4183 = vmatprep.mubr.bf16.mxu0 %v8658_v60  ;;  %4224 = vmatprep.mubr.bf16.mxu1 %v8658_v60 }
 0x52f   :  { %4152 = vmatpush1.bf16.msra.mxu0 %v8042_v50  ;;  %4193 = vmatpush1.bf16.msra.mxu1 %v8047_v56 }
 0x530   :  { %4153 = vmatprep.subr.bf16.mxu0 %v8056_v39  ;;  %4194 = vmatprep.subr.bf16.mxu1 %v8061_v18 }
 0x533   :  { %4154 = vmatpush1.bf16.msra.mxu0 %v8066_v19  ;;  %4195 = vmatpush1.bf16.msra.mxu1 %v8071_v20 }
 0x534   :  { %4155 = vmatprep.subr.bf16.mxu0 %v8080_v21  ;;  %4196 = vmatprep.subr.bf16.mxu1 %v8085_v22 }
 0x537   :  { %4156 = vmatpush1.bf16.msra.mxu0 %v8090_v23  ;;  %4197 = vmatpush1.bf16.msra.mxu1 %v8095_v24 }
 0x538   :  { %4157 = vmatprep.subr.bf16.mxu0 %v8104_v25  ;;  %4198 = vmatprep.subr.bf16.mxu1 %v8109_v26 }
 0x53b   :  { %4158 = vmatpush1.bf16.msra.mxu0 %v8114_v27  ;;  %4199 = vmatpush1.bf16.msra.mxu1 %v8119_v28 }
 0x53c   :  { %4159 = vmatprep.subr.bf16.mxu0 %v8128_v30  ;;  %4200 = vmatprep.subr.bf16.mxu1 %v8133_v31 }
 0x53f   :  { %4160 = vmatpush1.bf16.msra.mxu0 %v8138_v32  ;;  %4201 = vmatpush1.bf16.msra.mxu1 %v8143_v33 }
 0x540   :  { %4161 = vmatprep.subr.bf16.mxu0 %v8152_v34  ;;  %4202 = vmatprep.subr.bf16.mxu1 %v8157_v59 }
 0x543   :  { %4162 = vmatpush1.bf16.msra.mxu0 %v8162_v0  ;;  %4203 = vmatpush1.bf16.msra.mxu1 %v8167_v48 }
 0x544   :  { %4163 = vmatprep.subr.bf16.mxu0 %v8176_v43  ;;  %4204 = vmatprep.subr.bf16.mxu1 %v8191_v45 }
 0x547   :  { %4164 = vmatpush1.bf16.msra.mxu0 %v8181_v51  ;;  %4205 = vmatpush1.bf16.msra.mxu1 %v8186_v15 }
 0x548   :  { %4165 = vmatprep.subr.bf16.mxu0 %v8200_v8  ;;  %4206 = vmatprep.subr.bf16.mxu1 %v8205_v58 }
 0x54b   :  { %4166 = vmatpush1.bf16.msra.mxu0 %v8210_v40  ;;  %4207 = vmatpush1.bf16.msra.mxu1 %v8215_v35 }
 0x54c   :  { %4474 = vmatprep.subr.bf16.mxu0 %v8224_v14  ;;  %4515 = vmatprep.subr.bf16.mxu1 %v8229_v37 }
 0x5e0   :  { %v3535_v54 = vpop.f32.mrb[40].mxu0  ;;  %v3576_v16 = vpop.f32.mrb[40].mxu1 }
 0x5e1   :  { %v3536_v57 = vadd.f32 %v3535_v54, %v3337_v7  ;;  %v3577_v38 = vadd.f32 %v3576_v16, %v3339_v1  ;;  %v3537_v42 = vpop.f32.mrb[41].mxu0  ;;  %v3578_v46 = vpop.f32.mrb[41].mxu1  ;;  %v3600_v7 = vrot.slane %v3583_v11, %v6895_v29 }
 0x5e2   :  { %v3538_v49 = vadd.f32 %v3537_v42, %v3338_v2  ;;  %v3539_v10 = vpop.f32.mrb[42].mxu0  ;;  %v3580_v3 = vpop.f32.mrb[42].mxu1  ;;  %v3579_v37 = vadd.f32 %v3578_v46, %v3340_v36 }
 0x5e3   :  { %v3605_v13 = vadd.f32 %v3588_v12, %v3536_v57  ;;  %v3540_v5 = vpop.f32.mrb[43].mxu0  ;;  %v3581_v61 = vpop.f32.mrb[43].mxu1  ;;  %v3607_v17 = vadd.f32 %v3596_v53, %v3577_v38 }
 0x5e4   :  { %v3606_v63 = vadd.f32 %v3592_v55, %v3538_v49  ;;  %v3608_v1 = vadd.f32 %v3600_v7, %v3579_v37  ;;  %v5677_v37 = vld [vmem:[%s8607_s1 + $0x58] sm:$0xff] }
 0x5e5   :  { %6337 = vtanh.f32 %v3605_v13  ;;  %v3662_v38 = vunpack.c.l.bf16 %v5677_v37 }
 0x5e6   :  { %6339 = vtanh.f32 %v3606_v63 }
 0x5e7   :  { %6341 = vtanh.f32 %v3607_v17 }
 0x5e8   :  { %6343 = vtanh.f32 %v3608_v1 }
 0x5ef   :  { %v6338_v54 = vpop.eup %6337 }
 0x5f0   :  { %v3613_v16 = vmul.f32 0.5, %v6338_v54  ;;  %v6340_v14 = vpop.eup %6339 }
 0x5f1   :  { %v3615_v2 = vmul.f32 0.5, %v6340_v14  ;;  %v6342_v42 = vpop.eup %6341  ;;  %v3906_v14 = vld [vmem:[%s8608_s5] sm:$0xf] }
 0x5f2   :  { %v3614_v35 = vadd.f32 0.5, %v3613_v16  ;;  %v6344_v11 = vpop.eup %6343  ;;  %v3911_v46 = vrot.slane %v3906_v14, %v6880_v4  ;;  %v3915_v13 = vrot.slane %v3906_v14, %v6885_v6  ;;  %v3919_v63 = vrot.slane %v3906_v14, %v6890_v9 }
 0x5f3   :  { %v3616_v12 = vadd.f32 0.5, %v3615_v2  ;;  %v3617_v53 = vmul.f32 0.5, %v6344_v11 }
 0x5f4   :  { %v3620_v57 = vmul.f32 %v6342_v42, %v3614_v35  ;;  %v3660_v35 = vunpack.c.l.bf16 %v5676_v41 }
 0x5f5   :  { %v3619_v55 = vmul.f32 %v3616_v12, %v7969_v62  ;;  %v3661_v62 = vunpack.c.h.bf16 %v5676_v41  ;;  %v3618_v16 = vadd.f32 0.5, %v3617_v53  ;;  %v8283_v53 = vld [vmem:[%s8604_s3 + $0x2c] ss:$16 sps:$4 sm:$0xff]  }
 0x5f7   :  { %v8247_v49 = vadd.f32 %v3620_v57, %v3619_v55 }
 0x5f9   :  { %8712 = vst [vmem:[#allocation9_spill] sm:$0xff] %v8247_v49  ;;  %6345 = vtanh.f32 %v8247_v49  ;;  %v3663_v49 = vunpack.c.h.bf16 %v5677_v37  ;;  %v8278_v37 = vld [vmem:[%s8604_s3 + $0x24] ss:$16 sps:$4 sm:$0xff]  }
 0x600   :  { %v3858_v10 = vpop.f32.mrb[44].mxu0  ;;  %v3899_v3 = vpop.f32.mrb[44].mxu1 }
 0x601   :  { %v3859_v5 = vadd.f32 %v3858_v10, %v3660_v35  ;;  %v3900_v61 = vadd.f32 %v3899_v3, %v3662_v38  ;;  %v3860_v17 = vpop.f32.mrb[45].mxu0  ;;  %v3901_v36 = vpop.f32.mrb[45].mxu1  ;;  %v8265_v35 = vld [vmem:[%s8604_s3] ss:$16 sps:$4 sm:$0xff]   ;;  %v8270_v38 = vld [vmem:[%s8604_s3 + $0x8] ss:$16 sps:$4 sm:$0xff]   ;;  %v3923_v10 = vrot.slane %v3906_v14, %v6895_v29 }
 0x602   :  { %v3861_v7 = vadd.f32 %v3860_v17, %v3661_v62  ;;  %v3862_v1 = vpop.f32.mrb[46].mxu0  ;;  %v3903_v54 = vpop.f32.mrb[46].mxu1  ;;  %v8291_v3 = vld [vmem:[%s8604_s3 + $0x20] ss:$16 sps:$4 sm:$0xff]   ;;  %v8308_v14 = vld [vmem:[%s8604_s3 + $0x4c] ss:$16 sps:$4 sm:$0xff]  }
 0x603   :  { %v3928_v2 = vadd.f32 %v3911_v46, %v3859_v5  ;;  %v3863_v42 = vpop.f32.mrb[47].mxu0  ;;  %v3904_v12 = vpop.f32.mrb[47].mxu1  ;;  %v3930_v11 = vadd.f32 %v3919_v63, %v3900_v61  ;;  %v3902_v46 = vadd.f32 %v3901_v36, %v3663_v49  ;;  %v8303_v49 = vld [vmem:[%s8604_s3 + $0x44] ss:$16 sps:$4 sm:$0xff]   ;;  %v8317_v61 = vld [vmem:[%s8604_s3 + $0x40] ss:$16 sps:$4 sm:$0xff]  }
 0x604   :  { %v6346_v57 = vpop.eup %6345  ;;  %v3929_v55 = vadd.f32 %v3915_v13, %v3861_v7  ;;  %v8296_v13 = vld [vmem:[%s8604_s3 + $0x28] ss:$16 sps:$4 sm:$0xff]   ;;  %v8329_v36 = vld [vmem:[%s8604_s3 + $0x64] ss:$16 sps:$4 sm:$0xff]   ;;  %v8334_v7 = vld [vmem:[%s8604_s3 + $0x6c] ss:$16 sps:$4 sm:$0xff]  }
 0x605   :  { %v3623_v41 = vmul.f32 %v6346_v57, %v3618_v16  ;;  %6347 = vtanh.f32 %v3928_v2  ;;  %v3931_v5 = vadd.f32 %v3923_v10, %v3902_v46  ;;  %v8322_v63 = vld [vmem:[%s8604_s3 + $0x48] ss:$16 sps:$4 sm:$0xff]   ;;  %v8341_v42 = vld [vmem:[%s8604_s3 + $0x60] ss:$16 sps:$4 sm:$0xff]  }
 0x606   :  { %6349 = vtanh.f32 %v3929_v55  ;;  %v8346_v12 = vld [vmem:[%s8604_s3 + $0x68] ss:$16 sps:$4 sm:$0xff]   ;;  %v8353_v55 = vld [vmem:[%s8604_s3 + $0x84] ss:$16 sps:$4 sm:$0xff]   ;;  %v8366_v10 = vld [vmem:[%s8604_s3 + $0x80] ss:$16 sps:$4 sm:$0xff]  }
 0x607   :  { %5710 = vst [vmem:[%s8609_s6 + $0x28] sm:$0xff] %v3623_v41  ;;  %v3954_v62 = vpack.c.bf16 %v3623_v41, %v3623_v41  ;;  %6351 = vtanh.f32 %v3930_v11  ;;  %v8358_v41 = vld [vmem:[%s8604_s3 + $0x8c] ss:$16 sps:$4 sm:$0xff]  }
 0x608   :  { %6353 = vtanh.f32 %v3931_v5  ;;  %v8371_v5 = vld [vmem:[%s8604_s3 + $0x88] ss:$16 sps:$4 sm:$0xff]  }
 0x609   :  { %4184 = vmatmul.mubr.bf16.vlgmr.msra.gmra.mrb[48].mxu0 %v3954_v62  ;;  %4225 = vmatmul.mubr.bf16.vlgmr.msra.gmra.mrb[48].mxu1 %v3954_v62  ;;  %8713 = vst [vmem:[#allocation10_spill] sm:$0xff] %v8371_v5 }
 0x60a   :  { %4475 = vmatpush1.bf16.msra.mxu0 %v8265_v35  ;;  %4516 = vmatpush1.bf16.msra.mxu1 %v8270_v38 }
 0x60b   :  { %4476 = vmatprep.subr.bf16.mxu0 %v8278_v37  ;;  %4517 = vmatprep.subr.bf16.mxu1 %v8283_v53 }
 0x60c   :  { %4506 = vmatprep.mubr.bf16.mxu0 %v8658_v60  ;;  %4547 = vmatprep.mubr.bf16.mxu1 %v8658_v60 }
 0x60e   :  { %4477 = vmatpush1.bf16.msra.mxu0 %v8291_v3  ;;  %4518 = vmatpush1.bf16.msra.mxu1 %v8296_v13 }
 0x60f   :  { %v6348_v17 = vpop.eup %6347  ;;  %4478 = vmatprep.subr.bf16.mxu0 %v8303_v49  ;;  %4519 = vmatprep.subr.bf16.mxu1 %v8308_v14 }
 0x610   :  { %v3936_v1 = vmul.f32 0.5, %v6348_v17  ;;  %v6350_v54 = vpop.eup %6349  ;;  %v8383_v17 = vld [vmem:[%s8604_s3 + $0xac] ss:$16 sps:$4 sm:$0xff]  }
 0x611   :  { %v3938_v2 = vmul.f32 0.5, %v6350_v54  ;;  %v6352_v57 = vpop.eup %6351  ;;  %8715 = vst [vmem:[#allocation12_spill] sm:$0xff] %v8383_v17  ;;  %v8393_v54 = vld [vmem:[%s8604_s3 + $0xa0] ss:$16 sps:$4 sm:$0xff]  }
 0x612   :  { %v3937_v16 = vadd.f32 0.5, %v3936_v1  ;;  %4479 = vmatpush1.bf16.msra.mxu0 %v8317_v61  ;;  %4520 = vmatpush1.bf16.msra.mxu1 %v8322_v63  ;;  %8716 = vst [vmem:[#allocation13_spill] sm:$0xff] %v8393_v54 }
 0x613   :  { %4480 = vmatprep.subr.bf16.mxu0 %v8329_v36  ;;  %4521 = vmatprep.subr.bf16.mxu1 %v8334_v7  ;;  %v3939_v11 = vadd.f32 0.5, %v3938_v2  ;;  %v8405_v2 = vld [vmem:[%s8604_s3 + $0xc4] ss:$16 sps:$4 sm:$0xff]  }
 0x614   :  { %v3943_v62 = vmul.f32 %v6352_v57, %v3937_v16  ;;  %v8398_v16 = vld [vmem:[%s8604_s3 + $0xa8] ss:$16 sps:$4 sm:$0xff]   ;;  %8718 = vst [vmem:[#allocation15_spill] sm:$0xff] %v8405_v2  ;;  %v8410_v57 = vld [vmem:[%s8604_s3 + $0xcc] ss:$16 sps:$4 sm:$0xff]  }
 0x615   :  { %v3942_v46 = vmul.f32 %v3939_v11, %v8007_v52  ;;  %v8378_v52 = vld [vmem:[%s8604_s3 + $0xa4] ss:$16 sps:$4 sm:$0xff]   ;;  %8717 = vst [vmem:[#allocation14_spill] sm:$0xff] %v8398_v16  ;;  %8719 = vst [vmem:[#allocation16_spill] sm:$0xff] %v8410_v57  ;;  %v6354_v11 = vpop.eup %6353 }
 0x616   :  { %4481 = vmatpush1.bf16.msra.mxu0 %v8341_v42  ;;  %4522 = vmatpush1.bf16.msra.mxu1 %v8346_v12  ;;  %8714 = vst [vmem:[#allocation11_spill] sm:$0xff] %v8378_v52 }
 0x617   :  { %4482 = vmatprep.subr.bf16.mxu0 %v8353_v55  ;;  %4523 = vmatprep.subr.bf16.mxu1 %v8358_v41  ;;  %v8385_v1 = vadd.f32 %v3943_v62, %v3942_v46  ;;  %v8417_v62 = vld [vmem:[%s8604_s3 + $0xc0] ss:$16 sps:$4 sm:$0xff]   ;;  %v8422_v46 = vld [vmem:[%s8604_s3 + $0xc8] ss:$16 sps:$4 sm:$0xff]  }
 0x618   :  { %8720 = vst [vmem:[#allocation17_spill] sm:$0xff] %v8422_v46 }
 0x619   :  { %6355 = vtanh.f32 %v8385_v1 }
 0x61a   :  { %4483 = vmatpush1.bf16.msra.mxu0 %v8366_v10  ;;  %4524 = vmatpush1.bf16.msra.mxu1 %v8371_v5 }
 0x61b   :  { %4484 = vmatprep.subr.bf16.mxu0 %v8378_v52  ;;  %4525 = vmatprep.subr.bf16.mxu1 %v8383_v17  ;;  %v3940_v17 = vmul.f32 0.5, %v6354_v11  ;;  %v8441_v11 = vld [vmem:[%s8604_s3 + $0xe0] ss:$16 sps:$4 sm:$0xff]  }
 0x61e   :  { %4485 = vmatpush1.bf16.msra.mxu0 %v8393_v54  ;;  %4526 = vmatpush1.bf16.msra.mxu1 %v8398_v16  ;;  %v8429_v54 = vld [vmem:[%s8604_s3 + $0xe4] ss:$16 sps:$4 sm:$0xff]   ;;  %v8434_v16 = vld [vmem:[%s8604_s3 + $0xec] ss:$16 sps:$4 sm:$0xff]  }
 0x61f   :  { %4486 = vmatprep.subr.bf16.mxu0 %v8405_v2  ;;  %4527 = vmatprep.subr.bf16.mxu1 %v8410_v57  ;;  %v8446_v57 = vld [vmem:[%s8604_s3 + $0xe8] ss:$16 sps:$4 sm:$0xff]   ;;  %v3941_v2 = vadd.f32 0.5, %v3940_v17 }
 0x622   :  { %4487 = vmatpush1.bf16.msra.mxu0 %v8417_v62  ;;  %4528 = vmatpush1.bf16.msra.mxu1 %v8422_v46 }
 0x623   :  { %4488 = vmatprep.subr.bf16.mxu0 %v8429_v54  ;;  %4529 = vmatprep.subr.bf16.mxu1 %v8434_v16  ;;  %v6356_v52 = vpop.eup %6355 }
 0x624   :  { %v3946_v5 = vmul.f32 %v6356_v52, %v3941_v2 }
 0x626   :  { %4489 = vmatpush1.bf16.msra.mxu0 %v8441_v11  ;;  %4530 = vmatpush1.bf16.msra.mxu1 %v8446_v57  ;;  %5711 = vst [vmem:[%s8610_s7 + $0x10] sm:$0xff] %v3946_v5  ;;  %v4277_v46 = vpack.c.bf16 %v3946_v5, %v3946_v5 }
 0x627   :  { %4801 = vmatprep.subr.bf16.mxu0 %v8032_v47  ;;  %4842 = vmatprep.subr.bf16.mxu1 %v8037_v44  ;;  %v8721_v47 = vld [vmem:[#allocation6_spill] sm:$0xff]  ;;  %v8722_v44 = vld [vmem:[#allocation7_spill] sm:$0xff] }
 0x629   :  { %4507 = vmatmul.mubr.bf16.vlgmr.msra.gmra.mrb[52].mxu0 %v4277_v46  ;;  %4548 = vmatmul.mubr.bf16.vlgmr.msra.gmra.mrb[52].mxu1 %v4277_v46 }
 0x62a   :  { %4802 = vmatpush1.bf16.msra.mxu0 %v8042_v50  ;;  %4843 = vmatpush1.bf16.msra.mxu1 %v8047_v56  ;;  %v8723_v50 = vld [vmem:[#allocation8_spill] sm:$0xff]  ;;  %v5712_v56 = vld [vmem:[%s8605_s0 + $0x60] sm:$0xff] }
 0x62b   :  { %4803 = vmatprep.subr.bf16.mxu0 %v8056_v39  ;;  %4844 = vmatprep.subr.bf16.mxu1 %v8061_v18  ;;  %v5713_v39 = vld [vmem:[%s8605_s0 + $0x68] sm:$0xff]  ;;  %v4233_v18 = vld [vmem:[%s8606_s4] sm:$0xf] }
 0x62c   :  { %4833 = vmatprep.mubr.bf16.mxu0 %v8658_v60  ;;  %4874 = vmatprep.mubr.bf16.mxu1 %v8658_v60 }
 0x62e   :  { %4804 = vmatpush1.bf16.msra.mxu0 %v8066_v19  ;;  %4845 = vmatpush1.bf16.msra.mxu1 %v8071_v20  ;;  %v3987_v19 = vunpack.c.l.bf16 %v5712_v56  ;;  %v3989_v20 = vunpack.c.l.bf16 %v5713_v39 }
 0x62f   :  { %4805 = vmatprep.subr.bf16.mxu0 %v8080_v21  ;;  %4846 = vmatprep.subr.bf16.mxu1 %v8085_v22  ;;  %v3988_v21 = vunpack.c.h.bf16 %v5712_v56  ;;  %v4238_v22 = vrot.slane %v4233_v18, %v6880_v4 }
 0x632   :  { %4806 = vmatpush1.bf16.msra.mxu0 %v8090_v23  ;;  %4847 = vmatpush1.bf16.msra.mxu1 %v8095_v24 }
 0x633   :  { %4807 = vmatprep.subr.bf16.mxu0 %v8104_v25  ;;  %4848 = vmatprep.subr.bf16.mxu1 %v8109_v26  ;;  %v4242_v25 = vrot.slane %v4233_v18, %v6885_v6 }
 0x636   :  { %4808 = vmatpush1.bf16.msra.mxu0 %v8114_v27  ;;  %4849 = vmatpush1.bf16.msra.mxu1 %v8119_v28  ;;  %v4246_v28 = vrot.slane %v4233_v18, %v6890_v9 }
 0x637   :  { %4809 = vmatprep.subr.bf16.mxu0 %v8128_v30  ;;  %4850 = vmatprep.subr.bf16.mxu1 %v8133_v31 }
 0x63a   :  { %4810 = vmatpush1.bf16.msra.mxu0 %v8138_v32  ;;  %4851 = vmatpush1.bf16.msra.mxu1 %v8143_v33 }
 0x63b   :  { %4811 = vmatprep.subr.bf16.mxu0 %v8152_v34  ;;  %4852 = vmatprep.subr.bf16.mxu1 %v8157_v59 }
 0x63e   :  { %4812 = vmatpush1.bf16.msra.mxu0 %v8162_v0  ;;  %4853 = vmatpush1.bf16.msra.mxu1 %v8167_v48 }
 0x63f   :  { %4813 = vmatprep.subr.bf16.mxu0 %v8176_v43  ;;  %4854 = vmatprep.subr.bf16.mxu1 %v8191_v45 }
 0x642   :  { %4814 = vmatpush1.bf16.msra.mxu0 %v8181_v51  ;;  %4855 = vmatpush1.bf16.msra.mxu1 %v8186_v15  ;;  %v3990_v15 = vunpack.c.h.bf16 %v5713_v39  ;;  %v5746_v39 = vld [vmem:[%s8607_s1 + $0x60] sm:$0xff] }
 0x643   :  { %4815 = vmatprep.subr.bf16.mxu0 %v8200_v8  ;;  %4856 = vmatprep.subr.bf16.mxu1 %v8205_v58  ;;  %v4250_v8 = vrot.slane %v4233_v18, %v6895_v29  ;;  %v5747_v18 = vld [vmem:[%s8607_s1 + $0x68] sm:$0xff] }
 0x646   :  { %4816 = vmatpush1.bf16.msra.mxu0 %v8210_v40  ;;  %4857 = vmatpush1.bf16.msra.mxu1 %v8721_v47 }
 0x647   :  { %5124 = vmatprep.subr.bf16.mxu0 %v8722_v44  ;;  %5165 = vmatprep.subr.bf16.mxu1 %v8723_v50  ;;  %v8724_v50 = vld [vmem:[#allocation9_spill] sm:$0xff] }
 0x6dc   :  { %v4185_v23 = vpop.f32.mrb[48].mxu0  ;;  %v4226_v24 = vpop.f32.mrb[48].mxu1 }
 0x6dd   :  { %v4186_v26 = vadd.f32 %v4185_v23, %v3987_v19  ;;  %v4227_v27 = vadd.f32 %v4226_v24, %v3989_v20  ;;  %v4187_v30 = vpop.f32.mrb[49].mxu0  ;;  %v4228_v31 = vpop.f32.mrb[49].mxu1  ;;  %v4312_v23 = vunpack.c.l.bf16 %v5747_v18  ;;  %v4311_v24 = vunpack.c.h.bf16 %v5746_v39 }
 0x6de   :  { %v4188_v32 = vadd.f32 %v4187_v30, %v3988_v21  ;;  %v4189_v33 = vpop.f32.mrb[50].mxu0  ;;  %v4230_v34 = vpop.f32.mrb[50].mxu1  ;;  %v4229_v45 = vadd.f32 %v4228_v31, %v3990_v15  ;;  %v4556_v21 = vld [vmem:[%s8608_s5] sm:$0xf] }
 0x6df   :  { %v4255_v59 = vadd.f32 %v4238_v22, %v4186_v26  ;;  %v4190_v0 = vpop.f32.mrb[51].mxu0  ;;  %v4231_v48 = vpop.f32.mrb[51].mxu1  ;;  %v4257_v51 = vadd.f32 %v4246_v28, %v4227_v27  ;;  %v4310_v22 = vunpack.c.l.bf16 %v5746_v39  ;;  %v4561_v26 = vrot.slane %v4556_v21, %v6880_v4 }
 0x6e0   :  { %v4256_v43 = vadd.f32 %v4242_v25, %v4188_v32  ;;  %v4258_v58 = vadd.f32 %v4250_v8, %v4229_v45  ;;  %v4565_v30 = vrot.slane %v4556_v21, %v6885_v6  ;;  %v4569_v33 = vrot.slane %v4556_v21, %v6890_v9 }
 0x6e1   :  { %6357 = vtanh.f32 %v4255_v59 }
 0x6e2   :  { %6359 = vtanh.f32 %v4256_v43 }
 0x6e3   :  { %6361 = vtanh.f32 %v4257_v51 }
 0x6e4   :  { %6363 = vtanh.f32 %v4258_v58 }
 0x6eb   :  { %v6358_v40 = vpop.eup %6357 }
 0x6ec   :  { %v4263_v5 = vmul.f32 0.5, %v6358_v40  ;;  %v6360_v52 = vpop.eup %6359 }
 0x6ed   :  { %v4265_v2 = vmul.f32 0.5, %v6360_v52  ;;  %v6362_v46 = vpop.eup %6361 }
 0x6ee   :  { %v4264_v17 = vadd.f32 0.5, %v4263_v5  ;;  %v6364_v20 = vpop.eup %6363 }
 0x6ef   :  { %v4266_v47 = vadd.f32 0.5, %v4265_v2  ;;  %v4267_v25 = vmul.f32 0.5, %v6364_v20 }
 0x6f0   :  { %v4270_v44 = vmul.f32 %v6362_v46, %v4264_v17  ;;  %v4313_v17 = vunpack.c.h.bf16 %v5747_v18 }
 0x6f1   :  { %v4269_v56 = vmul.f32 %v4266_v47, %v8724_v50  ;;  %v4268_v51 = vadd.f32 0.5, %v4267_v25  ;;  %v4573_v47 = vrot.slane %v4556_v21, %v6895_v29 }
 0x6f3   :  { %v8505_v19 = vadd.f32 %v4270_v44, %v4269_v56 }
 0x6f5   :  { %6365 = vtanh.f32 %v8505_v19 }
 0x6fc   :  { %v4508_v27 = vpop.f32.mrb[52].mxu0  ;;  %v4549_v28 = vpop.f32.mrb[52].mxu1 }
 0x6fd   :  { %v4509_v31 = vadd.f32 %v4508_v27, %v4310_v22  ;;  %v4550_v32 = vadd.f32 %v4549_v28, %v4312_v23  ;;  %v4510_v34 = vpop.f32.mrb[53].mxu0  ;;  %v4551_v59 = vpop.f32.mrb[53].mxu1 }
 0x6fe   :  { %v4511_v0 = vadd.f32 %v4510_v34, %v4311_v24  ;;  %v4512_v48 = vpop.f32.mrb[54].mxu0  ;;  %v4553_v43 = vpop.f32.mrb[54].mxu1  ;;  %v4552_v46 = vadd.f32 %v4551_v59, %v4313_v17 }
 0x6ff   :  { %v4578_v15 = vadd.f32 %v4561_v26, %v4509_v31  ;;  %v4513_v45 = vpop.f32.mrb[55].mxu0  ;;  %v4554_v8 = vpop.f32.mrb[55].mxu1  ;;  %v4580_v52 = vadd.f32 %v4569_v33, %v4550_v32 }
 0x700   :  { %v6366_v58 = vpop.eup %6365  ;;  %v4579_v40 = vadd.f32 %v4565_v30, %v4511_v0  ;;  %v4581_v44 = vadd.f32 %v4573_v47, %v4552_v46 }
 0x701   :  { %v4273_v5 = vmul.f32 %v6366_v58, %v4268_v51  ;;  %6367 = vtanh.f32 %v4578_v15 }
 0x702   :  { %6369 = vtanh.f32 %v4579_v40 }
 0x703   :  { %5780 = vst [vmem:[%s8609_s6 + $0x30] sm:$0xff] %v4273_v5  ;;  %v4604_v2 = vpack.c.bf16 %v4273_v5, %v4273_v5  ;;  %6371 = vtanh.f32 %v4580_v52 }
 0x704   :  { %6373 = vtanh.f32 %v4581_v44 }
 0x705   :  { %4834 = vmatmul.mubr.bf16.vlgmr.msra.gmra.mrb[56].mxu0 %v4604_v2  ;;  %4875 = vmatmul.mubr.bf16.vlgmr.msra.gmra.mrb[56].mxu1 %v4604_v2 }
 0x706   :  { %5125 = vmatpush1.bf16.msra.mxu0 %v8265_v35  ;;  %5166 = vmatpush1.bf16.msra.mxu1 %v8270_v38 }
 0x707   :  { %5126 = vmatprep.subr.bf16.mxu0 %v8278_v37  ;;  %5167 = vmatprep.subr.bf16.mxu1 %v8283_v53 }
 0x708   :  { %5156 = vmatprep.mubr.bf16.mxu0 %v8658_v60  ;;  %5197 = vmatprep.mubr.bf16.mxu1 %v8658_v60 }
 0x70a   :  { %5127 = vmatpush1.bf16.msra.mxu0 %v8291_v3  ;;  %5168 = vmatpush1.bf16.msra.mxu1 %v8296_v13 }
 0x70b   :  { %v6368_v50 = vpop.eup %6367  ;;  %5128 = vmatprep.subr.bf16.mxu0 %v8303_v49  ;;  %5169 = vmatprep.subr.bf16.mxu1 %v8308_v14  ;;  %v8725_v14 = vld [vmem:[#allocation10_spill] sm:$0xff] }
 0x70c   :  { %v4586_v35 = vmul.f32 0.5, %v6368_v50  ;;  %v6370_v38 = vpop.eup %6369 }
 0x70d   :  { %v4588_v37 = vmul.f32 0.5, %v6370_v38  ;;  %v6372_v60 = vpop.eup %6371  ;;  %v5816_v38 = vld [vmem:[%s8607_s1 + $0x70] sm:$0xff] }
 0x70e   :  { %v4587_v56 = vadd.f32 0.5, %v4586_v35  ;;  %5129 = vmatpush1.bf16.msra.mxu0 %v8317_v61  ;;  %5170 = vmatpush1.bf16.msra.mxu1 %v8322_v63  ;;  %v8726_v61 = vld [vmem:[#allocation11_spill] sm:$0xff]  ;;  %v8727_v63 = vld [vmem:[#allocation12_spill] sm:$0xff] }
 0x70f   :  { %5130 = vmatprep.subr.bf16.mxu0 %v8329_v36  ;;  %5171 = vmatprep.subr.bf16.mxu1 %v8334_v7  ;;  %v4589_v53 = vadd.f32 0.5, %v4588_v37  ;;  %v6374_v36 = vpop.eup %6373  ;;  %v8728_v7 = vld [vmem:[#allocation13_spill] sm:$0xff] }
 0x710   :  { %v4593_v3 = vmul.f32 %v6372_v60, %v4587_v56  ;;  %v5817_v56 = vld [vmem:[%s8607_s1 + $0x78] sm:$0xff]  ;;  %v5206_v60 = vld [vmem:[%s8608_s5] sm:$0xf] }
 0x711   :  { %v4592_v13 = vmul.f32 %v4589_v53, %v8385_v1  ;;  %v8732_v1 = vld [vmem:[#allocation17_spill] sm:$0xff]  ;;  %v4962_v53 = vunpack.c.l.bf16 %v5817_v56 }
 0x712   :  { %5131 = vmatpush1.bf16.msra.mxu0 %v8341_v42  ;;  %5172 = vmatpush1.bf16.msra.mxu1 %v8346_v12  ;;  %v8729_v42 = vld [vmem:[#allocation14_spill] sm:$0xff]  ;;  %v4590_v12 = vmul.f32 0.5, %v6374_v36  ;;  %v5215_v36 = vrot.slane %v5206_v60, %v6885_v6 }
 0x713   :  { %5132 = vmatprep.subr.bf16.mxu0 %v8353_v55  ;;  %5173 = vmatprep.subr.bf16.mxu1 %v8358_v41  ;;  %v8543_v49 = vadd.f32 %v4593_v3, %v4592_v13  ;;  %v8730_v55 = vld [vmem:[#allocation15_spill] sm:$0xff]  ;;  %v8731_v41 = vld [vmem:[#allocation16_spill] sm:$0xff]  ;;  %v4961_v3 = vunpack.c.h.bf16 %v5816_v38 }
 0x715   :  { %6375 = vtanh.f32 %v8543_v49 }
 0x716   :  { %5133 = vmatpush1.bf16.msra.mxu0 %v8366_v10  ;;  %5174 = vmatpush1.bf16.msra.mxu1 %v8725_v14  ;;  %v4591_v10 = vadd.f32 0.5, %v4590_v12  ;;  %v5211_v14 = vrot.slane %v5206_v60, %v6880_v4  ;;  %v5219_v12 = vrot.slane %v5206_v60, %v6890_v9 }
 0x717   :  { %5134 = vmatprep.subr.bf16.mxu0 %v8726_v61  ;;  %5175 = vmatprep.subr.bf16.mxu1 %v8727_v63 }
 0x71a   :  { %5135 = vmatpush1.bf16.msra.mxu0 %v8728_v7  ;;  %5176 = vmatpush1.bf16.msra.mxu1 %v8729_v42 }
 0x71b   :  { %5136 = vmatprep.subr.bf16.mxu0 %v8730_v55  ;;  %5177 = vmatprep.subr.bf16.mxu1 %v8731_v41 }
 0x71e   :  { %5137 = vmatpush1.bf16.msra.mxu0 %v8417_v62  ;;  %5178 = vmatpush1.bf16.msra.mxu1 %v8732_v1  ;;  %v5782_v62 = vld [vmem:[%s8605_s0 + $0x70] sm:$0xff] }
 0x71f   :  { %5138 = vmatprep.subr.bf16.mxu0 %v8429_v54  ;;  %5179 = vmatprep.subr.bf16.mxu1 %v8434_v16  ;;  %v6376_v39 = vpop.eup %6375  ;;  %v5783_v54 = vld [vmem:[%s8605_s0 + $0x78] sm:$0xff]  ;;  %v4883_v16 = vld [vmem:[%s8606_s4] sm:$0xf]  ;;  %v4638_v21 = vunpack.c.h.bf16 %v5782_v62 }
 0x720   :  { %v4596_v18 = vmul.f32 %v6376_v39, %v4591_v10  ;;  %v4888_v22 = vrot.slane %v4883_v16, %v6880_v4  ;;  %v4892_v25 = vrot.slane %v4883_v16, %v6885_v6  ;;  %v4896_v28 = vrot.slane %v4883_v16, %v6890_v9 }
 0x721   :  { %v4640_v15 = vunpack.c.h.bf16 %v5783_v54  ;;  %v4900_v8 = vrot.slane %v4883_v16, %v6895_v29  ;;  %v5223_v9 = vrot.slane %v5206_v60, %v6895_v29 }
 0x722   :  { %5139 = vmatpush1.bf16.msra.mxu0 %v8441_v11  ;;  %5180 = vmatpush1.bf16.msra.mxu1 %v8446_v57  ;;  %5781 = vst [vmem:[%s8610_s7 + $0x8] sm:$0xff] %v4596_v18  ;;  %v4927_v20 = vpack.c.bf16 %v4596_v18, %v4596_v18  ;;  %v4637_v57 = vunpack.c.l.bf16 %v5782_v62  ;;  %v4639_v11 = vunpack.c.l.bf16 %v5783_v54 }
 0x725   :  { %5157 = vmatmul.mubr.bf16.vlgmr.msra.gmra.mrb[60].mxu0 %v4927_v20  ;;  %5198 = vmatmul.mubr.bf16.vlgmr.msra.gmra.mrb[60].mxu1 %v4927_v20 }
 0x7d8   :  { %v4835_v23 = vpop.f32.mrb[56].mxu0  ;;  %v4876_v24 = vpop.f32.mrb[56].mxu1 }
 0x7d9   :  { %v4836_v26 = vadd.f32 %v4835_v23, %v4637_v57  ;;  %v4877_v27 = vadd.f32 %v4876_v24, %v4639_v11  ;;  %v4837_v30 = vpop.f32.mrb[57].mxu0  ;;  %v4878_v31 = vpop.f32.mrb[57].mxu1 }
 0x7da   :  { %v4838_v32 = vadd.f32 %v4837_v30, %v4638_v21  ;;  %v4839_v33 = vpop.f32.mrb[58].mxu0  ;;  %v4880_v34 = vpop.f32.mrb[58].mxu1  ;;  %v4879_v45 = vadd.f32 %v4878_v31, %v4640_v15  ;;  %v4963_v21 = vunpack.c.h.bf16 %v5817_v56 }
 0x7db   :  { %v4905_v59 = vadd.f32 %v4888_v22, %v4836_v26  ;;  %v4840_v0 = vpop.f32.mrb[59].mxu0  ;;  %v4881_v48 = vpop.f32.mrb[59].mxu1  ;;  %v4907_v51 = vadd.f32 %v4896_v28, %v4877_v27 }
 0x7dc   :  { %v4906_v43 = vadd.f32 %v4892_v25, %v4838_v32  ;;  %v4908_v58 = vadd.f32 %v4900_v8, %v4879_v45 }
 0x7dd   :  { %6377 = vtanh.f32 %v4905_v59 }
 0x7de   :  { %6379 = vtanh.f32 %v4906_v43 }
 0x7df   :  { %6381 = vtanh.f32 %v4907_v51 }
 0x7e0   :  { %6383 = vtanh.f32 %v4908_v58 }
 0x7e7   :  { %v6378_v40 = vpop.eup %6377 }
 0x7e8   :  { %v4913_v5 = vmul.f32 0.5, %v6378_v40  ;;  %v6380_v52 = vpop.eup %6379 }
 0x7e9   :  { %v4915_v2 = vmul.f32 0.5, %v6380_v52  ;;  %v6382_v46 = vpop.eup %6381 }
 0x7ea   :  { %v4914_v17 = vadd.f32 0.5, %v4913_v5  ;;  %v6384_v37 = vpop.eup %6383 }
 0x7eb   :  { %v4916_v47 = vadd.f32 0.5, %v4915_v2  ;;  %v4917_v13 = vmul.f32 0.5, %v6384_v37 }
 0x7ec   :  { %v4920_v44 = vmul.f32 %v6382_v46, %v4914_v17 }
 0x7ed   :  { %v4919_v50 = vmul.f32 %v4916_v47, %v8505_v19  ;;  %v4960_v19 = vunpack.c.l.bf16 %v5816_v38  ;;  %v4918_v18 = vadd.f32 0.5, %v4917_v13 }
 0x7ef   :  { %v4921_v35 = vadd.f32 %v4920_v44, %v4919_v50 }
 0x7f1   :  { %6385 = vtanh.f32 %v4921_v35  ;;  %5257 = vst [vmem:[%s8611_s8] sm:$0xff] %v4921_v35 }
 0x7f8   :  { %v5158_v61 = vpop.f32.mrb[60].mxu0  ;;  %v5199_v63 = vpop.f32.mrb[60].mxu1 }
 0x7f9   :  { %v5159_v7 = vadd.f32 %v5158_v61, %v4960_v19  ;;  %v5200_v42 = vadd.f32 %v5199_v63, %v4962_v53  ;;  %v5160_v55 = vpop.f32.mrb[61].mxu0  ;;  %v5201_v41 = vpop.f32.mrb[61].mxu1 }
 0x7fa   :  { %v5161_v1 = vadd.f32 %v5160_v55, %v4961_v3  ;;  %v5162_v10 = vpop.f32.mrb[62].mxu0  ;;  %v5203_v39 = vpop.f32.mrb[62].mxu1  ;;  %v5202_v6 = vadd.f32 %v5201_v41, %v4963_v21 }
 0x7fb   :  { %v5228_v20 = vadd.f32 %v5211_v14, %v5159_v7  ;;  %v5163_v62 = vpop.f32.mrb[63].mxu0  ;;  %v5204_v54 = vpop.f32.mrb[63].mxu1  ;;  %v5230_v11 = vadd.f32 %v5219_v12, %v5200_v42 }
 0x7fc   :  { %v6386_v16 = vpop.eup %6385  ;;  %v5229_v57 = vadd.f32 %v5215_v36, %v5161_v1  ;;  %v5231_v22 = vadd.f32 %v5223_v9, %v5202_v6 }
 0x7fd   :  { %v4923_v4 = vmul.f32 %v6386_v16, %v4918_v18  ;;  %6387 = vtanh.f32 %v5228_v20 }
 0x7fe   :  { %6389 = vtanh.f32 %v5229_v57 }
 0x7ff   :  { %5850 = vst [vmem:[%s8609_s6 + $0x38] sm:$0xff] %v4923_v4  ;;  %6391 = vtanh.f32 %v5230_v11 }
 0x800   :  { %6393 = vtanh.f32 %v5231_v22 }
 0x807   :  { %v6388_v23 = vpop.eup %6387 }
 0x808   :  { %v5236_v24 = vmul.f32 0.5, %v6388_v23  ;;  %v6390_v25 = vpop.eup %6389 }
 0x809   :  { %v5238_v27 = vmul.f32 0.5, %v6390_v25  ;;  %v6392_v28 = vpop.eup %6391 }
 0x80a   :  { %v5237_v26 = vadd.f32 0.5, %v5236_v24  ;;  %v6394_v34 = vpop.eup %6393 }
 0x80b   :  { %v5239_v30 = vadd.f32 0.5, %v5238_v27  ;;  %v5240_v29 = vmul.f32 0.5, %v6394_v34 }
 0x80c   :  { %v5243_v31 = vmul.f32 %v6392_v28, %v5237_v26 }
 0x80d   :  { %v5242_v32 = vmul.f32 %v5239_v30, %v8543_v49  ;;  %v5241_v59 = vadd.f32 0.5, %v5240_v29 }
 0x80f   :  { %v5244_v33 = vadd.f32 %v5243_v31, %v5242_v32 }
 0x811   :  { %6395 = vtanh.f32 %v5244_v33  ;;  %5258 = vst [vmem:[%s8612_s9] sm:$0xff] %v5244_v33 }
 0x81b   :  { %v6396_v0 = vpop.eup %6395 }
 0x81c   :  { %v5246_v48 = vmul.f32 %v6396_v0, %v5241_v59 }
 0x81e   :  { %5249 = vst [vmem:[%s8610_s7] sm:$0xff] %v5246_v48 }

</bundles_post_ra>
